<compile_context>
chip_gen: v6e
topology: v6e:2x2x1
jax: 0.10.0
libtpu: 0.0.40
codegen_flags: <defaults>
</compile_context>

<pallas_src>
import jax
import jax.numpy as jnp
from jax.experimental import pallas as pl
from jax.experimental.pallas import tpu as pltpu

NUM_CLASSES = 10
D_IN = 784      # 28*28; 784 = 49*16 -> sublane-aligned, no K padding needed
D_HID = 800
D_HID_P = 896   # 800 -> 7*128 (lane-dense hidden dim)
D_OUT_P = 128   # 10  -> 128 (lane-dense, unmasked output stores)


def _round_up(x, m):
    return (x + m - 1) // m * m


def _hw_config():
    """Per-generation (max batch tile, scoped-VMEM limit bytes, has >=2 TensorCores)."""
    kind = ""
    try:
        kind = jax.devices()[0].device_kind.lower()
    except Exception:
        pass
    if "v5" in kind:   # v5e/v5p: 128 MiB VMEM, slower MXU -> TM=512 already amortizes overhead
        return 512, 64 * 1024 * 1024, False
    if "v6" in kind:   # v6e: 128 MiB VMEM, single TensorCore
        return 1024, 64 * 1024 * 1024, False
    # v7x and unknown generations: 64 MiB VMEM per TC, 2 TensorCores ->
    # cap TM, keep VMEM headroom, and prefer grids with >= 2 steps.
    return 1024, 48 * 1024 * 1024, True


def _pick_tile(batch, tm_max, multi_tc):
    """Pick (tm, padded_batch) minimizing wasted rows while keeping steps coarse."""
    base = _round_up(max(batch, 1), 16)
    if base <= 128:
        # Latency regime: one small tile; megacore split is not worth extra padding.
        return base, base
    if multi_tc and base <= 2 * tm_max:
        # Two equal 16-aligned tiles -> both v7x TensorCores get work, <=15 pad rows.
        tm = _round_up((base + 1) // 2, 16)
        return tm, 2 * tm
    if not multi_tc and base <= tm_max:
        # Single-TC parts: one tile sized to the batch -> no ragged-batch blow-up.
        return base, base
    # Large batches: 128-aligned tile minimizing padded rows + per-step overhead
    # (~0.35 us/step modeled as ~64 rows-equivalent of MXU work).
    best = None
    for t in (128, 256, 512, 1024, 2048):
        if t > tm_max:
            continue
        pb = _round_up(base, t)
        steps = pb // t
        key = (pb + 64 * steps, -t)
        if best is None or key < best[0]:
            best = (key, t, pb)
    return best[1], best[2]


def mlp800_kernel(x_ref, w1_ref, b1_ref, w2_ref, b2_ref, w3_ref, b3_ref, o_ref):
    # x arrives as f32 straight from HBM; cast to bf16 in-register (VPU, cheap).
    x = x_ref[...].astype(jnp.bfloat16)

    # fc1 + ReLU  (drop1 is identity: DropoutFreeze with mask=None)
    h1 = jnp.dot(x, w1_ref[...], preferred_element_type=jnp.float32)
    h1 = jnp.maximum(h1 + b1_ref[...], 0.0)

    # fc2 + ReLU  (drop2 is identity)
    h2 = jnp.dot(h1.astype(jnp.bfloat16), w2_ref[...],
                 preferred_element_type=jnp.float32)
    h2 = jnp.maximum(h2 + b2_ref[...], 0.0)

    # fc3 (logits padded out to 128 lanes; padded columns are exactly zero)
    out = jnp.dot(h2.astype(jnp.bfloat16), w3_ref[...],
                  preferred_element_type=jnp.float32)
    o_ref[...] = (out + b3_ref[...]).astype(o_ref.dtype)


def _pad2(a, shape, dtype):
    out = jnp.zeros(shape, dtype)
    return out.at[: a.shape[0], : a.shape[1]].set(a.astype(dtype))


def pad_and_cast_params(params):
    """Zero-pad params to lane-aligned shapes; weights -> bf16, biases stay f32.

    Done once (outside the per-call path) so the kernel only sees aligned,
    MXU-native operands. K of fc1 stays 784 (already sublane-aligned).
    """
    w1, b1, w2, b2, w3, b3 = params
    w1p = _pad2(w1, (D_IN, D_HID_P), jnp.bfloat16)
    b1p = _pad2(b1, (1, D_HID_P), jnp.float32)
    w2p = _pad2(w2, (D_HID_P, D_HID_P), jnp.bfloat16)
    b2p = _pad2(b2, (1, D_HID_P), jnp.float32)
    w3p = _pad2(w3, (D_HID_P, D_OUT_P), jnp.bfloat16)
    b3p = _pad2(b3, (1, D_OUT_P), jnp.float32)
    return (w1p, b1p, w2p, b2p, w3p, b3p)


def mlp800_forward(x, padded_params, num_classes=NUM_CLASSES):
    """x: (B, 1, 28, 28) float32 NCHW. Returns logits (B, num_classes) f32."""
    w1, b1, w2, b2, w3, b3 = padded_params

    x_flat = x.reshape(-1, D_IN)          # == torch .view(-1, 784); stays f32
    batch = x_flat.shape[0]

    tm_max, vmem_limit, multi_tc = _hw_config()
    tm, padded_b = _pick_tile(batch, tm_max, multi_tc)

    # Only row padding (no dtype widening, no column padding); a no-op when the
    # batch is already tile-aligned.
    if padded_b != batch:
        x_flat = jnp.pad(x_flat, ((0, padded_b - batch), (0, 0)))

    resident = lambda i: (0, 0)           # weights/biases: same block every grid step

    param_bytes = sum(int(p.size) * p.dtype.itemsize for p in padded_params)
    cost = pl.CostEstimate(
        flops=2 * padded_b * (D_IN * D_HID_P + D_HID_P * D_HID_P + D_HID_P * D_OUT_P),
        transcendentals=0,
        bytes_accessed=padded_b * (D_IN + D_OUT_P) * 4 + param_bytes,
    )

    out_padded = pl.pallas_call(
        mlp800_kernel,
        out_shape=jax.ShapeDtypeStruct((padded_b, D_OUT_P), jnp.float32),
        grid=(padded_b // tm,),
        in_specs=[
            pl.BlockSpec((tm, D_IN), lambda i: (i, 0)),      # x tile (raw f32)
            pl.BlockSpec((D_IN, D_HID_P), resident),          # w1 (bf16, resident)
            pl.BlockSpec((1, D_HID_P), resident),              # b1
            pl.BlockSpec((D_HID_P, D_HID_P), resident),        # w2
            pl.BlockSpec((1, D_HID_P), resident),               # b2
            pl.BlockSpec((D_HID_P, D_OUT_P), resident),          # w3
            pl.BlockSpec((1, D_OUT_P), resident),                 # b3
        ],
        out_specs=pl.BlockSpec((tm, D_OUT_P), lambda i: (i, 0)),
        compiler_params=pltpu.CompilerParams(
            dimension_semantics=("parallel",),   # batch tiles shard across TCs (v7x)
            vmem_limit_bytes=vmem_limit,         # per-generation scoped-VMEM ceiling
        ),
        cost_estimate=cost,
    )(x_flat, w1, b1, w2, b2, w3, b3)

    # Drop the batch / logit padding before anything downstream (argmax etc.).
    return out_padded[:batch, :num_classes]


def init_params(key, num_classes=NUM_CLASSES):
    """Kaiming-normal weights (fan_in, gain=sqrt(2)), zero biases.

    PyTorch nn.Linear weight has shape (out, in); we store the transpose
    (in, out) so the kernel computes x @ W directly.
    """
    k1, k2, k3 = jax.random.split(key, 3)

    def kaiming(k, fan_in, fan_out):
        std = (2.0 / fan_in) ** 0.5
        return jax.random.normal(k, (fan_in, fan_out), dtype=jnp.float32) * std

    w1 = kaiming(k1, D_IN, D_HID)
    b1 = jnp.zeros((1, D_HID), dtype=jnp.float32)
    w2 = kaiming(k2, D_HID, D_HID)
    b2 = jnp.zeros((1, D_HID), dtype=jnp.float32)
    w3 = kaiming(k3, D_HID, num_classes)
    b3 = jnp.zeros((1, num_classes), dtype=jnp.float32)
    return (w1, b1, w2, b2, w3, b3)


if __name__ == "__main__":
    key = jax.random.PRNGKey(0)
    kx, kp = jax.random.split(key)

    # MNIST-like input, small batch. NCHW: (B, 1, 28, 28) -> flattens to (B, 784).
    x = jax.random.normal(kx, (2, 1, 28, 28), dtype=jnp.float32)
    params = init_params(kp)
    padded_params = pad_and_cast_params(params)   # one-time pad + bf16 cast

    logits = jax.jit(mlp800_forward)(x, padded_params)
    jax.block_until_ready(logits)

    # Sanity check against a plain-JAX reference using the same bf16 operands.
    w1, b1, w2, b2, w3, b3 = params
    xf = x.reshape(-1, D_IN)
    h1 = jnp.maximum(
        jnp.dot(xf.astype(jnp.bfloat16), w1.astype(jnp.bfloat16),
                preferred_element_type=jnp.float32) + b1, 0.0)
    h2 = jnp.maximum(
        jnp.dot(h1.astype(jnp.bfloat16), w2.astype(jnp.bfloat16),
                preferred_element_type=jnp.float32) + b2, 0.0)
    ref = jnp.dot(h2.astype(jnp.bfloat16), w3.astype(jnp.bfloat16),
                  preferred_element_type=jnp.float32) + b3

    assert logits.shape == (2, NUM_CLASSES)
    assert jnp.allclose(logits, ref, atol=1e-2, rtol=1e-2)

    print("KERNEL_OK")
</pallas_src>

<mosaic_0001>
module attributes {stable_mosaic.version = 11 : i64} {
  func.func @mlp800_kernel(%arg0: i32, %arg1: memref<16x784xf32, #tpu.memory_space<vmem>>, %arg2: memref<784x896xbf16, #tpu.memory_space<vmem>>, %arg3: memref<1x896xf32, #tpu.memory_space<vmem>>, %arg4: memref<896x896xbf16, #tpu.memory_space<vmem>>, %arg5: memref<1x896xf32, #tpu.memory_space<vmem>>, %arg6: memref<896x128xbf16, #tpu.memory_space<vmem>>, %arg7: memref<1x128xf32, #tpu.memory_space<vmem>>, %arg8: memref<16x128xf32, #tpu.memory_space<vmem>>) attributes {dimension_semantics = [#tpu.dimension_semantics<parallel>], iteration_bounds = array<i64: 1>, scalar_prefetch = 0 : i64, scratch_operands = 0 : i64, tpu.core_type = #tpu.core_type<tc>, window_params = [{transform_indices = @transform_0, window_bounds = array<i64: 16, 784>}, {pipeline_mode = #tpu.pipeline_mode<synchronous>, transform_indices = @transform_1, window_bounds = array<i64: 784, 896>}, {pipeline_mode = #tpu.pipeline_mode<synchronous>, transform_indices = @transform_2, window_bounds = array<i64: 1, 896>}, {pipeline_mode = #tpu.pipeline_mode<synchronous>, transform_indices = @transform_3, window_bounds = array<i64: 896, 896>}, {pipeline_mode = #tpu.pipeline_mode<synchronous>, transform_indices = @transform_4, window_bounds = array<i64: 1, 896>}, {pipeline_mode = #tpu.pipeline_mode<synchronous>, transform_indices = @transform_5, window_bounds = array<i64: 896, 128>}, {pipeline_mode = #tpu.pipeline_mode<synchronous>, transform_indices = @transform_6, window_bounds = array<i64: 1, 128>}, {transform_indices = @transform_7, window_bounds = array<i64: 16, 128>}]} {
    %c0 = arith.constant 0 : index
    %c0_0 = arith.constant 0 : index
    %0 = vector.load %arg1[%c0, %c0_0] : memref<16x784xf32, #tpu.memory_space<vmem>>, vector<16x784xf32>
    %1 = arith.truncf %0 : vector<16x784xf32> to vector<16x784xbf16>
    %c0_1 = arith.constant 0 : index
    %c0_2 = arith.constant 0 : index
    %2 = vector.load %arg2[%c0_1, %c0_2] : memref<784x896xbf16, #tpu.memory_space<vmem>>, vector<784x896xbf16>
    %cst = arith.constant dense<0.000000e+00> : vector<16x896xf32>
    %3 = tpu.matmul %1, %2, %cst {dimension_numbers = #tpu.dot_dimension_numbers<[1], [0], [0], [1], [0, 0, 1, 1], [], []>} : vector<16x784xbf16>, vector<784x896xbf16>, vector<16x896xf32> -> vector<16x896xf32>
    %c0_3 = arith.constant 0 : index
    %c0_4 = arith.constant 0 : index
    %4 = vector.load %arg3[%c0_3, %c0_4] : memref<1x896xf32, #tpu.memory_space<vmem>>, vector<1x896xf32>
    %5 = vector.broadcast %4 : vector<1x896xf32> to vector<16x896xf32>
    %6 = arith.addf %3, %5 : vector<16x896xf32>
    %cst_5 = arith.constant 0.000000e+00 : f32
    %7 = vector.broadcast %cst_5 : f32 to vector<16x896xf32>
    %8 = arith.maximumf %6, %7 : vector<16x896xf32>
    %9 = arith.truncf %8 : vector<16x896xf32> to vector<16x896xbf16>
    %c0_6 = arith.constant 0 : index
    %c0_7 = arith.constant 0 : index
    %10 = vector.load %arg4[%c0_6, %c0_7] : memref<896x896xbf16, #tpu.memory_space<vmem>>, vector<896x896xbf16>
    %cst_8 = arith.constant dense<0.000000e+00> : vector<16x896xf32>
    %11 = tpu.matmul %9, %10, %cst_8 {dimension_numbers = #tpu.dot_dimension_numbers<[1], [0], [0], [1], [0, 0, 1, 1], [], []>} : vector<16x896xbf16>, vector<896x896xbf16>, vector<16x896xf32> -> vector<16x896xf32>
    %c0_9 = arith.constant 0 : index
    %c0_10 = arith.constant 0 : index
    %12 = vector.load %arg5[%c0_9, %c0_10] : memref<1x896xf32, #tpu.memory_space<vmem>>, vector<1x896xf32>
    %13 = vector.broadcast %12 : vector<1x896xf32> to vector<16x896xf32>
    %14 = arith.addf %11, %13 : vector<16x896xf32>
    %cst_11 = arith.constant 0.000000e+00 : f32
    %15 = vector.broadcast %cst_11 : f32 to vector<16x896xf32>
    %16 = arith.maximumf %14, %15 : vector<16x896xf32>
    %17 = arith.truncf %16 : vector<16x896xf32> to vector<16x896xbf16>
    %c0_12 = arith.constant 0 : index
    %c0_13 = arith.constant 0 : index
    %18 = vector.load %arg6[%c0_12, %c0_13] : memref<896x128xbf16, #tpu.memory_space<vmem>>, vector<896x128xbf16>
    %cst_14 = arith.constant dense<0.000000e+00> : vector<16x128xf32>
    %19 = tpu.matmul %17, %18, %cst_14 {dimension_numbers = #tpu.dot_dimension_numbers<[1], [0], [0], [1], [0, 0, 1, 1], [], []>} : vector<16x896xbf16>, vector<896x128xbf16>, vector<16x128xf32> -> vector<16x128xf32>
    %c0_15 = arith.constant 0 : index
    %c0_16 = arith.constant 0 : index
    %20 = vector.load %arg7[%c0_15, %c0_16] : memref<1x128xf32, #tpu.memory_space<vmem>>, vector<1x128xf32>
    %21 = vector.broadcast %20 : vector<1x128xf32> to vector<16x128xf32>
    %22 = arith.addf %19, %21 : vector<16x128xf32>
    %c0_17 = arith.constant 0 : index
    %c0_18 = arith.constant 0 : index
    %23 = vector.load %arg8[%c0_17, %c0_18] : memref<16x128xf32, #tpu.memory_space<vmem>>, vector<16x128xf32>
    tpu.vector_store %arg8[%c0_17, %c0_18], %22 {strides = array<i32>} : memref<16x128xf32, #tpu.memory_space<vmem>>, vector<16x128xf32>,
    return
  }
  func.func @transform_0(%arg0: i32) -> (i32, i32) {
    %c0_i32 = arith.constant 0 : i32
    %c0_i32_0 = arith.constant 0 : i32
    return %arg0, %c0_i32 : i32, i32
  }
  func.func @transform_1(%arg0: i32) -> (i32, i32) {
    %c0_i32 = arith.constant 0 : i32
    %c0_i32_0 = arith.constant 0 : i32
    %c0_i32_1 = arith.constant 0 : i32
    return %c0_i32, %c0_i32_0 : i32, i32
  }
  func.func @transform_2(%arg0: i32) -> (i32, i32) {
    %c0_i32 = arith.constant 0 : i32
    %c0_i32_0 = arith.constant 0 : i32
    %c0_i32_1 = arith.constant 0 : i32
    return %c0_i32, %c0_i32_0 : i32, i32
  }
  func.func @transform_3(%arg0: i32) -> (i32, i32) {
    %c0_i32 = arith.constant 0 : i32
    %c0_i32_0 = arith.constant 0 : i32
    %c0_i32_1 = arith.constant 0 : i32
    return %c0_i32, %c0_i32_0 : i32, i32
  }
  func.func @transform_4(%arg0: i32) -> (i32, i32) {
    %c0_i32 = arith.constant 0 : i32
    %c0_i32_0 = arith.constant 0 : i32
    %c0_i32_1 = arith.constant 0 : i32
    return %c0_i32, %c0_i32_0 : i32, i32
  }
  func.func @transform_5(%arg0: i32) -> (i32, i32) {
    %c0_i32 = arith.constant 0 : i32
    %c0_i32_0 = arith.constant 0 : i32
    %c0_i32_1 = arith.constant 0 : i32
    return %c0_i32, %c0_i32_0 : i32, i32
  }
  func.func @transform_6(%arg0: i32) -> (i32, i32) {
    %c0_i32 = arith.constant 0 : i32
    %c0_i32_0 = arith.constant 0 : i32
    %c0_i32_1 = arith.constant 0 : i32
    return %c0_i32, %c0_i32_0 : i32, i32
  }
  func.func @transform_7(%arg0: i32) -> (i32, i32) {
    %c0_i32 = arith.constant 0 : i32
    %c0_i32_0 = arith.constant 0 : i32
    return %arg0, %c0_i32 : i32, i32
  }
}

</mosaic_0001>

<bundles_post_ra>
// kernel: mlp800_forward.1
= control target key start
LH: loop header
LB: loop body
LE: loop exit
PB: predicated region body
PF: predicated region fallthrough
CT: control target
= control target key end

     0   :  { %12 = vsyncpa [#allocation3], 0  ;;  %s9539_s0 = inlined_call_operand.vmem [shape: f32[16,784], index: 0, kind: input, shape index: {}]   ;;  %s9540_s1 = inlined_call_operand.hbm [shape: bf16[784,896], index: 1, kind: input, shape index: {}]   ;;  %s9541_s2 = inlined_call_operand.hbm [shape: f32[1,896], index: 2, kind: input, shape index: {}]   ;;  %s9542_s3 = inlined_call_operand.hbm [shape: bf16[896,896], index: 3, kind: input, shape index: {}]   ;;  %s9543_s4 = inlined_call_operand.hbm [shape: f32[1,896], index: 4, kind: input, shape index: {}]   ;;  %s9544_s5 = inlined_call_operand.hbm [shape: bf16[896,128], index: 5, kind: input, shape index: {}]   ;;  %s9545_s6 = inlined_call_operand.hbm [shape: f32[1,128], index: 6, kind: input, shape index: {}]   ;;  %s9546_s7 = inlined_call_operand.vmem [shape: f32[16,128], index: 7, kind: output, shape index: {}]  }
   0x1   :  { %13 = vsyncpa [#allocation5], 0 }
   0x2   :  { %14 = vsyncpa [#allocation8], 0 }
   0x3   :  { %15 = vsyncpa [#allocation11], 0  ;;  %s9161_s24 = smov [#allocation4]   ;;  %s9162_s26 = smov [#allocation7]  }
   0x4   :  { %s36_s25 = sshll.u32 %s9161_s24, 4  ;;  %s58_s27 = sshll.u32 %s9162_s26, 4  ;;  %s37_s25 = int_to_ptr.vmem [resolvable:$true] %s36_s25  ;;  %s59_s27 = int_to_ptr.vmem [resolvable:$true] %s58_s27 }
   0x5   :  { %s9041_s28 = scalar_lea.vmem %s37_s25, 112  ;;  %s9045_s29 = scalar_lea.vmem %s37_s25, 128 }
   0x6   :  { %p9042_p0 = scmp.ne.s32.totalorder %s37_s25, %s9041_s28  ;;  %p9046_p1 = scmp.lt.s32.totalorder %s37_s25, %s37_s25 }
   0x7   :  { %p9047_p2 = scmp.lt.s32.totalorder %s9045_s29, %s9041_s28 }
   0x9   :  { %p9048_p3 = por %p9047_p2, %p9046_p1 }
   0xb   :  { %p9049_p4 = pnand %p9048_p3, %p9042_p0 }
   0xd   :  { %9052 = shalt.err (!%p9049_p4)
}
   0xe   :  { %39 = dma.hbm_to_vmem [thread:$0]  %s9541_s2, 112, %s37_s25, [#allocation5]  }
   0xf   :  { %s9061_s9 = scalar_lea.vmem %s59_s27, 112  ;;  %s9065_s10 = scalar_lea.vmem %s59_s27, 128 }
  0x10   :  { %p9062_p5 = scmp.ne.s32.totalorder %s59_s27, %s9061_s9  ;;  %p9066_p6 = scmp.lt.s32.totalorder %s59_s27, %s59_s27 }
  0x11   :  { %p9067_p7 = scmp.lt.s32.totalorder %s9065_s10, %s9061_s9 }
  0x13   :  { %p9068_p8 = por %p9067_p7, %p9066_p6 }
  0x15   :  { %p9069_p9 = pnand %p9068_p8, %p9062_p5 }
  0x17   :  { %9072 = shalt.err (!%p9069_p9)
}
  0x18   :  { %61 = dma.hbm_to_vmem [thread:$0]  %s9543_s4, 112, %s59_s27, [#allocation8]  }
  0x19   :  { %s9163_s13 = smov [#allocation2]  }
  0x1a   :  { %s23_s14 = sshll.u32 %s9163_s13, 4  ;;  %s24_s14 = int_to_ptr.vmem [resolvable:$true] %s23_s14 }
  0x1b   :  { %s9081_s15 = scalar_lea.vmem %s24_s14, 43904  ;;  %p9086_p11 = scmp.lt.s32.totalorder %s24_s14, %s24_s14 }
  0x1c   :  { %p9082_p10 = scmp.ne.s32.totalorder %s24_s14, %s9081_s15  ;;  %p9087_p12 = scmp.lt.s32.totalorder %s9081_s15, %s9081_s15 }
  0x1e   :  { %p9088_p13 = por %p9087_p12, %p9086_p11 }
  0x20   :  { %p9089_p0 = pnand %p9088_p13, %p9082_p10 }
  0x22   :  { %9092 = shalt.err (!%p9089_p0)
}
  0x23   :  { %s9164_s2 = smov 448   ;;  %s9165_s16 = smov 28  }
  0x24   :  { %29 = dma.hbm_to_vmem [thread:$0]  %s9540_s1, 43904, %s24_s14, [#allocation3], %s9164_s2, %s9164_s2, %s9165_s16  }
  0x25   :  { %s9166_s19 = smov [#allocation6]   ;;  %s9167_s4 = smov [#allocation9]  }
  0x26   :  { %s45_s20 = sshll.u32 %s9166_s19, 4  ;;  %s67_s21 = sshll.u32 %s9167_s4, 4  ;;  %s46_s20 = int_to_ptr.vmem [resolvable:$true] %s45_s20  ;;  %s68_s21 = int_to_ptr.vmem [resolvable:$true] %s67_s21 }
  0x27   :  { %s9101_s22 = scalar_lea.vmem %s46_s20, 50176  ;;  %p9106_p2 = scmp.lt.s32.totalorder %s46_s20, %s46_s20 }
  0x28   :  { %p9102_p1 = scmp.ne.s32.totalorder %s46_s20, %s9101_s22  ;;  %p9107_p3 = scmp.lt.s32.totalorder %s9101_s22, %s9101_s22 }
  0x2a   :  { %p9108_p4 = por %p9107_p3, %p9106_p2 }
  0x2c   :  { %p9109_p5 = pnand %p9108_p4, %p9102_p1 }
  0x2e   :  { %9112 = shalt.err (!%p9109_p5)
}
  0x2f   :  { %51 = dma.hbm_to_vmem [thread:$0]  %s9542_s3, 50176, %s46_s20, [#allocation5], %s9164_s2, %s9164_s2, %s9165_s16  }
  0x30   :  { %s9121_s25 = scalar_lea.vmem %s68_s21, 7168  ;;  %p9126_p7 = scmp.lt.s32.totalorder %s68_s21, %s68_s21 }
  0x31   :  { %p9122_p6 = scmp.ne.s32.totalorder %s68_s21, %s9121_s25  ;;  %p9127_p8 = scmp.lt.s32.totalorder %s9121_s25, %s9121_s25 }
  0x33   :  { %p9128_p9 = por %p9127_p8, %p9126_p7 }
  0x35   :  { %p9129_p10 = pnand %p9128_p9, %p9122_p6 }
  0x37   :  { %9132 = shalt.err (!%p9129_p10)
}
  0x38   :  { %s9168_s1 = smov 64   ;;  %s9169_s26 = smov 4  }
  0x39   :  { %73 = dma.hbm_to_vmem [thread:$0]  %s9544_s5, 7168, %s68_s21, [#allocation8], %s9168_s1, %s9168_s1, %s9169_s26  }
  0x3a   :  { %s9170_s29 = smov [#allocation10]  }
  0x3b   :  { %s80_s30 = sshll.u32 %s9170_s29, 4  ;;  %s81_s30 = int_to_ptr.vmem [resolvable:$true] %s80_s30 }
  0x3c   :  { %s9141_s8 = scalar_lea.vmem %s81_s30, 16  ;;  %s9145_s3 = scalar_lea.vmem %s81_s30, 32 }
  0x3d   :  { %p9142_p11 = scmp.ne.s32.totalorder %s81_s30, %s9141_s8  ;;  %p9146_p12 = scmp.lt.s32.totalorder %s81_s30, %s81_s30 }
  0x3e   :  { %p9147_p13 = scmp.lt.s32.totalorder %s9145_s3, %s9141_s8 }
  0x40   :  { %p9148_p0 = por %p9147_p13, %p9146_p12 }
  0x42   :  { %p9149_p1 = pnand %p9148_p0, %p9142_p11 }
  0x44   :  { %9152 = shalt.err (!%p9149_p1)
}
  0x45   :  { %83 = dma.hbm_to_vmem [thread:$0]  %s9545_s6, 16, %s81_s30, [#allocation11]  }
  0x46   :  { %9153 = dma.done.wait [#allocation3], 43904  }
  0x47   :  { %9154 = vsyncadd [#allocation3], 4294923392 }
  0x48   :  { %9155 = dma.done.wait [#allocation5], 50288  }
  0x49   :  { %9156 = vsyncadd [#allocation5], 4294917008 }
  0x4a   :  { %9157 = dma.done.wait [#allocation8], 7280  }
  0x4b   :  { %9158 = vsyncadd [#allocation8], 4294960016 }
  0x4c   :  { %9159 = dma.done.wait [#allocation11], 16  }
  0x4d   :  { %9160 = vsyncadd [#allocation11], 4294967280  ;;  %v7926_v0 = vld [vmem:[#allocation2 + $0x18c] ss:$28 sps:$4 sm:$0xff]   ;;  %v7932_v4 = vld [vmem:[#allocation2 + $0x154] ss:$28 sps:$4 sm:$0xff]  }
  0x4e   :  { %v7928_v1 = vld [vmem:[#allocation2 + $0x50c] ss:$28 sps:$4 sm:$0xff]   ;;  %2321 = vmatprep.subr.bf16.mxu0 %v7926_v0  ;;  %v7934_v5 = vld [vmem:[#allocation2 + $0x4d4] ss:$28 sps:$4 sm:$0xff]   ;;  %v7938_v8 = vld [vmem:[#allocation2 + $0x11c] ss:$28 sps:$4 sm:$0xff]  }
  0x4f   :  { %v7930_v2 = vld [vmem:[#allocation2 + $0x188] ss:$28 sps:$4 sm:$0xff]   ;;  %2364 = vmatprep.subr.bf16.mxu1 %v7928_v1  ;;  %v7936_v6 = vld [vmem:[#allocation2 + $0x150] ss:$28 sps:$4 sm:$0xff]   ;;  %v7940_v9 = vld [vmem:[#allocation2 + $0x49c] ss:$28 sps:$4 sm:$0xff]  }
  0x50   :  { %v7931_v3 = vld [vmem:[#allocation2 + $0x508] ss:$28 sps:$4 sm:$0xff]   ;;  %2322 = vmatpush1.bf16.msra.mxu0 %v7930_v2  ;;  %v7937_v7 = vld [vmem:[#allocation2 + $0x4d0] ss:$28 sps:$4 sm:$0xff]   ;;  %v7942_v10 = vld [vmem:[#allocation2 + $0x118] ss:$28 sps:$4 sm:$0xff]  }
  0x51   :  { %2365 = vmatpush1.bf16.msra.mxu1 %v7931_v3  ;;  %2323 = vmatprep.subr.bf16.mxu0 %v7932_v4  ;;  %v7943_v11 = vld [vmem:[#allocation2 + $0x498] ss:$28 sps:$4 sm:$0xff]   ;;  %v7944_v12 = vld [vmem:[#allocation2 + $0xe4] ss:$28 sps:$4 sm:$0xff]   ;;  %v7950_v16 = vld [vmem:[#allocation2 + $0xac] ss:$28 sps:$4 sm:$0xff]  }
  0x52   :  { %2366 = vmatprep.subr.bf16.mxu1 %v7934_v5  ;;  %v7946_v13 = vld [vmem:[#allocation2 + $0x464] ss:$28 sps:$4 sm:$0xff]   ;;  %v7952_v17 = vld [vmem:[#allocation2 + $0x42c] ss:$28 sps:$4 sm:$0xff]   ;;  %v7956_v20 = vld [vmem:[#allocation2 + $0x74] ss:$28 sps:$4 sm:$0xff]  }
  0x53   :  { %v7948_v14 = vld [vmem:[#allocation2 + $0xe0] ss:$28 sps:$4 sm:$0xff]   ;;  %v7954_v18 = vld [vmem:[#allocation2 + $0xa8] ss:$28 sps:$4 sm:$0xff]   ;;  %v7958_v21 = vld [vmem:[#allocation2 + $0x3f4] ss:$28 sps:$4 sm:$0xff]  }
  0x54   :  { %2324 = vmatpush1.bf16.msra.mxu0 %v7936_v6  ;;  %v7949_v15 = vld [vmem:[#allocation2 + $0x460] ss:$28 sps:$4 sm:$0xff]   ;;  %v7955_v19 = vld [vmem:[#allocation2 + $0x428] ss:$28 sps:$4 sm:$0xff]   ;;  %v7960_v22 = vld [vmem:[#allocation2 + $0x70] ss:$28 sps:$4 sm:$0xff]  }
  0x55   :  { %2367 = vmatpush1.bf16.msra.mxu1 %v7937_v7  ;;  %2325 = vmatprep.subr.bf16.mxu0 %v7938_v8  ;;  %v7961_v23 = vld [vmem:[#allocation2 + $0x3f0] ss:$28 sps:$4 sm:$0xff]   ;;  %v7962_v24 = vld [vmem:[#allocation2 + $0x3c] ss:$28 sps:$4 sm:$0xff]   ;;  %v7968_v28 = vld [vmem:[#allocation2 + $0x4] ss:$28 sps:$4 sm:$0xff]  }
  0x56   :  { %2368 = vmatprep.subr.bf16.mxu1 %v7940_v9  ;;  %v7964_v25 = vld [vmem:[#allocation2 + $0x3bc] ss:$28 sps:$4 sm:$0xff]   ;;  %v7970_v29 = vld [vmem:[#allocation2 + $0x384] ss:$28 sps:$4 sm:$0xff]   ;;  %v7974_v32 = vld [vmem:[#allocation2 + $0x34c] ss:$28 sps:$4 sm:$0xff]  }
  0x57   :  { %v7966_v26 = vld [vmem:[#allocation2 + $0x38] ss:$28 sps:$4 sm:$0xff]   ;;  %v7972_v30 = vld [vmem:[#allocation2] ss:$28 sps:$4 sm:$0xff]   ;;  %v7976_v33 = vld [vmem:[#allocation2 + $0x6cc] ss:$28 sps:$4 sm:$0xff]  }
  0x58   :  { %2326 = vmatpush1.bf16.msra.mxu0 %v7942_v10  ;;  %v7967_v27 = vld [vmem:[#allocation2 + $0x3b8] ss:$28 sps:$4 sm:$0xff]   ;;  %v7973_v31 = vld [vmem:[#allocation2 + $0x380] ss:$28 sps:$4 sm:$0xff]   ;;  %v7978_v34 = vld [vmem:[#allocation2 + $0x348] ss:$28 sps:$4 sm:$0xff]  }
  0x59   :  { %2369 = vmatpush1.bf16.msra.mxu1 %v7943_v11  ;;  %2327 = vmatprep.subr.bf16.mxu0 %v7944_v12  ;;  %v7979_v35 = vld [vmem:[#allocation2 + $0x6c8] ss:$28 sps:$4 sm:$0xff]   ;;  %v7980_v36 = vld [vmem:[#allocation2 + $0x314] ss:$28 sps:$4 sm:$0xff]   ;;  %v7986_v40 = vld [vmem:[#allocation2 + $0x2dc] ss:$28 sps:$4 sm:$0xff]  }
  0x5a   :  { %2370 = vmatprep.subr.bf16.mxu1 %v7946_v13  ;;  %v7982_v37 = vld [vmem:[#allocation2 + $0x694] ss:$28 sps:$4 sm:$0xff]   ;;  %v7988_v41 = vld [vmem:[#allocation2 + $0x65c] ss:$28 sps:$4 sm:$0xff]   ;;  %v7992_v44 = vld [vmem:[#allocation2 + $0x2a4] ss:$28 sps:$4 sm:$0xff]  }
  0x5b   :  { %v7984_v38 = vld [vmem:[#allocation2 + $0x310] ss:$28 sps:$4 sm:$0xff]   ;;  %v7990_v42 = vld [vmem:[#allocation2 + $0x2d8] ss:$28 sps:$4 sm:$0xff]   ;;  %v7994_v45 = vld [vmem:[#allocation2 + $0x624] ss:$28 sps:$4 sm:$0xff]  }
  0x5c   :  { %2328 = vmatpush1.bf16.msra.mxu0 %v7948_v14  ;;  %v7985_v39 = vld [vmem:[#allocation2 + $0x690] ss:$28 sps:$4 sm:$0xff]   ;;  %v7991_v43 = vld [vmem:[#allocation2 + $0x658] ss:$28 sps:$4 sm:$0xff]   ;;  %v7996_v47 = vld [vmem:[#allocation2 + $0x2a0] ss:$28 sps:$4 sm:$0xff]  }
  0x5d   :  { %2371 = vmatpush1.bf16.msra.mxu1 %v7949_v15  ;;  %2329 = vmatprep.subr.bf16.mxu0 %v7950_v16  ;;  %v104_v46 = vld [vmem:[%s9539_s0 + $0x8] sm:$0xff]  ;;  %v7997_v48 = vld [vmem:[#allocation2 + $0x620] ss:$28 sps:$4 sm:$0xff]   ;;  %v113_v52 = vld [vmem:[%s9539_s0 + $0x50] sm:$0xff]  ;;  %vm2317_vm0 = vcmask 130048   ;;  %vm9173_vm1 = vmmov 0  }
  0x5e   :  { %2372 = vmatprep.subr.bf16.mxu1 %v7952_v17  ;;  %v111_v49 = vld [vmem:[%s9539_s0 + $0x40] sm:$0xff]  ;;  %v106_v51 = vld [vmem:[%s9539_s0 + $0x18] sm:$0xff]  ;;  %v7998_v53 = vld [vmem:[#allocation2 + $0x26c] ss:$28 sps:$4 sm:$0xff]  }
  0x5f   :  { %v9238_v50 = vpack.c.bf16 %v111_v49, %v104_v46  ;;  %v8000_v54 = vld [vmem:[#allocation2 + $0x5ec] ss:$28 sps:$4 sm:$0xff]   ;;  %v9246_v55 = vpack.c.bf16 %v113_v52, %v106_v51  ;;  %v8004_v58 = vld [vmem:[#allocation2 + $0x234] ss:$28 sps:$4 sm:$0xff]   ;;  %v8010_v62 = vld [vmem:[#allocation2 + $0x1fc] ss:$28 sps:$4 sm:$0xff]  }
  0x60   :  { %2330 = vmatpush1.bf16.msra.mxu0 %v7954_v18  ;;  %v8002_v56 = vld [vmem:[#allocation2 + $0x268] ss:$28 sps:$4 sm:$0xff]   ;;  %v8006_v59 = vld [vmem:[#allocation2 + $0x5b4] ss:$28 sps:$4 sm:$0xff]   ;;  %v8012_v63 = vld [vmem:[#allocation2 + $0x57c] ss:$28 sps:$4 sm:$0xff]  }
  0x61   :  { %2373 = vmatpush1.bf16.msra.mxu1 %v7955_v19  ;;  %2331 = vmatprep.subr.bf16.mxu0 %v7956_v20  ;;  %v8003_v57 = vld [vmem:[#allocation2 + $0x5e8] ss:$28 sps:$4 sm:$0xff]   ;;  %v8008_v60 = vld [vmem:[#allocation2 + $0x230] ss:$28 sps:$4 sm:$0xff]   ;;  %v8014_v0 = vld [vmem:[#allocation2 + $0x1f8] ss:$28 sps:$4 sm:$0xff]  }
  0x62   :  { %2374 = vmatprep.subr.bf16.mxu1 %v7958_v21  ;;  %2353 = vmatprep.mubr.bf16.mxu0 %v9238_v50  ;;  %v8009_v61 = vld [vmem:[#allocation2 + $0x5b0] ss:$28 sps:$4 sm:$0xff]   ;;  %v8015_v1 = vld [vmem:[#allocation2 + $0x578] ss:$28 sps:$4 sm:$0xff]   ;;  %v8016_v2 = vld [vmem:[#allocation2 + $0x1c4] ss:$28 sps:$4 sm:$0xff]  }
  0x63   :  { %2396 = vmatprep.mubr.bf16.mxu1 %v9246_v55  ;;  %v8018_v3 = vld [vmem:[#allocation2 + $0x544] ss:$28 sps:$4 sm:$0xff]   ;;  %v110_v7 = vld [vmem:[%s9539_s0 + $0x38] sm:$0xff]  ;;  %v8024_v8 = vld [vmem:[#allocation2 + $0x88c] ss:$28 sps:$4 sm:$0xff]  }
  0x64   :  { %2332 = vmatpush1.bf16.msra.mxu0 %v7960_v22  ;;  %v8020_v4 = vld [vmem:[#allocation2 + $0x1c0] ss:$28 sps:$4 sm:$0xff]   ;;  %v105_v9 = vld [vmem:[%s9539_s0 + $0x10] sm:$0xff]  ;;  %v112_v10 = vld [vmem:[%s9539_s0 + $0x48] sm:$0xff] }
  0x65   :  { %2375 = vmatpush1.bf16.msra.mxu1 %v7961_v23  ;;  %2333 = vmatprep.subr.bf16.mxu0 %v7962_v24  ;;  %v8021_v5 = vld [vmem:[#allocation2 + $0x540] ss:$28 sps:$4 sm:$0xff]   ;;  %v8027_v11 = vld [vmem:[#allocation2 + $0x194] ss:$28 sps:$4 sm:$0xff]   ;;  %v8022_v13 = vld [vmem:[#allocation2 + $0x888] ss:$28 sps:$4 sm:$0xff]   ;;  %v9264_v15 = vpack.c.bf16 %v112_v10, %v105_v9 }
  0x66   :  { %2376 = vmatprep.subr.bf16.mxu1 %v7964_v25  ;;  %v103_v6 = vld [vmem:[%s9539_s0] sm:$0xff]  ;;  %v8025_v14 = vld [vmem:[#allocation2 + $0x190] ss:$28 sps:$4 sm:$0xff]   ;;  %v8033_v17 = vld [vmem:[#allocation2 + $0x15c] ss:$28 sps:$4 sm:$0xff]  }
  0x67   :  { %v9262_v12 = vpack.c.bf16 %v110_v7, %v103_v6  ;;  %v8030_v16 = vld [vmem:[#allocation2 + $0x854] ss:$28 sps:$4 sm:$0xff]   ;;  %v8036_v20 = vld [vmem:[#allocation2 + $0x81c] ss:$28 sps:$4 sm:$0xff]   ;;  %v8039_v21 = vld [vmem:[#allocation2 + $0x124] ss:$28 sps:$4 sm:$0xff]  }
  0x68   :  { %2334 = vmatpush1.bf16.msra.mxu0 %v7966_v26  ;;  %v8028_v18 = vld [vmem:[#allocation2 + $0x850] ss:$28 sps:$4 sm:$0xff]   ;;  %v8031_v19 = vld [vmem:[#allocation2 + $0x158] ss:$28 sps:$4 sm:$0xff]   ;;  %v8037_v23 = vld [vmem:[#allocation2 + $0x120] ss:$28 sps:$4 sm:$0xff]  }
  0x69   :  { %2377 = vmatpush1.bf16.msra.mxu1 %v7967_v27  ;;  %2335 = vmatprep.subr.bf16.mxu0 %v7968_v28  ;;  %v8034_v22 = vld [vmem:[#allocation2 + $0x818] ss:$28 sps:$4 sm:$0xff]   ;;  %v8042_v24 = vld [vmem:[#allocation2 + $0x7e4] ss:$28 sps:$4 sm:$0xff]   ;;  %v8045_v25 = vld [vmem:[#allocation2 + $0xec] ss:$28 sps:$4 sm:$0xff]  }
  0x6a   :  { %2378 = vmatprep.subr.bf16.mxu1 %v7970_v29  ;;  %v8040_v26 = vld [vmem:[#allocation2 + $0x7e0] ss:$28 sps:$4 sm:$0xff]   ;;  %v8043_v27 = vld [vmem:[#allocation2 + $0xe8] ss:$28 sps:$4 sm:$0xff]   ;;  %v8051_v29 = vld [vmem:[#allocation2 + $0xb4] ss:$28 sps:$4 sm:$0xff]  }
  0x6b   :  { %v8048_v28 = vld [vmem:[#allocation2 + $0x7ac] ss:$28 sps:$4 sm:$0xff]   ;;  %v8078_v52 = vld [vmem:[#allocation2 + $0xa14] ss:$28 sps:$4 sm:$0xff]   ;;  %v8105_v6 = vld [vmem:[#allocation2 + $0x23c] ss:$28 sps:$4 sm:$0xff]  }
  0x6c   :  { %2336 = vmatpush1.bf16.msra.mxu0 %v7972_v30  ;;  %v8046_v30 = vld [vmem:[#allocation2 + $0x7a8] ss:$28 sps:$4 sm:$0xff]   ;;  %v8073_v51 = vld [vmem:[#allocation2 + $0x350] ss:$28 sps:$4 sm:$0xff]   ;;  %v8108_v9 = vld [vmem:[#allocation2 + $0x8fc] ss:$28 sps:$4 sm:$0xff]  }
  0x6d   :  { %2379 = vmatpush1.bf16.msra.mxu1 %v7973_v31  ;;  %2337 = vmatprep.subr.bf16.mxu0 %v7974_v32  ;;  %v8049_v31 = vld [vmem:[#allocation2 + $0xb0] ss:$28 sps:$4 sm:$0xff]   ;;  %v8067_v46 = vld [vmem:[#allocation2 + $0x8] ss:$28 sps:$4 sm:$0xff]  }
  0x6e   :  { %2380 = vmatprep.subr.bf16.mxu1 %v7976_v33  ;;  %v8054_v32 = vld [vmem:[#allocation2 + $0x774] ss:$28 sps:$4 sm:$0xff]   ;;  %v8057_v33 = vld [vmem:[#allocation2 + $0x7c] ss:$28 sps:$4 sm:$0xff]   ;;  %v8070_v49 = vld [vmem:[#allocation2 + $0xa48] ss:$28 sps:$4 sm:$0xff]  }
  0x6f   :  { %v8100_v7 = vld [vmem:[#allocation2 + $0x930] ss:$28 sps:$4 sm:$0xff]   ;;  %v8111_v10 = vld [vmem:[#allocation2 + $0x204] ss:$28 sps:$4 sm:$0xff]  }
  0x70   :  { %2338 = vmatpush2.bf16.msra.mxu0 %v7978_v34  ;;  %v8052_v34 = vld [vmem:[#allocation2 + $0x770] ss:$28 sps:$4 sm:$0xff]  }
  0x71   :  { %2381 = vmatpush2.bf16.msra.mxu1 %v7979_v35  ;;  %2339 = vmatprep.subr.bf16.mxu0 %v7980_v36  ;;  %v8055_v35 = vld [vmem:[#allocation2 + $0x78] ss:$28 sps:$4 sm:$0xff]  }
  0x72   :  { %2382 = vmatprep.subr.bf16.mxu1 %v7982_v37  ;;  %v8060_v36 = vld [vmem:[#allocation2 + $0x73c] ss:$28 sps:$4 sm:$0xff]   ;;  %v8063_v37 = vld [vmem:[#allocation2 + $0x44] ss:$28 sps:$4 sm:$0xff]  }
  0x74   :  { %2340 = vmatpush2.bf16.msra.mxu0 %v7984_v38  ;;  %v8058_v38 = vld [vmem:[#allocation2 + $0x738] ss:$28 sps:$4 sm:$0xff]  }
  0x75   :  { %2383 = vmatpush2.bf16.msra.mxu1 %v7985_v39  ;;  %2341 = vmatprep.subr.bf16.mxu0 %v7986_v40  ;;  %v8061_v39 = vld [vmem:[#allocation2 + $0x40] ss:$28 sps:$4 sm:$0xff]  }
  0x76   :  { %2384 = vmatprep.subr.bf16.mxu1 %v7988_v41  ;;  %v8066_v40 = vld [vmem:[#allocation2 + $0x704] ss:$28 sps:$4 sm:$0xff]   ;;  %v108_v41 = vld [vmem:[%s9539_s0 + $0x28] sm:$0xff] }
  0x78   :  { %2342 = vmatpush2.bf16.msra.mxu0 %v7990_v42  ;;  %v115_v42 = vld [vmem:[%s9539_s0 + $0x60] sm:$0xff] }
  0x79   :  { %2385 = vmatpush2.bf16.msra.mxu1 %v7991_v43  ;;  %2343 = vmatprep.subr.bf16.mxu0 %v7992_v44  ;;  %v8069_v43 = vld [vmem:[#allocation2 + $0xc] ss:$28 sps:$4 sm:$0xff]   ;;  %v9275_v44 = vpack.c.bf16 %v115_v42, %v108_v41  ;;  %v8144_v41 = vld [vmem:[#allocation2 + $0x7b4] ss:$28 sps:$4 sm:$0xff]   ;;  %v8139_v42 = vld [vmem:[#allocation2 + $0x4a0] ss:$28 sps:$4 sm:$0xff]  }
  0x7a   :  { %2386 = vmatprep.subr.bf16.mxu1 %v7994_v45  ;;  %v8064_v45 = vld [vmem:[#allocation2 + $0x700] ss:$28 sps:$4 sm:$0xff]  }
  0x7c   :  { %2344 = vmatpush2.bf16.msra.mxu0 %v7996_v47  ;;  %v8072_v47 = vld [vmem:[#allocation2 + $0xa4c] ss:$28 sps:$4 sm:$0xff]  }
  0x7d   :  { %2387 = vmatpush2.bf16.msra.mxu1 %v7997_v48  ;;  %2345 = vmatprep.subr.bf16.mxu0 %v7998_v53  ;;  %v8075_v48 = vld [vmem:[#allocation2 + $0x354] ss:$28 sps:$4 sm:$0xff]   ;;  %v8081_v53 = vld [vmem:[#allocation2 + $0x31c] ss:$28 sps:$4 sm:$0xff]  }
  0x7e   :  { %2388 = vmatprep.subr.bf16.mxu1 %v8000_v54  ;;  %v8076_v54 = vld [vmem:[#allocation2 + $0xa10] ss:$28 sps:$4 sm:$0xff]  }
  0x80   :  { %2346 = vmatpush2.bf16.msra.mxu0 %v8002_v56  ;;  %v8079_v56 = vld [vmem:[#allocation2 + $0x318] ss:$28 sps:$4 sm:$0xff]  }
  0x81   :  { %2389 = vmatpush2.bf16.msra.mxu1 %v8003_v57  ;;  %2347 = vmatprep.subr.bf16.mxu0 %v8004_v58  ;;  %v8084_v57 = vld [vmem:[#allocation2 + $0x9dc] ss:$28 sps:$4 sm:$0xff]   ;;  %v8087_v58 = vld [vmem:[#allocation2 + $0x2e4] ss:$28 sps:$4 sm:$0xff]  }
  0x82   :  { %2390 = vmatprep.subr.bf16.mxu1 %v8006_v59  ;;  %v8082_v59 = vld [vmem:[#allocation2 + $0x9d8] ss:$28 sps:$4 sm:$0xff]  }
  0x84   :  { %2348 = vmatpush2.bf16.msra.mxu0 %v8008_v60  ;;  %v8085_v60 = vld [vmem:[#allocation2 + $0x2e0] ss:$28 sps:$4 sm:$0xff]  }
  0x85   :  { %2391 = vmatpush2.bf16.msra.mxu1 %v8009_v61  ;;  %2349 = vmatprep.subr.bf16.mxu0 %v8010_v62  ;;  %v8090_v61 = vld [vmem:[#allocation2 + $0x9a4] ss:$28 sps:$4 sm:$0xff]   ;;  %v8093_v62 = vld [vmem:[#allocation2 + $0x2ac] ss:$28 sps:$4 sm:$0xff]  }
  0x86   :  { %2392 = vmatprep.subr.bf16.mxu1 %v8012_v63  ;;  %v8088_v63 = vld [vmem:[#allocation2 + $0x9a0] ss:$28 sps:$4 sm:$0xff]  }
  0x88   :  { %2350 = vmatpush2.bf16.msra.mxu0 %v8014_v0  ;;  %v8091_v0 = vld [vmem:[#allocation2 + $0x2a8] ss:$28 sps:$4 sm:$0xff]  }
  0x89   :  { %2393 = vmatpush2.bf16.msra.mxu1 %v8015_v1  ;;  %2351 = vmatprep.subr.bf16.mxu0 %v8016_v2  ;;  %v8096_v1 = vld [vmem:[#allocation2 + $0x96c] ss:$28 sps:$4 sm:$0xff]   ;;  %v8099_v2 = vld [vmem:[#allocation2 + $0x274] ss:$28 sps:$4 sm:$0xff]  }
  0x8a   :  { %2394 = vmatprep.subr.bf16.mxu1 %v8018_v3  ;;  %v8094_v3 = vld [vmem:[#allocation2 + $0x968] ss:$28 sps:$4 sm:$0xff]  }
  0x8c   :  { %2352 = vmatpush2.bf16.msra.mxu0 %v8020_v4  ;;  %v8097_v4 = vld [vmem:[#allocation2 + $0x270] ss:$28 sps:$4 sm:$0xff]  }
  0x8d   :  { %2395 = vmatpush2.bf16.msra.mxu1 %v8021_v5  ;;  %2407 = vmatprep.subr.bf16.mxu0 %v8024_v8  ;;  %v8102_v5 = vld [vmem:[#allocation2 + $0x934] ss:$28 sps:$4 sm:$0xff]  }
  0x8e   :  { %2493 = vmatprep.subr.bf16.mxu1 %v8027_v11  ;;  %v8103_v8 = vld [vmem:[#allocation2 + $0x238] ss:$28 sps:$4 sm:$0xff]  }
  0x8f   :  { %2354 = vmatmul.mubr.bf16.vlgmr.msra.gmra.mxu0 %v9262_v12  ;;  %v8106_v11 = vld [vmem:[#allocation2 + $0x8f8] ss:$28 sps:$4 sm:$0xff]  }
  0x90   :  { %2397 = vmatmul.mubr.bf16.vlgmr.msra.gmra.mxu1 %v9264_v15  ;;  %2408 = vmatpush1.bf16.msra.mxu0 %v8022_v13  ;;  %v8109_v13 = vld [vmem:[#allocation2 + $0x200] ss:$28 sps:$4 sm:$0xff]  }
  0x91   :  { %2494 = vmatpush1.bf16.msra.mxu1 %v8025_v14  ;;  %2409 = vmatprep.subr.bf16.mxu0 %v8030_v16  ;;  %v8114_v14 = vld [vmem:[#allocation2 + $0x8c4] ss:$28 sps:$4 sm:$0xff]   ;;  %v8117_v16 = vld [vmem:[#allocation2 + $0x1cc] ss:$28 sps:$4 sm:$0xff]  }
  0x92   :  { %2495 = vmatprep.subr.bf16.mxu1 %v8033_v17  ;;  %2525 = vmatprep.mubr.bf16.mxu1 %v9238_v50  ;;  %v8112_v17 = vld [vmem:[#allocation2 + $0x8c0] ss:$28 sps:$4 sm:$0xff]  }
  0x93   :  { %2439 = vmatprep.mubr.bf16.mxu0 %v9275_v44 }
  0x94   :  { %2410 = vmatpush1.bf16.msra.mxu0 %v8028_v18  ;;  %v8115_v18 = vld [vmem:[#allocation2 + $0x1c8] ss:$28 sps:$4 sm:$0xff]  }
  0x95   :  { %2496 = vmatpush1.bf16.msra.mxu1 %v8031_v19  ;;  %2411 = vmatprep.subr.bf16.mxu0 %v8036_v20  ;;  %v107_v19 = vld [vmem:[%s9539_s0 + $0x20] sm:$0xff]  ;;  %v114_v20 = vld [vmem:[%s9539_s0 + $0x58] sm:$0xff] }
  0x96   :  { %2497 = vmatprep.subr.bf16.mxu1 %v8039_v21  ;;  %v8120_v21 = vld [vmem:[#allocation2 + $0xa84] ss:$28 sps:$4 sm:$0xff]  }
  0x98   :  { %2412 = vmatpush1.bf16.msra.mxu0 %v8034_v22  ;;  %v8123_v22 = vld [vmem:[#allocation2 + $0x894] ss:$28 sps:$4 sm:$0xff]  }
  0x99   :  { %2498 = vmatpush1.bf16.msra.mxu1 %v8037_v23  ;;  %2413 = vmatprep.subr.bf16.mxu0 %v8042_v24  ;;  %v9284_v23 = vpack.c.bf16 %v114_v20, %v107_v19  ;;  %v8118_v24 = vld [vmem:[#allocation2 + $0xa80] ss:$28 sps:$4 sm:$0xff]   ;;  %v8193_v19 = vld [vmem:[#allocation2 + $0x628] ss:$28 sps:$4 sm:$0xff]   ;;  %v8196_v20 = vld [vmem:[#allocation2 + $0x938] ss:$28 sps:$4 sm:$0xff]  }
  0x9a   :  { %2499 = vmatprep.subr.bf16.mxu1 %v8045_v25  ;;  %v8121_v25 = vld [vmem:[#allocation2 + $0x890] ss:$28 sps:$4 sm:$0xff]  }
  0x9c   :  { %2414 = vmatpush1.bf16.msra.mxu0 %v8040_v26  ;;  %v8126_v26 = vld [vmem:[#allocation2 + $0x85c] ss:$28 sps:$4 sm:$0xff]  }
  0x9d   :  { %2500 = vmatpush1.bf16.msra.mxu1 %v8043_v27  ;;  %2415 = vmatprep.subr.bf16.mxu0 %v8048_v28  ;;  %v8129_v27 = vld [vmem:[#allocation2 + $0x514] ss:$28 sps:$4 sm:$0xff]  }
  0x9e   :  { %2501 = vmatprep.subr.bf16.mxu1 %v8051_v29  ;;  %v8124_v28 = vld [vmem:[#allocation2 + $0x858] ss:$28 sps:$4 sm:$0xff]  }
  0x9f   :  { %v109_v29 = vld [vmem:[%s9539_s0 + $0x30] sm:$0xff] }
  0xa0   :  { %2416 = vmatpush1.bf16.msra.mxu0 %v8046_v30  ;;  %v116_v30 = vld [vmem:[%s9539_s0 + $0x68] sm:$0xff] }
  0xa1   :  { %2502 = vmatpush1.bf16.msra.mxu1 %v8049_v31  ;;  %2417 = vmatprep.subr.bf16.mxu0 %v8054_v32  ;;  %v9171_v31 = vmov 0   ;;  %v8132_v32 = vld [vmem:[#allocation2 + $0x824] ss:$28 sps:$4 sm:$0xff]  }
  0xa2   :  { %2503 = vmatprep.subr.bf16.mxu1 %v8057_v33  ;;  %v9296_v33 = vpack.c.bf16 %v116_v30, %v109_v29  ;;  %v8208_v29 = vld [vmem:[#allocation2 + $0x8c8] ss:$28 sps:$4 sm:$0xff]  }
  0xa3   :  { %v8213_v30 = vld [vmem:[#allocation2 + $0x584] ss:$28 sps:$4 sm:$0xff]  }
  0xa4   :  { %2418 = vmatpush1.bf16.msra.mxu0 %v8052_v34  ;;  %v8127_v34 = vld [vmem:[#allocation2 + $0x510] ss:$28 sps:$4 sm:$0xff]  }
  0xa5   :  { %2504 = vmatpush1.bf16.msra.mxu1 %v8055_v35  ;;  %2419 = vmatprep.subr.bf16.mxu0 %v8060_v36  ;;  %v8130_v35 = vld [vmem:[#allocation2 + $0x820] ss:$28 sps:$4 sm:$0xff]  }
  0xa6   :  { %2505 = vmatprep.subr.bf16.mxu1 %v8063_v37  ;;  %v8135_v36 = vld [vmem:[#allocation2 + $0x4dc] ss:$28 sps:$4 sm:$0xff]   ;;  %v8138_v37 = vld [vmem:[#allocation2 + $0x7ec] ss:$28 sps:$4 sm:$0xff]  }
  0xa8   :  { %2420 = vmatpush1.bf16.msra.mxu0 %v8058_v38  ;;  %v8133_v38 = vld [vmem:[#allocation2 + $0x4d8] ss:$28 sps:$4 sm:$0xff]  }
  0xa9   :  { %2506 = vmatpush1.bf16.msra.mxu1 %v8061_v39  ;;  %2421 = vmatprep.subr.bf16.mxu0 %v8066_v40  ;;  %v8136_v39 = vld [vmem:[#allocation2 + $0x7e8] ss:$28 sps:$4 sm:$0xff]  }
  0xaa   :  { %2507 = vmatprep.subr.bf16.mxu1 %v8069_v43  ;;  %v8141_v40 = vld [vmem:[#allocation2 + $0x4a4] ss:$28 sps:$4 sm:$0xff]   ;;  %v8142_v43 = vld [vmem:[#allocation2 + $0x7b0] ss:$28 sps:$4 sm:$0xff]  }
  0xac   :  { %2422 = vmatpush1.bf16.msra.mxu0 %v8064_v45  ;;  %v8147_v45 = vld [vmem:[#allocation2 + $0x46c] ss:$28 sps:$4 sm:$0xff]  }
  0xad   :  { %2508 = vmatpush1.bf16.msra.mxu1 %v8067_v46  ;;  %2423 = vmatprep.subr.bf16.mxu0 %v8072_v47  ;;  %v8150_v46 = vld [vmem:[#allocation2 + $0x77c] ss:$28 sps:$4 sm:$0xff]   ;;  %v8145_v47 = vld [vmem:[#allocation2 + $0x468] ss:$28 sps:$4 sm:$0xff]  }
  0xae   :  { %2509 = vmatprep.subr.bf16.mxu1 %v8075_v48  ;;  %v8148_v48 = vld [vmem:[#allocation2 + $0x778] ss:$28 sps:$4 sm:$0xff]  }
  0xb0   :  { %2424 = vmatpush2.bf16.msra.mxu0 %v8070_v49  ;;  %v8153_v49 = vld [vmem:[#allocation2 + $0x434] ss:$28 sps:$4 sm:$0xff]  }
  0xb1   :  { %2510 = vmatpush2.bf16.msra.mxu1 %v8073_v51  ;;  %2425 = vmatprep.subr.bf16.mxu0 %v8078_v52  ;;  %v8156_v51 = vld [vmem:[#allocation2 + $0x744] ss:$28 sps:$4 sm:$0xff]   ;;  %v8151_v52 = vld [vmem:[#allocation2 + $0x430] ss:$28 sps:$4 sm:$0xff]  }
  0xb2   :  { %2511 = vmatprep.subr.bf16.mxu1 %v8081_v53  ;;  %v8154_v53 = vld [vmem:[#allocation2 + $0x740] ss:$28 sps:$4 sm:$0xff]  }
  0xb4   :  { %2426 = vmatpush2.bf16.msra.mxu0 %v8076_v54  ;;  %v8159_v54 = vld [vmem:[#allocation2 + $0x3fc] ss:$28 sps:$4 sm:$0xff]  }
  0xb5   :  { %2512 = vmatpush2.bf16.msra.mxu1 %v8079_v56  ;;  %2427 = vmatprep.subr.bf16.mxu0 %v8084_v57  ;;  %v8162_v56 = vld [vmem:[#allocation2 + $0x70c] ss:$28 sps:$4 sm:$0xff]   ;;  %v8157_v57 = vld [vmem:[#allocation2 + $0x3f8] ss:$28 sps:$4 sm:$0xff]  }
  0xb6   :  { %2513 = vmatprep.subr.bf16.mxu1 %v8087_v58  ;;  %v8160_v58 = vld [vmem:[#allocation2 + $0x708] ss:$28 sps:$4 sm:$0xff]  }
  0xb8   :  { %2428 = vmatpush2.bf16.msra.mxu0 %v8082_v59  ;;  %v8165_v59 = vld [vmem:[#allocation2 + $0x3c4] ss:$28 sps:$4 sm:$0xff]  }
  0xb9   :  { %2514 = vmatpush2.bf16.msra.mxu1 %v8085_v60  ;;  %2429 = vmatprep.subr.bf16.mxu0 %v8090_v61  ;;  %v8168_v60 = vld [vmem:[#allocation2 + $0xa54] ss:$28 sps:$4 sm:$0xff]   ;;  %v8163_v61 = vld [vmem:[#allocation2 + $0x3c0] ss:$28 sps:$4 sm:$0xff]  }
  0xba   :  { %2515 = vmatprep.subr.bf16.mxu1 %v8093_v62  ;;  %v8166_v62 = vld [vmem:[#allocation2 + $0xa50] ss:$28 sps:$4 sm:$0xff]  }
  0xbc   :  { %2430 = vmatpush2.bf16.msra.mxu0 %v8088_v63  ;;  %v8171_v63 = vld [vmem:[#allocation2 + $0x38c] ss:$28 sps:$4 sm:$0xff]  }
  0xbd   :  { %2516 = vmatpush2.bf16.msra.mxu1 %v8091_v0  ;;  %2431 = vmatprep.subr.bf16.mxu0 %v8096_v1  ;;  %v8174_v0 = vld [vmem:[#allocation2 + $0xa1c] ss:$28 sps:$4 sm:$0xff]   ;;  %v8169_v1 = vld [vmem:[#allocation2 + $0x388] ss:$28 sps:$4 sm:$0xff]  }
  0xbe   :  { %2517 = vmatprep.subr.bf16.mxu1 %v8099_v2  ;;  %v8172_v2 = vld [vmem:[#allocation2 + $0xa18] ss:$28 sps:$4 sm:$0xff]  }
  0xc0   :  { %2432 = vmatpush2.bf16.msra.mxu0 %v8094_v3  ;;  %v8177_v3 = vld [vmem:[#allocation2 + $0x6d4] ss:$28 sps:$4 sm:$0xff]  }
  0xc1   :  { %2518 = vmatpush2.bf16.msra.mxu1 %v8097_v4  ;;  %2433 = vmatprep.subr.bf16.mxu0 %v8102_v5  ;;  %v8180_v4 = vld [vmem:[#allocation2 + $0x9e4] ss:$28 sps:$4 sm:$0xff]   ;;  %v8175_v5 = vld [vmem:[#allocation2 + $0x6d0] ss:$28 sps:$4 sm:$0xff]  }
  0xc2   :  { %2519 = vmatprep.subr.bf16.mxu1 %v8105_v6  ;;  %v8178_v6 = vld [vmem:[#allocation2 + $0x9e0] ss:$28 sps:$4 sm:$0xff]  }
  0xc4   :  { %2434 = vmatpush2.bf16.msra.mxu0 %v8100_v7  ;;  %v8183_v7 = vld [vmem:[#allocation2 + $0x69c] ss:$28 sps:$4 sm:$0xff]  }
  0xc5   :  { %2520 = vmatpush2.bf16.msra.mxu1 %v8103_v8  ;;  %2435 = vmatprep.subr.bf16.mxu0 %v8108_v9  ;;  %v8186_v8 = vld [vmem:[#allocation2 + $0x9ac] ss:$28 sps:$4 sm:$0xff]   ;;  %v8181_v9 = vld [vmem:[#allocation2 + $0x698] ss:$28 sps:$4 sm:$0xff]  }
  0xc6   :  { %2521 = vmatprep.subr.bf16.mxu1 %v8111_v10  ;;  %v8184_v10 = vld [vmem:[#allocation2 + $0x9a8] ss:$28 sps:$4 sm:$0xff]  }
  0xc8   :  { %2436 = vmatpush2.bf16.msra.mxu0 %v8106_v11  ;;  %v8189_v11 = vld [vmem:[#allocation2 + $0x664] ss:$28 sps:$4 sm:$0xff]  }
  0xc9   :  { %2522 = vmatpush2.bf16.msra.mxu1 %v8109_v13  ;;  %2437 = vmatprep.subr.bf16.mxu0 %v8114_v14  ;;  %v8192_v13 = vld [vmem:[#allocation2 + $0x974] ss:$28 sps:$4 sm:$0xff]   ;;  %v8187_v14 = vld [vmem:[#allocation2 + $0x660] ss:$28 sps:$4 sm:$0xff]  }
  0xca   :  { %2523 = vmatprep.subr.bf16.mxu1 %v8117_v16  ;;  %v8190_v16 = vld [vmem:[#allocation2 + $0x970] ss:$28 sps:$4 sm:$0xff]  }
  0xcc   :  { %2438 = vmatpush2.bf16.msra.mxu0 %v8112_v17  ;;  %v8195_v17 = vld [vmem:[#allocation2 + $0x62c] ss:$28 sps:$4 sm:$0xff]  }
  0xcd   :  { %2524 = vmatpush2.bf16.msra.mxu1 %v8115_v18  ;;  %2464 = vmatprep.subr.bf16.mxu0 %v8120_v21  ;;  %v8198_v18 = vld [vmem:[#allocation2 + $0x93c] ss:$28 sps:$4 sm:$0xff]   ;;  %v8201_v21 = vld [vmem:[#allocation2 + $0x5f4] ss:$28 sps:$4 sm:$0xff]  }
  0xce   :  { %2579 = vmatprep.subr.bf16.mxu1 %v8123_v22  ;;  %v8204_v22 = vld [vmem:[#allocation2 + $0x904] ss:$28 sps:$4 sm:$0xff]  }
  0xcf   :  { %2440 = vmatmul.mubr.bf16.vlgmr.msra.gmra.mxu0 %v9284_v23 }
  0xd0   :  { %2526 = vmatmul.mubr.bf16.vlgmr.msra.gmra.mxu1 %v9262_v12  ;;  %2465 = vmatpush1.bf16.msra.mxu0 %v8118_v24  ;;  %v8199_v24 = vld [vmem:[#allocation2 + $0x5f0] ss:$28 sps:$4 sm:$0xff]  }
  0xd1   :  { %2580 = vmatpush1.bf16.msra.mxu1 %v8121_v25  ;;  %2482 = vmatprep.mubr.bf16.mxu0 %v9171_v31  ;;  %v8202_v25 = vld [vmem:[#allocation2 + $0x900] ss:$28 sps:$4 sm:$0xff]  }
  0xd2   :  { %2581 = vmatprep.subr.bf16.mxu1 %v8126_v26  ;;  %2536 = vmatprep.subr.bf16.mxu0 %v8129_v27  ;;  %v8207_v26 = vld [vmem:[#allocation2 + $0x5bc] ss:$28 sps:$4 sm:$0xff]   ;;  %v8210_v27 = vld [vmem:[#allocation2 + $0x8cc] ss:$28 sps:$4 sm:$0xff]  }
  0xd3   :  { %2611 = vmatprep.mubr.bf16.mxu1 %v9275_v44 }
  0xd5   :  { %2582 = vmatpush1.bf16.msra.mxu1 %v8124_v28  ;;  %v8205_v28 = vld [vmem:[#allocation2 + $0x5b8] ss:$28 sps:$4 sm:$0xff]  }
  0xd6   :  { %2583 = vmatprep.subr.bf16.mxu1 %v8132_v32  ;;  %v8216_v32 = vld [vmem:[#allocation2 + $0x51c] ss:$28 sps:$4 sm:$0xff]  }
  0xd7   :  { %7196 = vmatmul.mubr.msk.bf16.vlgmr.msra.gmra.mxu0 %vm2317_vm0, %v9296_v33 }
  0xd8   :  { %2537 = vmatpush1.bf16.msra.mxu0 %v8127_v34  ;;  %2568 = vmatprep.mubr.bf16.mxu0 %v9246_v55  ;;  %v8211_v34 = vld [vmem:[#allocation2 + $0x580] ss:$28 sps:$4 sm:$0xff]  }
  0xd9   :  { %2584 = vmatpush1.bf16.msra.mxu1 %v8130_v35  ;;  %2538 = vmatprep.subr.bf16.mxu0 %v8135_v36  ;;  %v8214_v35 = vld [vmem:[#allocation2 + $0x518] ss:$28 sps:$4 sm:$0xff]   ;;  %v8219_v36 = vld [vmem:[#allocation2 + $0x54c] ss:$28 sps:$4 sm:$0xff]  }
  0xda   :  { %2585 = vmatprep.subr.bf16.mxu1 %v8138_v37  ;;  %v8222_v37 = vld [vmem:[#allocation2 + $0x4e4] ss:$28 sps:$4 sm:$0xff]  }
  0xdc   :  { %2539 = vmatpush1.bf16.msra.mxu0 %v8133_v38  ;;  %v8217_v38 = vld [vmem:[#allocation2 + $0x548] ss:$28 sps:$4 sm:$0xff]  }
  0xdd   :  { %2586 = vmatpush1.bf16.msra.mxu1 %v8136_v39  ;;  %2540 = vmatprep.subr.bf16.mxu0 %v8141_v40  ;;  %v8220_v39 = vld [vmem:[#allocation2 + $0x4e0] ss:$28 sps:$4 sm:$0xff]   ;;  %v8225_v40 = vld [vmem:[#allocation2 + $0xa8c] ss:$28 sps:$4 sm:$0xff]  }
  0xde   :  { %2587 = vmatprep.subr.bf16.mxu1 %v8144_v41  ;;  %v8228_v41 = vld [vmem:[#allocation2 + $0x4ac] ss:$28 sps:$4 sm:$0xff]  }
  0xe0   :  { %2541 = vmatpush1.bf16.msra.mxu0 %v8139_v42  ;;  %v8223_v42 = vld [vmem:[#allocation2 + $0xa88] ss:$28 sps:$4 sm:$0xff]  }
  0xe1   :  { %2588 = vmatpush1.bf16.msra.mxu1 %v8142_v43  ;;  %2542 = vmatprep.subr.bf16.mxu0 %v8147_v45  ;;  %v8226_v43 = vld [vmem:[#allocation2 + $0x4a8] ss:$28 sps:$4 sm:$0xff]   ;;  %v8231_v45 = vld [vmem:[#allocation2 + $0x474] ss:$28 sps:$4 sm:$0xff]  }
  0xe2   :  { %2589 = vmatprep.subr.bf16.mxu1 %v8150_v46  ;;  %v8234_v46 = vld [vmem:[#allocation2 + $0x19c] ss:$28 sps:$4 sm:$0xff]  }
  0xe4   :  { %2543 = vmatpush1.bf16.msra.mxu0 %v8145_v47  ;;  %v8229_v47 = vld [vmem:[#allocation2 + $0x470] ss:$28 sps:$4 sm:$0xff]  }
  0xe5   :  { %2590 = vmatpush1.bf16.msra.mxu1 %v8148_v48  ;;  %2544 = vmatprep.subr.bf16.mxu0 %v8153_v49  ;;  %v8237_v48 = vld [vmem:[#allocation2 + $0x43c] ss:$28 sps:$4 sm:$0xff]  }
  0xe6   :  { %2591 = vmatprep.subr.bf16.mxu1 %v8156_v51  ;;  %v8232_v49 = vld [vmem:[#allocation2 + $0x198] ss:$28 sps:$4 sm:$0xff]  }
  0xe7   :  { %v8235_v51 = vld [vmem:[#allocation2 + $0x438] ss:$28 sps:$4 sm:$0xff]  }
  0xe8   :  { %2545 = vmatpush1.bf16.msra.mxu0 %v8151_v52  ;;  %v8240_v52 = vld [vmem:[#allocation2 + $0x164] ss:$28 sps:$4 sm:$0xff]  }
  0xe9   :  { %2592 = vmatpush1.bf16.msra.mxu1 %v8154_v53  ;;  %2546 = vmatprep.subr.bf16.mxu0 %v8159_v54  ;;  %v8243_v53 = vld [vmem:[#allocation2 + $0x404] ss:$28 sps:$4 sm:$0xff]  }
  0xea   :  { %2593 = vmatprep.subr.bf16.mxu1 %v8162_v56  ;;  %v8238_v54 = vld [vmem:[#allocation2 + $0x160] ss:$28 sps:$4 sm:$0xff]  }
  0xeb   :  { %v8241_v56 = vld [vmem:[#allocation2 + $0x400] ss:$28 sps:$4 sm:$0xff]  }
  0xec   :  { %2547 = vmatpush1.bf16.msra.mxu0 %v8157_v57  ;;  %v8246_v57 = vld [vmem:[#allocation2 + $0x12c] ss:$28 sps:$4 sm:$0xff]  }
  0xed   :  { %2594 = vmatpush1.bf16.msra.mxu1 %v8160_v58  ;;  %2548 = vmatprep.subr.bf16.mxu0 %v8165_v59  ;;  %v8249_v58 = vld [vmem:[#allocation2 + $0x3cc] ss:$28 sps:$4 sm:$0xff]  }
  0xee   :  { %2595 = vmatprep.subr.bf16.mxu1 %v8168_v60  ;;  %v8244_v59 = vld [vmem:[#allocation2 + $0x128] ss:$28 sps:$4 sm:$0xff]  }
  0xef   :  { %v8247_v60 = vld [vmem:[#allocation2 + $0x3c8] ss:$28 sps:$4 sm:$0xff]  }
  0xf0   :  { %2549 = vmatpush1.bf16.msra.mxu0 %v8163_v61  ;;  %v8252_v61 = vld [vmem:[#allocation2 + $0xf4] ss:$28 sps:$4 sm:$0xff]  }
  0xf1   :  { %2596 = vmatpush2.bf16.msra.mxu1 %v8166_v62  ;;  %2550 = vmatprep.subr.bf16.mxu0 %v8171_v63  ;;  %v8255_v62 = vld [vmem:[#allocation2 + $0x394] ss:$28 sps:$4 sm:$0xff]  }
  0xf2   :  { %2597 = vmatprep.subr.bf16.mxu1 %v8174_v0  ;;  %v8250_v63 = vld [vmem:[#allocation2 + $0xf0] ss:$28 sps:$4 sm:$0xff]  }
  0xf3   :  { %v8253_v0 = vld [vmem:[#allocation2 + $0x390] ss:$28 sps:$4 sm:$0xff]  }
  0xf4   :  { %2551 = vmatpush1.bf16.msra.mxu0 %v8169_v1  ;;  %v8258_v1 = vld [vmem:[#allocation2 + $0xbc] ss:$28 sps:$4 sm:$0xff]  }
  0xf5   :  { %2598 = vmatpush2.bf16.msra.mxu1 %v8172_v2  ;;  %2552 = vmatprep.subr.bf16.mxu0 %v8177_v3  ;;  %v8261_v2 = vld [vmem:[#allocation2 + $0x6dc] ss:$28 sps:$4 sm:$0xff]  }
  0xf6   :  { %2599 = vmatprep.subr.bf16.mxu1 %v8180_v4  ;;  %v8256_v3 = vld [vmem:[#allocation2 + $0xb8] ss:$28 sps:$4 sm:$0xff]  }
  0xf7   :  { %v8259_v4 = vld [vmem:[#allocation2 + $0x6d8] ss:$28 sps:$4 sm:$0xff]  }
  0xf8   :  { %2553 = vmatpush2.bf16.msra.mxu0 %v8175_v5  ;;  %v8264_v5 = vld [vmem:[#allocation2 + $0x84] ss:$28 sps:$4 sm:$0xff]  }
  0xf9   :  { %2600 = vmatpush2.bf16.msra.mxu1 %v8178_v6  ;;  %2554 = vmatprep.subr.bf16.mxu0 %v8183_v7  ;;  %v8267_v6 = vld [vmem:[#allocation2 + $0x6a4] ss:$28 sps:$4 sm:$0xff]  }
  0xfa   :  { %2601 = vmatprep.subr.bf16.mxu1 %v8186_v8  ;;  %v8262_v7 = vld [vmem:[#allocation2 + $0x80] ss:$28 sps:$4 sm:$0xff]  }
  0xfb   :  { %v8265_v8 = vld [vmem:[#allocation2 + $0x6a0] ss:$28 sps:$4 sm:$0xff]  }
  0xfc   :  { %2555 = vmatpush2.bf16.msra.mxu0 %v8181_v9  ;;  %v8270_v9 = vld [vmem:[#allocation2 + $0x4c] ss:$28 sps:$4 sm:$0xff]  }
  0xfd   :  { %2602 = vmatpush2.bf16.msra.mxu1 %v8184_v10  ;;  %2556 = vmatprep.subr.bf16.mxu0 %v8189_v11  ;;  %v8273_v10 = vld [vmem:[#allocation2 + $0x66c] ss:$28 sps:$4 sm:$0xff]  }
  0xfe   :  { %2603 = vmatprep.subr.bf16.mxu1 %v8192_v13  ;;  %v8268_v11 = vld [vmem:[#allocation2 + $0x48] ss:$28 sps:$4 sm:$0xff]  }
  0xff   :  { %v8271_v13 = vld [vmem:[#allocation2 + $0x668] ss:$28 sps:$4 sm:$0xff]  }
 0x100   :  { %2557 = vmatpush2.bf16.msra.mxu0 %v8187_v14  ;;  %v8276_v14 = vld [vmem:[#allocation2 + $0x14] ss:$28 sps:$4 sm:$0xff]  }
 0x101   :  { %2604 = vmatpush2.bf16.msra.mxu1 %v8190_v16  ;;  %2558 = vmatprep.subr.bf16.mxu0 %v8195_v17  ;;  %v8279_v16 = vld [vmem:[#allocation2 + $0x634] ss:$28 sps:$4 sm:$0xff]  }
 0x102   :  { %2605 = vmatprep.subr.bf16.mxu1 %v8198_v18  ;;  %v8274_v17 = vld [vmem:[#allocation2 + $0x10] ss:$28 sps:$4 sm:$0xff]  }
 0x103   :  { %v8277_v18 = vld [vmem:[#allocation2 + $0x630] ss:$28 sps:$4 sm:$0xff]  }
 0x104   :  { %2559 = vmatpush2.bf16.msra.mxu0 %v8193_v19  ;;  %v8282_v19 = vld [vmem:[#allocation2 + $0x35c] ss:$28 sps:$4 sm:$0xff]  }
 0x105   :  { %2606 = vmatpush2.bf16.msra.mxu1 %v8196_v20  ;;  %2560 = vmatprep.subr.bf16.mxu0 %v8201_v21  ;;  %v8285_v20 = vld [vmem:[#allocation2 + $0x5fc] ss:$28 sps:$4 sm:$0xff]  }
 0x106   :  { %2607 = vmatprep.subr.bf16.mxu1 %v8204_v22  ;;  %v8280_v21 = vld [vmem:[#allocation2 + $0x358] ss:$28 sps:$4 sm:$0xff]  }
 0x107   :  { %v8283_v22 = vld [vmem:[#allocation2 + $0x5f8] ss:$28 sps:$4 sm:$0xff]  }
 0x108   :  { %2561 = vmatpush2.bf16.msra.mxu0 %v8199_v24  ;;  %v8288_v24 = vld [vmem:[#allocation2 + $0x324] ss:$28 sps:$4 sm:$0xff]  }
 0x109   :  { %2608 = vmatpush2.bf16.msra.mxu1 %v8202_v25  ;;  %2562 = vmatprep.subr.bf16.mxu0 %v8207_v26  ;;  %v8291_v25 = vld [vmem:[#allocation2 + $0x5c4] ss:$28 sps:$4 sm:$0xff]  }
 0x10a   :  { %2609 = vmatprep.subr.bf16.mxu1 %v8210_v27  ;;  %v8286_v26 = vld [vmem:[#allocation2 + $0x320] ss:$28 sps:$4 sm:$0xff]  }
 0x10b   :  { %v8289_v27 = vld [vmem:[#allocation2 + $0x5c0] ss:$28 sps:$4 sm:$0xff]  }
 0x10c   :  { %2563 = vmatpush2.bf16.msra.mxu0 %v8205_v28  ;;  %v8294_v28 = vld [vmem:[#allocation2 + $0x2ec] ss:$28 sps:$4 sm:$0xff]  }
 0x10d   :  { %2610 = vmatpush2.bf16.msra.mxu1 %v8208_v29  ;;  %2564 = vmatprep.subr.bf16.mxu0 %v8213_v30  ;;  %v518_v29 = vlaneseq  ;;  %v8297_v30 = vld [vmem:[#allocation2 + $0x58c] ss:$28 sps:$4 sm:$0xff]  }
 0x10e   :  { %2708 = vmatprep.subr.bf16.mxu1 %v8216_v32  ;;  %v8292_v32 = vld [vmem:[#allocation2 + $0x2e8] ss:$28 sps:$4 sm:$0xff]  }
 0x110   :  { %2612 = vmatmul.mubr.bf16.vlgmr.msra.gmra.mxu1 %v9284_v23  ;;  %2565 = vmatpush2.bf16.msra.mxu0 %v8211_v34  ;;  %v8295_v34 = vld [vmem:[#allocation2 + $0x588] ss:$28 sps:$4 sm:$0xff]  }
 0x111   :  { %2709 = vmatpush1.bf16.msra.mxu1 %v8214_v35  ;;  %2566 = vmatprep.subr.bf16.mxu0 %v8219_v36  ;;  %v9308_v35 = vshrl.u32 %v518_v29, 7  ;;  %v8300_v36 = vld [vmem:[#allocation2 + $0x2b4] ss:$28 sps:$4 sm:$0xff]   ;;  %v8357_v29 = vld [vmem:[#allocation2 + $0x520] ss:$28 sps:$4 sm:$0xff]  }
 0x112   :  { %2710 = vmatprep.subr.bf16.mxu1 %v8222_v37  ;;  %2740 = vmatprep.mubr.bf16.mxu1 %v9246_v55  ;;  %v8303_v37 = vld [vmem:[#allocation2 + $0x554] ss:$28 sps:$4 sm:$0xff]  }
 0x114   :  { %2567 = vmatpush2.bf16.msra.mxu0 %v8217_v38  ;;  %v8298_v38 = vld [vmem:[#allocation2 + $0x2b0] ss:$28 sps:$4 sm:$0xff]  }
 0x115   :  { %2711 = vmatpush1.bf16.msra.mxu1 %v8220_v39  ;;  %2636 = vmatprep.subr.bf16.mxu0 %v8225_v40  ;;  %v8301_v39 = vld [vmem:[#allocation2 + $0x550] ss:$28 sps:$4 sm:$0xff]   ;;  %v8306_v40 = vld [vmem:[#allocation2 + $0x27c] ss:$28 sps:$4 sm:$0xff]  }
 0x116   :  { %2712 = vmatprep.subr.bf16.mxu1 %v8228_v41  ;;  %v9310_v41 = vld [vmem:[#allocation4] sm:$0xff] }
 0x117   :  { %2569 = vmatmul.mubr.bf16.vlgmr.msra.gmra.mxu0 %v9264_v15 }
 0x118   :  { %2637 = vmatpush1.bf16.msra.mxu0 %v8223_v42  ;;  %2654 = vmatprep.mubr.bf16.mxu0 %v9171_v31  ;;  %v520_v42 = vsub.s32 0, %v9308_v35 }
 0x119   :  { %2713 = vmatpush1.bf16.msra.mxu1 %v8226_v43  ;;  %2665 = vmatprep.subr.bf16.mxu0 %v8234_v46  ;;  %v8312_v43 = vld [vmem:[#allocation2 + $0xa94] ss:$28 sps:$4 sm:$0xff]  }
 0x11a   :  { %2714 = vmatprep.subr.bf16.mxu1 %v8231_v45  ;;  %v8304_v45 = vld [vmem:[#allocation2 + $0x278] ss:$28 sps:$4 sm:$0xff]   ;;  %v9316_v46 = vrot.slane %v9310_v41, %v520_v42 }
 0x11d   :  { %2715 = vmatpush1.bf16.msra.mxu1 %v8229_v47  ;;  %v8310_v47 = vld [vmem:[#allocation2 + $0xa90] ss:$28 sps:$4 sm:$0xff]  }
 0x11e   :  { %2716 = vmatprep.subr.bf16.mxu1 %v8237_v48  ;;  %v8309_v48 = vld [vmem:[#allocation2 + $0x244] ss:$28 sps:$4 sm:$0xff]  }
 0x11f   :  { %7197 = vmatmul.mubr.msk.bf16.vlgmr.msra.gmra.mxu0 %vm2317_vm0, %v9296_v33 }
 0x120   :  { %2666 = vmatpush1.bf16.msra.mxu0 %v8232_v49  ;;  %2697 = vmatprep.mubr.bf16.mxu0 %v9238_v50  ;;  %v8316_v49 = vld [vmem:[#allocation2 + $0x360] ss:$28 sps:$4 sm:$0xff]  }
 0x121   :  { %2717 = vmatpush1.bf16.msra.mxu1 %v8235_v51  ;;  %2667 = vmatprep.subr.bf16.mxu0 %v8240_v52 }
 0x122   :  { %2718 = vmatprep.subr.bf16.mxu1 %v8243_v53 }
 0x124   :  { %2668 = vmatpush1.bf16.msra.mxu0 %v8238_v54  ;;  %v8307_v54 = vld [vmem:[#allocation2 + $0x240] ss:$28 sps:$4 sm:$0xff]  }
 0x125   :  { %2719 = vmatpush1.bf16.msra.mxu1 %v8241_v56  ;;  %2669 = vmatprep.subr.bf16.mxu0 %v8246_v57  ;;  %v8315_v56 = vld [vmem:[#allocation2 + $0x20c] ss:$28 sps:$4 sm:$0xff]  }
 0x126   :  { %2720 = vmatprep.subr.bf16.mxu1 %v8249_v58  ;;  %v8313_v58 = vld [vmem:[#allocation2 + $0x208] ss:$28 sps:$4 sm:$0xff]  }
 0x128   :  { %2670 = vmatpush1.bf16.msra.mxu0 %v8244_v59  ;;  %v8317_v59 = vld [vmem:[#allocation2 + $0x1a0] ss:$28 sps:$4 sm:$0xff]  }
 0x129   :  { %2721 = vmatpush1.bf16.msra.mxu1 %v8247_v60  ;;  %2671 = vmatprep.subr.bf16.mxu0 %v8252_v61  ;;  %v8320_v60 = vld [vmem:[#allocation2 + $0x1d4] ss:$28 sps:$4 sm:$0xff]   ;;  %v8321_v61 = vld [vmem:[#allocation2 + $0x328] ss:$28 sps:$4 sm:$0xff]  }
 0x12a   :  { %2722 = vmatprep.subr.bf16.mxu1 %v8255_v62  ;;  %v8318_v62 = vld [vmem:[#allocation2 + $0x1d0] ss:$28 sps:$4 sm:$0xff]  }
 0x12c   :  { %2672 = vmatpush1.bf16.msra.mxu0 %v8250_v63  ;;  %v8322_v63 = vld [vmem:[#allocation2 + $0x168] ss:$28 sps:$4 sm:$0xff]  }
 0x12d   :  { %2723 = vmatpush1.bf16.msra.mxu1 %v8253_v0  ;;  %2673 = vmatprep.subr.bf16.mxu0 %v8258_v1  ;;  %v8325_v0 = vld [vmem:[#allocation2 + $0x89c] ss:$28 sps:$4 sm:$0xff]   ;;  %v8326_v1 = vld [vmem:[#allocation2 + $0x2f0] ss:$28 sps:$4 sm:$0xff]  }
 0x12e   :  { %2724 = vmatprep.subr.bf16.mxu1 %v8261_v2  ;;  %v8323_v2 = vld [vmem:[#allocation2 + $0x898] ss:$28 sps:$4 sm:$0xff]  }
 0x130   :  { %2674 = vmatpush1.bf16.msra.mxu0 %v8256_v3  ;;  %v8327_v3 = vld [vmem:[#allocation2 + $0x130] ss:$28 sps:$4 sm:$0xff]  }
 0x131   :  { %2725 = vmatpush2.bf16.msra.mxu1 %v8259_v4  ;;  %2675 = vmatprep.subr.bf16.mxu0 %v8264_v5  ;;  %v8330_v4 = vld [vmem:[#allocation2 + $0x864] ss:$28 sps:$4 sm:$0xff]   ;;  %v8331_v5 = vld [vmem:[#allocation2 + $0x2b8] ss:$28 sps:$4 sm:$0xff]  }
 0x132   :  { %2726 = vmatprep.subr.bf16.mxu1 %v8267_v6  ;;  %v8328_v6 = vld [vmem:[#allocation2 + $0x860] ss:$28 sps:$4 sm:$0xff]  }
 0x134   :  { %2676 = vmatpush1.bf16.msra.mxu0 %v8262_v7  ;;  %v8332_v7 = vld [vmem:[#allocation2 + $0xf8] ss:$28 sps:$4 sm:$0xff]  }
 0x135   :  { %2727 = vmatpush2.bf16.msra.mxu1 %v8265_v8  ;;  %2677 = vmatprep.subr.bf16.mxu0 %v8270_v9  ;;  %v8335_v8 = vld [vmem:[#allocation2 + $0x82c] ss:$28 sps:$4 sm:$0xff]   ;;  %v8336_v9 = vld [vmem:[#allocation2 + $0x280] ss:$28 sps:$4 sm:$0xff]  }
 0x136   :  { %2728 = vmatprep.subr.bf16.mxu1 %v8273_v10  ;;  %v8337_v10 = vld [vmem:[#allocation2 + $0xc0] ss:$28 sps:$4 sm:$0xff]  }
 0x138   :  { %2678 = vmatpush1.bf16.msra.mxu0 %v8268_v11  ;;  %v8340_v11 = vld [vmem:[#allocation2 + $0x7f4] ss:$28 sps:$4 sm:$0xff]  }
 0x139   :  { %2729 = vmatpush2.bf16.msra.mxu1 %v8271_v13  ;;  %2679 = vmatprep.subr.bf16.mxu0 %v8276_v14  ;;  %v8341_v13 = vld [vmem:[#allocation2 + $0x248] ss:$28 sps:$4 sm:$0xff]   ;;  %v8338_v14 = vld [vmem:[#allocation2 + $0x7f0] ss:$28 sps:$4 sm:$0xff]  }
 0x13a   :  { %2730 = vmatprep.subr.bf16.mxu1 %v8279_v16  ;;  %v8342_v16 = vld [vmem:[#allocation2 + $0x88] ss:$28 sps:$4 sm:$0xff]  }
 0x13c   :  { %2680 = vmatpush1.bf16.msra.mxu0 %v8274_v17  ;;  %v8345_v17 = vld [vmem:[#allocation2 + $0x7bc] ss:$28 sps:$4 sm:$0xff]  }
 0x13d   :  { %2731 = vmatpush2.bf16.msra.mxu1 %v8277_v18  ;;  %2681 = vmatprep.subr.bf16.mxu0 %v8282_v19  ;;  %v8346_v18 = vld [vmem:[#allocation2 + $0x210] ss:$28 sps:$4 sm:$0xff]   ;;  %v8343_v19 = vld [vmem:[#allocation2 + $0x7b8] ss:$28 sps:$4 sm:$0xff]  }
 0x13e   :  { %2732 = vmatprep.subr.bf16.mxu1 %v8285_v20  ;;  %v8347_v20 = vld [vmem:[#allocation2 + $0x50] ss:$28 sps:$4 sm:$0xff]  }
 0x140   :  { %2682 = vmatpush2.bf16.msra.mxu0 %v8280_v21  ;;  %v8350_v21 = vld [vmem:[#allocation2 + $0x784] ss:$28 sps:$4 sm:$0xff]  }
 0x141   :  { %2733 = vmatpush2.bf16.msra.mxu1 %v8283_v22  ;;  %2683 = vmatprep.subr.bf16.mxu0 %v8288_v24  ;;  %v8351_v22 = vld [vmem:[#allocation2 + $0x1d8] ss:$28 sps:$4 sm:$0xff]   ;;  %v8348_v24 = vld [vmem:[#allocation2 + $0x780] ss:$28 sps:$4 sm:$0xff]  }
 0x142   :  { %2734 = vmatprep.subr.bf16.mxu1 %v8291_v25  ;;  %v8352_v25 = vld [vmem:[#allocation2 + $0x18] ss:$28 sps:$4 sm:$0xff]  }
 0x144   :  { %2684 = vmatpush2.bf16.msra.mxu0 %v8286_v26  ;;  %v8355_v26 = vld [vmem:[#allocation2 + $0x74c] ss:$28 sps:$4 sm:$0xff]  }
 0x145   :  { %2735 = vmatpush2.bf16.msra.mxu1 %v8289_v27  ;;  %2685 = vmatprep.subr.bf16.mxu0 %v8294_v28  ;;  %v8356_v27 = vld [vmem:[#allocation2 + $0x6e0] ss:$28 sps:$4 sm:$0xff]   ;;  %v8353_v28 = vld [vmem:[#allocation2 + $0x748] ss:$28 sps:$4 sm:$0xff]  }
 0x146   :  { %2736 = vmatprep.subr.bf16.mxu1 %v8297_v30  ;;  %v8360_v30 = vld [vmem:[#allocation2 + $0x714] ss:$28 sps:$4 sm:$0xff]  }
 0x148   :  { %2686 = vmatpush2.bf16.msra.mxu0 %v8292_v32  ;;  %v8361_v32 = vld [vmem:[#allocation2 + $0x6a8] ss:$28 sps:$4 sm:$0xff]  }
 0x149   :  { %2737 = vmatpush2.bf16.msra.mxu1 %v8295_v34  ;;  %2687 = vmatprep.subr.bf16.mxu0 %v8300_v36  ;;  %v8358_v34 = vld [vmem:[#allocation2 + $0x710] ss:$28 sps:$4 sm:$0xff]   ;;  %v8362_v36 = vld [vmem:[#allocation2 + $0x4e8] ss:$28 sps:$4 sm:$0xff]  }
 0x14a   :  { %2738 = vmatprep.subr.bf16.mxu1 %v8303_v37  ;;  %v8365_v37 = vld [vmem:[#allocation2 + $0xa5c] ss:$28 sps:$4 sm:$0xff]  }
 0x14c   :  { %2688 = vmatpush2.bf16.msra.mxu0 %v8298_v38  ;;  %v8366_v38 = vld [vmem:[#allocation2 + $0x670] ss:$28 sps:$4 sm:$0xff]  }
 0x14d   :  { %2739 = vmatpush2.bf16.msra.mxu1 %v8301_v39  ;;  %2689 = vmatprep.subr.bf16.mxu0 %v8306_v40  ;;  %v8363_v39 = vld [vmem:[#allocation2 + $0xa58] ss:$28 sps:$4 sm:$0xff]   ;;  %v8367_v40 = vld [vmem:[#allocation2 + $0x4b0] ss:$28 sps:$4 sm:$0xff]  }
 0x14e   :  { %2808 = vmatprep.subr.bf16.mxu1 %v8312_v43  ;;  %v8370_v43 = vld [vmem:[#allocation2 + $0xa24] ss:$28 sps:$4 sm:$0xff]  }
 0x14f   :  { %v2355_v51 = vpop.f32.mrf.mxu0 }
 0x150   :  { %2741 = vmatmul.mubr.bf16.vlgmr.msra.gmra.mxu1 %v9264_v15  ;;  %v2398_v52 = vpop.f32.mrf.mxu1  ;;  %2690 = vmatpush2.bf16.msra.mxu0 %v8304_v45  ;;  %v2356_v53 = vadd.f32 %v2355_v51, %v9316_v46  ;;  %v8371_v45 = vld [vmem:[#allocation2 + $0x638] ss:$28 sps:$4 sm:$0xff]   ;;  %v8373_v51 = vld [vmem:[#allocation2 + $0x9e8] ss:$28 sps:$4 sm:$0xff]  }
 0x151   :  { %2809 = vmatpush1.bf16.msra.mxu1 %v8310_v47  ;;  %2691 = vmatprep.subr.bf16.mxu0 %v8309_v48  ;;  %v8368_v47 = vld [vmem:[#allocation2 + $0xa20] ss:$28 sps:$4 sm:$0xff]   ;;  %v8372_v48 = vld [vmem:[#allocation2 + $0x478] ss:$28 sps:$4 sm:$0xff]  }
 0x152   :  { %2826 = vmatprep.mubr.bf16.mxu1 %v9171_v31  ;;  %v9321_v57 = vadd.f32 %v2398_v52, %v2356_v53  ;;  %7649 = vmatprep.subr.bf16.mxu1 %v8316_v49  ;;  %v8375_v49 = vld [vmem:[#allocation2 + $0x9ec] ss:$28 sps:$4 sm:$0xff]   ;;  %v8377_v52 = vld [vmem:[#allocation2 + $0x440] ss:$28 sps:$4 sm:$0xff]   ;;  %v8380_v53 = vld [vmem:[#allocation2 + $0x9b4] ss:$28 sps:$4 sm:$0xff]  }
 0x154   :  { %2692 = vmatpush2.bf16.msra.mxu0 %v8307_v54  ;;  %v8381_v54 = vld [vmem:[#allocation2 + $0x5c8] ss:$28 sps:$4 sm:$0xff]  }
 0x155   :  { %2693 = vmatprep.subr.bf16.mxu0 %v8315_v56  ;;  %v8378_v56 = vld [vmem:[#allocation2 + $0x9b0] ss:$28 sps:$4 sm:$0xff]  }
 0x158   :  { %7198 = vmatmul.mubr.msk.bf16.vlgmr.msra.gmra.mxu1 %vm2317_vm0, %v9296_v33  ;;  %2694 = vmatpush2.bf16.msra.mxu0 %v8313_v58  ;;  %v8382_v58 = vld [vmem:[#allocation2 + $0x408] ss:$28 sps:$4 sm:$0xff]  }
 0x159   :  { %7650 = vmatpush3.bf16.msra.mxu1 %v8317_v59  ;;  %2695 = vmatprep.subr.bf16.mxu0 %v8320_v60  ;;  %v8385_v59 = vld [vmem:[#allocation2 + $0x97c] ss:$28 sps:$4 sm:$0xff]   ;;  %v8386_v60 = vld [vmem:[#allocation2 + $0x590] ss:$28 sps:$4 sm:$0xff]  }
 0x15a   :  { %7651 = vmatprep.subr.bf16.mxu1 %v8321_v61  ;;  %2869 = vmatprep.mubr.bf16.mxu1 %v9238_v50  ;;  %v8333_v50 = vld [vmem:[#allocation2 + $0x828] ss:$28 sps:$4 sm:$0xff]  }
 0x15c   :  { %2696 = vmatpush2.bf16.msra.mxu0 %v8318_v62  ;;  %v8383_v62 = vld [vmem:[#allocation2 + $0x978] ss:$28 sps:$4 sm:$0xff]  }
 0x15d   :  { %7652 = vmatpush3.bf16.msra.mxu1 %v8322_v63  ;;  %2751 = vmatprep.subr.bf16.mxu0 %v8325_v0  ;;  %v8387_v63 = vld [vmem:[#allocation2 + $0x3d0] ss:$28 sps:$4 sm:$0xff]   ;;  %v2400_v0 = vpop.f32.mrf.mxu1 }
 0x15e   :  { %7653 = vmatprep.subr.bf16.mxu1 %v8326_v1  ;;  %v8390_v1 = vld [vmem:[#allocation2 + $0x944] ss:$28 sps:$4 sm:$0xff]  }
 0x15f   :  { %2698 = vmatmul.mubr.bf16.vlgmr.msra.gmra.mxu0 %v9262_v12 }
 0x160   :  { %2752 = vmatpush1.bf16.msra.mxu0 %v8323_v2  ;;  %2783 = vmatprep.mubr.bf16.mxu0 %v9275_v44  ;;  %v8391_v2 = vld [vmem:[#allocation2 + $0x558] ss:$28 sps:$4 sm:$0xff]  }
 0x161   :  { %7654 = vmatpush3.bf16.msra.mxu1 %v8327_v3  ;;  %2753 = vmatprep.subr.bf16.mxu0 %v8330_v4  ;;  %v524_v3 = vsub.s32 1, %v9308_v35 }
 0x162   :  { %7655 = vmatprep.subr.bf16.mxu1 %v8331_v5 }
 0x164   :  { %2754 = vmatpush1.bf16.msra.mxu0 %v8328_v6  ;;  %v8388_v6 = vld [vmem:[#allocation2 + $0x940] ss:$28 sps:$4 sm:$0xff]  }
 0x165   :  { %7656 = vmatpush3.bf16.msra.mxu1 %v8332_v7  ;;  %2755 = vmatprep.subr.bf16.mxu0 %v8335_v8  ;;  %v8392_v7 = vld [vmem:[#allocation2 + $0x398] ss:$28 sps:$4 sm:$0xff]   ;;  %v2402_v8 = vpop.f32.mrf.mxu1 }
 0x166   :  { %7657 = vmatprep.subr.bf16.mxu1 %v8336_v9 }
 0x168   :  { %2756 = vmatpush1.bf16.msra.mxu0 %v8333_v50  ;;  %v8395_v50 = vld [vmem:[#allocation2 + $0x90c] ss:$28 sps:$4 sm:$0xff]  }
 0x169   :  { %7658 = vmatpush3.bf16.msra.mxu1 %v8337_v10  ;;  %2757 = vmatprep.subr.bf16.mxu0 %v8340_v11  ;;  %v525_v10 = vrot.slane %v9310_v41, %v524_v3  ;;  %v9172_v41 = vmov 0.0  }
 0x16a   :  { %7659 = vmatprep.subr.bf16.mxu1 %v8341_v13 }
 0x16c   :  { %2758 = vmatpush1.bf16.msra.mxu0 %v8338_v14 }
 0x16d   :  { %7660 = vmatpush3.bf16.msra.mxu1 %v8342_v16  ;;  %2759 = vmatprep.subr.bf16.mxu0 %v8345_v17  ;;  %v8393_v16 = vld [vmem:[#allocation2 + $0x908] ss:$28 sps:$4 sm:$0xff]   ;;  %v8399_v17 = vld [vmem:[#allocation2 + $0xa98] ss:$28 sps:$4 sm:$0xff]  }
 0x16e   :  { %7661 = vmatprep.subr.bf16.mxu1 %v8346_v18  ;;  %v8398_v18 = vld [vmem:[#allocation2 + $0x8d4] ss:$28 sps:$4 sm:$0xff]  }
 0x170   :  { %2760 = vmatpush1.bf16.msra.mxu0 %v8343_v19 }
 0x171   :  { %7662 = vmatpush3.bf16.msra.mxu1 %v8347_v20  ;;  %2761 = vmatprep.subr.bf16.mxu0 %v8350_v21  ;;  %v8403_v21 = vld [vmem:[#allocation6 + $0x18c] ss:$28 sps:$4 sm:$0xff]  }
 0x172   :  { %7663 = vmatprep.subr.bf16.mxu1 %v8351_v22 }
 0x174   :  { %2762 = vmatpush1.bf16.msra.mxu0 %v8348_v24  ;;  %v8396_v24 = vld [vmem:[#allocation2 + $0x8d0] ss:$28 sps:$4 sm:$0xff]  }
 0x175   :  { %7664 = vmatpush3.bf16.msra.mxu1 %v8352_v25  ;;  %2763 = vmatprep.subr.bf16.mxu0 %v8355_v26  ;;  %v2404_v25 = vpop.f32.mrf.mxu1 }
 0x176   :  { %7671 = vmatprep.subr.bf16.mxu1 %v8356_v27  ;;  %v8400_v27 = vld [vmem:[#allocation2 + $0xa60] ss:$28 sps:$4 sm:$0xff]  }
 0x178   :  { %2870 = vmatmul.mubr.bf16.vlgmr.msra.gmra.mxu1 %v9262_v12  ;;  %2764 = vmatpush1.bf16.msra.mxu0 %v8353_v28  ;;  %v8376_v12 = vld [vmem:[#allocation2 + $0x600] ss:$28 sps:$4 sm:$0xff]  }
 0x179   :  { %7672 = vmatpush3.bf16.msra.mxu1 %v8357_v29  ;;  %2765 = vmatprep.subr.bf16.mxu0 %v8360_v30 }
 0x17a   :  { %7673 = vmatprep.subr.bf16.mxu1 %v8361_v32  ;;  %2910 = vmatprep.mubr.bf16.mxu1 %v9246_v55  ;;  %v2357_v55 = vpop.f32.mrf.mxu0 }
 0x17b   :  { %v2358_v19 = vadd.f32 %v2357_v55, %v525_v10 }
 0x17c   :  { %2766 = vmatpush1.bf16.msra.mxu0 %v8358_v34  ;;  %v2359_v61 = vpop.f32.mrf.mxu0 }
 0x17d   :  { %7674 = vmatpush3.bf16.msra.mxu1 %v8362_v36  ;;  %2767 = vmatprep.subr.bf16.mxu0 %v8365_v37  ;;  %v2360_v5 = vadd.f32 %v2359_v61, %v9316_v46  ;;  %v2401_v28 = vadd.f32 %v2400_v0, %v2358_v19  ;;  %v8401_v36 = vld [vmem:[#allocation6 + $0x188] ss:$28 sps:$4 sm:$0xff]   ;;  %v8404_v37 = vld [vmem:[#allocation2 + $0x8a0] ss:$28 sps:$4 sm:$0xff]   ;;  %v8414_v61 = vld [vmem:[#allocation2 + $0x830] ss:$28 sps:$4 sm:$0xff]  }
 0x17e   :  { %7675 = vmatprep.subr.bf16.mxu1 %v8366_v38  ;;  %v2361_v4 = vpop.f32.mrf.mxu0  ;;  %v8419_v0 = vld [vmem:[#allocation2 + $0x7f8] ss:$28 sps:$4 sm:$0xff]   ;;  %v8440_v19 = vld [vmem:[#allocation6 + $0x348] ss:$28 sps:$4 sm:$0xff]  }
 0x17f   :  { %v2403_v14 = vadd.f32 %v2402_v8, %v2360_v5  ;;  %v8425_v5 = vld [vmem:[#allocation2 + $0x948] ss:$28 sps:$4 sm:$0xff]  }
 0x180   :  { %2768 = vmatpush2.bf16.msra.mxu0 %v8363_v39  ;;  %v8405_v39 = vld [vmem:[#allocation2 + $0xa28] ss:$28 sps:$4 sm:$0xff]  }
 0x181   :  { %7676 = vmatpush3.bf16.msra.mxu1 %v8367_v40  ;;  %2769 = vmatprep.subr.bf16.mxu0 %v8370_v43  ;;  %v8429_v8 = vld [vmem:[#allocation2 + $0x788] ss:$28 sps:$4 sm:$0xff]  }
 0x182   :  { %7677 = vmatprep.subr.bf16.mxu1 %v8371_v45 }
 0x184   :  { %2770 = vmatpush2.bf16.msra.mxu0 %v8368_v47 }
 0x185   :  { %7678 = vmatpush3.bf16.msra.mxu1 %v8372_v48  ;;  %2771 = vmatprep.subr.bf16.mxu0 %v8375_v49 }
 0x186   :  { %7679 = vmatprep.subr.bf16.mxu1 %v8376_v12 }
 0x188   :  { %2772 = vmatpush2.bf16.msra.mxu0 %v8373_v51  ;;  %v8406_v51 = vld [vmem:[#allocation6 + $0x150] ss:$28 sps:$4 sm:$0xff]  }
 0x189   :  { %7680 = vmatpush3.bf16.msra.mxu1 %v8377_v52  ;;  %2773 = vmatprep.subr.bf16.mxu0 %v8380_v53  ;;  %v8409_v52 = vld [vmem:[#allocation2 + $0x868] ss:$28 sps:$4 sm:$0xff]   ;;  %v8410_v53 = vld [vmem:[#allocation2 + $0x9f0] ss:$28 sps:$4 sm:$0xff]  }
 0x18a   :  { %7681 = vmatprep.subr.bf16.mxu1 %v8381_v54 }
 0x18c   :  { %2774 = vmatpush2.bf16.msra.mxu0 %v8378_v56 }
 0x18d   :  { %7682 = vmatpush3.bf16.msra.mxu1 %v8382_v58  ;;  %2775 = vmatprep.subr.bf16.mxu0 %v8385_v59  ;;  %v8413_v58 = vld [vmem:[#allocation6 + $0x11c] ss:$28 sps:$4 sm:$0xff]  }
 0x18e   :  { %7683 = vmatprep.subr.bf16.mxu1 %v8386_v60  ;;  %v8411_v60 = vld [vmem:[#allocation6 + $0x118] ss:$28 sps:$4 sm:$0xff]  }
 0x18f   :  { %v2441_v9 = vpop.f32.mrf.mxu0 }
 0x190   :  { %2776 = vmatpush2.bf16.msra.mxu0 %v8383_v62  ;;  %v2442_v11 = vadd.f32 %v2441_v9, %v9321_v57  ;;  %v2362_v57 = vadd.f32 %v2361_v4, %v525_v10  ;;  %v8415_v62 = vld [vmem:[#allocation2 + $0x9b8] ss:$28 sps:$4 sm:$0xff]   ;;  %v8421_v4 = vld [vmem:[#allocation6 + $0xa8] ss:$28 sps:$4 sm:$0xff]   ;;  %v8430_v9 = vld [vmem:[#allocation2 + $0x910] ss:$28 sps:$4 sm:$0xff]  }
 0x191   :  { %7684 = vmatpush3.bf16.msra.mxu1 %v8387_v63  ;;  %v2443_v13 = vpop.f32.mrf.mxu0  ;;  %2777 = vmatprep.subr.bf16.mxu0 %v8390_v1  ;;  %v8418_v63 = vld [vmem:[#allocation6 + $0xe4] ss:$28 sps:$4 sm:$0xff]   ;;  %v8431_v10 = vld [vmem:[#allocation6 + $0x38] ss:$28 sps:$4 sm:$0xff]  }
 0x192   :  { %7685 = vmatprep.subr.bf16.mxu1 %v8391_v2  ;;  %v2405_v32 = vadd.f32 %v2404_v25, %v2362_v57  ;;  %v2444_v34 = vadd.f32 %v2443_v13, %v2401_v28  ;;  %v8420_v1 = vld [vmem:[#allocation2 + $0x980] ss:$28 sps:$4 sm:$0xff]   ;;  %v8423_v2 = vld [vmem:[#allocation6 + $0xac] ss:$28 sps:$4 sm:$0xff]   ;;  %v8435_v13 = vld [vmem:[#allocation2 + $0x8d8] ss:$28 sps:$4 sm:$0xff]  }
 0x193   :  { %v2445_v46 = vpop.f32.mrf.mxu0  ;;  %v8446_v57 = vld [vmem:[#allocation6 + $0x310] ss:$28 sps:$4 sm:$0xff]   ;;  %v8454_v25 = vld [vmem:[#allocation6 + $0x2dc] ss:$28 sps:$4 sm:$0xff]  }
 0x194   :  { %2778 = vmatpush2.bf16.msra.mxu0 %v8388_v6  ;;  %v2446_v20 = vadd.f32 %v2445_v46, %v2403_v14  ;;  %v8428_v6 = vld [vmem:[#allocation6 + $0x74] ss:$28 sps:$4 sm:$0xff]   ;;  %v8438_v14 = vld [vmem:[#allocation6 + $0x4] ss:$28 sps:$4 sm:$0xff]   ;;  %v8442_v46 = vld [vmem:[#allocation6 + $0x34c] ss:$28 sps:$4 sm:$0xff]  }
 0x195   :  { %7686 = vmatpush3.bf16.msra.mxu1 %v8392_v7  ;;  %v2447_v22 = vpop.f32.mrf.mxu0  ;;  %2779 = vmatprep.subr.bf16.mxu0 %v8395_v50  ;;  %v8426_v7 = vld [vmem:[#allocation6 + $0x70] ss:$28 sps:$4 sm:$0xff]   ;;  %v8433_v50 = vld [vmem:[#allocation6 + $0x3c] ss:$28 sps:$4 sm:$0xff]  }
 0x196   :  { %7867 = vmatprep.subr.bf16.mxu1 %v9172_v41  ;;  %v2448_v40 = vadd.f32 %v2447_v22, %v2405_v32  ;;  %v8451_v22 = vld [vmem:[#allocation6 + $0x4d4] ss:$28 sps:$4 sm:$0xff]   ;;  %v8458_v32 = vld [vmem:[#allocation6 + $0x2a0] ss:$28 sps:$4 sm:$0xff]  }
 0x197   :  { %v2484_v26 = vpop.f32.mrf.mxu0  ;;  %v8455_v28 = vld [vmem:[#allocation6 + $0x498] ss:$28 sps:$4 sm:$0xff]  }
 0x198   :  { %2911 = vmatmul.mubr.bf16.vlgmr.msra.gmra.mxu1 %v9264_v15  ;;  %2780 = vmatpush2.bf16.msra.mxu0 %v8393_v16  ;;  %v2485_v29 = vadd.f32 %v2484_v26, %v2442_v11  ;;  %v8408_v15 = vld [vmem:[#allocation6 + $0x154] ss:$28 sps:$4 sm:$0xff]   ;;  %v8436_v16 = vld [vmem:[#allocation6] ss:$28 sps:$4 sm:$0xff]  }
 0x199   :  { %7868 = vmatpush3.bf16.msra.mxu1 %v8399_v17  ;;  %v2486_v30 = vpop.f32.mrf.mxu0  ;;  %2781 = vmatprep.subr.bf16.mxu0 %v8398_v18  ;;  %v8434_v11 = vld [vmem:[#allocation2 + $0x750] ss:$28 sps:$4 sm:$0xff]   ;;  %v8439_v17 = vld [vmem:[#allocation2 + $0x718] ss:$28 sps:$4 sm:$0xff]  }
 0x19a   :  { %7869 = vmatprep.mubr.msk.bf16.mxu1 %vm9173_vm1, %v9172_v41  ;;  %5523 = vmatprep.subr.bf16.mxu1 %v8403_v21  ;;  %v2487_v43 = vadd.f32 %v2486_v30, %v2444_v34  ;;  %v3001_v48 = vmax.f32 %v2485_v29, 0.0  ;;  %v8445_v18 = vld [vmem:[#allocation6 + $0x50c] ss:$28 sps:$4 sm:$0xff]   ;;  %v8448_v21 = vld [vmem:[#allocation6 + $0x314] ss:$28 sps:$4 sm:$0xff]  }
 0x19b   :  { %v2488_v38 = vpop.f32.mrf.mxu0  ;;  %v8457_v26 = vld [vmem:[#allocation6 + $0x49c] ss:$28 sps:$4 sm:$0xff]   ;;  %v8460_v29 = vld [vmem:[#allocation6 + $0x2a4] ss:$28 sps:$4 sm:$0xff]  }
 0x19c   :  { %2782 = vmatpush2.bf16.msra.mxu0 %v8396_v24  ;;  %v2489_v45 = vadd.f32 %v2488_v38, %v2446_v20  ;;  %v3002_v54 = vmax.f32 %v2487_v43, 0.0  ;;  %v8443_v20 = vld [vmem:[#allocation6 + $0x508] ss:$28 sps:$4 sm:$0xff]   ;;  %v8449_v24 = vld [vmem:[#allocation6 + $0x4d0] ss:$28 sps:$4 sm:$0xff]  }
 0x19d   :  { %v2490_v47 = vpop.f32.mrf.mxu0  ;;  %7693 = vmatprep.subr.bf16.mxu0 %v8400_v27  ;;  %v8452_v27 = vld [vmem:[#allocation6 + $0x2d8] ss:$28 sps:$4 sm:$0xff]   ;;  %v8463_v30 = vld [vmem:[#allocation6 + $0x464] ss:$28 sps:$4 sm:$0xff]  }
 0x19e   :  { %v3008_v49 = vmax.f32 %v2489_v45, 0.0  ;;  %v2491_v12 = vadd.f32 %v2490_v47, %v2448_v40  ;;  %v8461_v34 = vld [vmem:[#allocation6 + $0x460] ss:$28 sps:$4 sm:$0xff]   ;;  %v8464_v38 = vld [vmem:[#allocation6 + $0x268] ss:$28 sps:$4 sm:$0xff]  }
 0x19f   :  { %2784 = vmatmul.mubr.bf16.vlgmr.msra.gmra.mxu0 %v9284_v23  ;;  %v8472_v40 = vld [vmem:[#allocation6 + $0x234] ss:$28 sps:$4 sm:$0xff]  }
 0x1a0   :  { %7870 = vmatmul.mubr.msk.bf16.vlgmr.msra.gmra.mxu1 %vm2317_vm0, %v9296_v33  ;;  %v9343_v55 = vpack.c.bf16 %v3008_v49, %v3001_v48  ;;  %v3009_v56 = vmax.f32 %v2491_v12, 0.0  ;;  %7694 = vmatpush3.bf16.msra.mxu0 %v8404_v37  ;;  %v8416_v33 = vld [vmem:[#allocation6 + $0xe0] ss:$28 sps:$4 sm:$0xff]   ;;  %v8466_v37 = vld [vmem:[#allocation6 + $0x26c] ss:$28 sps:$4 sm:$0xff]  }
 0x1a1   :  { %5524 = vmatpush1.bf16.msra.mxu1 %v8401_v36  ;;  %7695 = vmatprep.subr.bf16.mxu0 %v8405_v39  ;;  %v9350_v36 = vpop.f32.mrf.mxu1  ;;  %v8467_v39 = vld [vmem:[#allocation6 + $0x428] ss:$28 sps:$4 sm:$0xff]   ;;  %v8475_v43 = vld [vmem:[#allocation6 + $0x3f4] ss:$28 sps:$4 sm:$0xff]   ;;  %v8478_v49 = vld [vmem:[#allocation6 + $0x1fc] ss:$28 sps:$4 sm:$0xff]  }
 0x1a2   :  { %5525 = vmatprep.subr.bf16.mxu1 %v8408_v15  ;;  %v9345_v59 = vpack.c.bf16 %v3009_v56, %v3002_v54  ;;  %2951 = vmatprep.mubr.bf16.mxu0 %v9275_v44  ;;  %v8424_v44 = vld [vmem:[#allocation2 + $0x7c0] ss:$28 sps:$4 sm:$0xff]   ;;  %v8470_v45 = vld [vmem:[#allocation6 + $0x230] ss:$28 sps:$4 sm:$0xff]  }
 0x1a3   :  { %v2529_v15 = vpop.f32.mrf.mxu1  ;;  %v8473_v47 = vld [vmem:[#allocation6 + $0x3f0] ss:$28 sps:$4 sm:$0xff]   ;;  %v8481_v12 = vld [vmem:[#allocation6 + $0x3bc] ss:$28 sps:$4 sm:$0xff]   ;;  %v8484_v54 = vld [vmem:[#allocation6 + $0x1c4] ss:$28 sps:$4 sm:$0xff]  }
 0x1a4   :  { %7696 = vmatpush3.bf16.msra.mxu0 %v8409_v52  ;;  %5555 = vmatprep.mubr.bf16.mxu1 %v9345_v59  ;;  %v8479_v52 = vld [vmem:[#allocation6 + $0x3b8] ss:$28 sps:$4 sm:$0xff]   ;;  %v8487_v56 = vld [vmem:[#allocation6 + $0x384] ss:$28 sps:$4 sm:$0xff]  }
 0x1a5   :  { %5526 = vmatpush1.bf16.msra.mxu1 %v8406_v51  ;;  %7697 = vmatprep.subr.bf16.mxu0 %v8410_v53  ;;  %v9352_v48 = vpop.f32.mrf.mxu1  ;;  %v8476_v51 = vld [vmem:[#allocation6 + $0x1f8] ss:$28 sps:$4 sm:$0xff]  }
 0x1a6   :  { %5527 = vmatprep.subr.bf16.mxu1 %v8413_v58  ;;  %v532_v58 = vsub.s32 3, %v9308_v35 }
 0x1a7   :  { %v2533_v53 = vpop.f32.mrf.mxu1 }
 0x1a8   :  { %7698 = vmatpush3.bf16.msra.mxu0 %v8414_v61  ;;  %v8482_v61 = vld [vmem:[#allocation6 + $0x1c0] ss:$28 sps:$4 sm:$0xff]  }
 0x1a9   :  { %5528 = vmatpush1.bf16.msra.mxu1 %v8411_v60  ;;  %7699 = vmatprep.subr.bf16.mxu0 %v8415_v62  ;;  %v8485_v62 = vld [vmem:[#allocation6 + $0x380] ss:$28 sps:$4 sm:$0xff]  }
 0x1aa   :  { %5529 = vmatprep.subr.bf16.mxu1 %v8418_v63 }
 0x1ac   :  { %7700 = vmatpush3.bf16.msra.mxu0 %v8419_v0  ;;  %v8514_v0 = vld [vmem:[#allocation6 + $0x88c] ss:$28 sps:$4 sm:$0xff]  }
 0x1ad   :  { %5530 = vmatpush1.bf16.msra.mxu1 %v8416_v33  ;;  %7701 = vmatprep.subr.bf16.mxu0 %v8420_v1  ;;  %v8490_v33 = vld [vmem:[#allocation6 + $0x6cc] ss:$28 sps:$4 sm:$0xff]   ;;  %v9359_v1 = vld [vmem:[#allocation4] sm:$0xff] }
 0x1ae   :  { %5531 = vmatprep.subr.bf16.mxu1 %v8423_v2  ;;  %v533_v2 = vrot.slane %v9359_v1, %v532_v58 }
 0x1b0   :  { %7702 = vmatpush3.bf16.msra.mxu0 %v8424_v44 }
 0x1b1   :  { %5532 = vmatpush1.bf16.msra.mxu1 %v8421_v4  ;;  %7703 = vmatprep.subr.bf16.mxu0 %v8425_v5  ;;  %v8488_v5 = vld [vmem:[#allocation6 + $0x6c8] ss:$28 sps:$4 sm:$0xff]  }
 0x1b2   :  { %5533 = vmatprep.subr.bf16.mxu1 %v8428_v6 }
 0x1b4   :  { %7704 = vmatpush3.bf16.msra.mxu0 %v8429_v8  ;;  %v2530_v8 = vadd.f32 %v2529_v15, %v533_v2 }
 0x1b5   :  { %5534 = vmatpush1.bf16.msra.mxu1 %v8426_v7  ;;  %7705 = vmatprep.subr.bf16.mxu0 %v8430_v9  ;;  %v8493_v7 = vld [vmem:[#allocation6 + $0x694] ss:$28 sps:$4 sm:$0xff]   ;;  %v8512_v9 = vld [vmem:[#allocation6 + $0x888] ss:$28 sps:$4 sm:$0xff]  }
 0x1b6   :  { %5535 = vmatprep.subr.bf16.mxu1 %v8433_v50  ;;  %v8517_v50 = vld [vmem:[#allocation6 + $0x854] ss:$28 sps:$4 sm:$0xff]  }
 0x1b8   :  { %7706 = vmatpush3.bf16.msra.mxu0 %v8434_v11 }
 0x1b9   :  { %5536 = vmatpush1.bf16.msra.mxu1 %v8431_v10  ;;  %7707 = vmatprep.subr.bf16.mxu0 %v8435_v13  ;;  %v528_v10 = vsub.s32 2, %v9308_v35 }
 0x1ba   :  { %5537 = vmatprep.subr.bf16.mxu1 %v8438_v14  ;;  %v2534_v14 = vadd.f32 %v2533_v53, %v533_v2  ;;  %v8524_v53 = vld [vmem:[#allocation6 + $0x7a8] ss:$28 sps:$4 sm:$0xff]   ;;  %v8532_v2 = vld [vmem:[#allocation6 + $0x73c] ss:$28 sps:$4 sm:$0xff]  }
 0x1bc   :  { %7708 = vmatpush3.bf16.msra.mxu0 %v8439_v17  ;;  %v8491_v17 = vld [vmem:[#allocation6 + $0x690] ss:$28 sps:$4 sm:$0xff]  }
 0x1bd   :  { %5538 = vmatpush1.bf16.msra.mxu1 %v8436_v16  ;;  %5566 = vmatprep.subr.bf16.mxu0 %v8445_v18  ;;  %v8496_v18 = vld [vmem:[#allocation6 + $0x65c] ss:$28 sps:$4 sm:$0xff]  }
 0x1be   :  { %5539 = vmatprep.subr.bf16.mxu1 %v8442_v46 }
 0x1bf   :  { %2952 = vmatmul.mubr.bf16.vlgmr.msra.gmra.mxu0 %v9284_v23  ;;  %v8469_v23 = vld [vmem:[#allocation6 + $0x42c] ss:$28 sps:$4 sm:$0xff]  }
 0x1c0   :  { %5567 = vmatpush1.bf16.msra.mxu0 %v8443_v20  ;;  %v8515_v20 = vld [vmem:[#allocation6 + $0x850] ss:$28 sps:$4 sm:$0xff]  }
 0x1c1   :  { %5540 = vmatpush2.bf16.msra.mxu1 %v8440_v19  ;;  %5568 = vmatprep.subr.bf16.mxu0 %v8451_v22 }
 0x1c2   :  { %5541 = vmatprep.subr.bf16.mxu1 %v8448_v21 }
 0x1c4   :  { %5569 = vmatpush1.bf16.msra.mxu0 %v8449_v24 }
 0x1c5   :  { %5542 = vmatpush2.bf16.msra.mxu1 %v8446_v57  ;;  %5570 = vmatprep.subr.bf16.mxu0 %v8457_v26  ;;  %v8520_v57 = vld [vmem:[#allocation6 + $0x81c] ss:$28 sps:$4 sm:$0xff]  }
 0x1c6   :  { %5543 = vmatprep.subr.bf16.mxu1 %v8454_v25  ;;  %v8494_v25 = vld [vmem:[#allocation6 + $0x658] ss:$28 sps:$4 sm:$0xff]  }
 0x1c8   :  { %5571 = vmatpush1.bf16.msra.mxu0 %v8455_v28 }
 0x1c9   :  { %5544 = vmatpush2.bf16.msra.mxu1 %v8452_v27  ;;  %5572 = vmatprep.subr.bf16.mxu0 %v8463_v30  ;;  %v8518_v30 = vld [vmem:[#allocation6 + $0x818] ss:$28 sps:$4 sm:$0xff]  }
 0x1ca   :  { %5545 = vmatprep.subr.bf16.mxu1 %v8460_v29  ;;  %v8499_v29 = vld [vmem:[#allocation6 + $0x624] ss:$28 sps:$4 sm:$0xff]  }
 0x1cc   :  { %5573 = vmatpush1.bf16.msra.mxu0 %v8461_v34  ;;  %v8523_v34 = vld [vmem:[#allocation6 + $0x7e4] ss:$28 sps:$4 sm:$0xff]  }
 0x1cd   :  { %5546 = vmatpush2.bf16.msra.mxu1 %v8458_v32  ;;  %5574 = vmatprep.subr.bf16.mxu0 %v8469_v23  ;;  %v8497_v23 = vld [vmem:[#allocation6 + $0x620] ss:$28 sps:$4 sm:$0xff]  }
 0x1ce   :  { %5547 = vmatprep.subr.bf16.mxu1 %v8466_v37 }
 0x1d0   :  { %5575 = vmatpush1.bf16.msra.mxu0 %v8467_v39  ;;  %v9355_v60 = vpop.f32.mrf.mxu1 }
 0x1d1   :  { %5548 = vmatpush2.bf16.msra.mxu1 %v8464_v38  ;;  %5576 = vmatprep.subr.bf16.mxu0 %v8475_v43  ;;  %v8502_v38 = vld [vmem:[#allocation6 + $0x5ec] ss:$28 sps:$4 sm:$0xff]   ;;  %v529_v43 = vrot.slane %v9359_v1, %v528_v10 }
 0x1d2   :  { %5549 = vmatprep.subr.bf16.mxu1 %v8472_v40  ;;  %v2615_v44 = vpop.f32.mrf.mxu1  ;;  %v8521_v40 = vld [vmem:[#allocation6 + $0x7e0] ss:$28 sps:$4 sm:$0xff]  }
 0x1d4   :  { %5577 = vmatpush1.bf16.msra.mxu0 %v8473_v47  ;;  %v9367_v13 = vpop.f32.mrf.mxu1 }
 0x1d5   :  { %5550 = vmatpush2.bf16.msra.mxu1 %v8470_v45  ;;  %5578 = vmatprep.subr.bf16.mxu0 %v8481_v12  ;;  %v8526_v45 = vld [vmem:[#allocation6 + $0x7ac] ss:$28 sps:$4 sm:$0xff]   ;;  %v2528_v12 = vadd.f32 %v9350_v36, %v529_v43 }
 0x1d6   :  { %5551 = vmatprep.subr.bf16.mxu1 %v8478_v49  ;;  %v2619_v21 = vpop.f32.mrf.mxu1  ;;  %v8500_v49 = vld [vmem:[#allocation6 + $0x5e8] ss:$28 sps:$4 sm:$0xff]  }
 0x1d7   :  { %v9357_v63 = vpop.f32.mrf.mxu0 }
 0x1d8   :  { %5579 = vmatpush1.bf16.msra.mxu0 %v8479_v52  ;;  %v8505_v52 = vld [vmem:[#allocation6 + $0x5b4] ss:$28 sps:$4 sm:$0xff]  }
 0x1d9   :  { %5552 = vmatpush2.bf16.msra.mxu1 %v8476_v51  ;;  %v2572_v4 = vpop.f32.mrf.mxu0  ;;  %5580 = vmatprep.subr.bf16.mxu0 %v8487_v56  ;;  %v2532_v51 = vadd.f32 %v9352_v48, %v529_v43  ;;  %v2571_v56 = vadd.f32 %v9357_v63, %v2528_v12  ;;  %v8599_v43 = vld [vmem:[#allocation6 + $0xab8] ss:$28 sps:$4 sm:$0xff]   ;;  %v8607_v12 = vld [vmem:[#allocation6 + $0xa84] ss:$28 sps:$4 sm:$0xff]  }
 0x1da   :  { %5553 = vmatprep.subr.bf16.mxu1 %v8484_v54  ;;  %v2573_v16 = vadd.f32 %v2572_v4, %v2530_v8  ;;  %v8529_v54 = vld [vmem:[#allocation6 + $0x774] ss:$28 sps:$4 sm:$0xff]   ;;  %v8509_v8 = vld [vmem:[#allocation6 + $0x540] ss:$28 sps:$4 sm:$0xff]  }
 0x1db   :  { %v9364_v6 = vpop.f32.mrf.mxu0  ;;  %v2614_v36 = vadd.f32 %v9355_v60, %v2571_v56  ;;  %v8506_v4 = vld [vmem:[#allocation6 + $0x578] ss:$28 sps:$4 sm:$0xff]   ;;  %v8565_v60 = vld [vmem:[#allocation6 + $0xc0c] ss:$28 sps:$4 sm:$0xff]  }
 0x1dc   :  { %5581 = vmatpush1.bf16.msra.mxu0 %v8485_v62  ;;  %v2616_v24 = vadd.f32 %v2615_v44, %v2573_v16  ;;  %v8503_v62 = vld [vmem:[#allocation6 + $0x5b0] ss:$28 sps:$4 sm:$0xff]   ;;  %v8511_v44 = vld [vmem:[#allocation6 + $0x544] ss:$28 sps:$4 sm:$0xff]  }
 0x1dd   :  { %5554 = vmatpush2.bf16.msra.mxu1 %v8482_v61  ;;  %v2576_v11 = vpop.f32.mrf.mxu0  ;;  %5582 = vmatprep.subr.bf16.mxu0 %v8490_v33  ;;  %v2575_v61 = vadd.f32 %v9364_v6, %v2532_v51  ;;  %v8508_v33 = vld [vmem:[#allocation6 + $0x57c] ss:$28 sps:$4 sm:$0xff]   ;;  %v8563_v16 = vld [vmem:[#allocation6 + $0xc08] ss:$28 sps:$4 sm:$0xff]  }
 0x1de   :  { %5609 = vmatprep.subr.bf16.mxu1 %v8514_v0  ;;  %v2577_v19 = vadd.f32 %v2576_v11, %v2534_v14  ;;  %v8527_v0 = vld [vmem:[#allocation6 + $0x770] ss:$28 sps:$4 sm:$0xff]   ;;  %v8530_v6 = vld [vmem:[#allocation6 + $0x738] ss:$28 sps:$4 sm:$0xff]   ;;  %v8605_v51 = vld [vmem:[#allocation6 + $0xa80] ss:$28 sps:$4 sm:$0xff]  }
 0x1df   :  { %v9370_v46 = vpop.f32.mrf.mxu0  ;;  %v2618_v48 = vadd.f32 %v9367_v13, %v2575_v61  ;;  %v8536_v13 = vld [vmem:[#allocation6 + $0xa48] ss:$28 sps:$4 sm:$0xff]  }
 0x1e0   :  { %5556 = vmatmul.mubr.bf16.vlgmr.msra.gmra.mxu1 %v9343_v55  ;;  %5583 = vmatpush2.bf16.msra.mxu0 %v8488_v5  ;;  %v2620_v27 = vadd.f32 %v2619_v21, %v2577_v19  ;;  %v2657_v5 = vadd.f32 %v9370_v46, %v2614_v36  ;;  %v8539_v19 = vld [vmem:[#allocation6 + $0xa10] ss:$28 sps:$4 sm:$0xff]   ;;  %v8577_v21 = vld [vmem:[#allocation6 + $0xb9c] ss:$28 sps:$4 sm:$0xff]  }
 0x1e1   :  { %5610 = vmatpush1.bf16.msra.mxu1 %v8512_v9  ;;  %v2658_v22 = vpop.f32.mrf.mxu0  ;;  %5584 = vmatprep.subr.bf16.mxu0 %v8493_v7  ;;  %v8535_v7 = vld [vmem:[#allocation6 + $0x704] ss:$28 sps:$4 sm:$0xff]  }
 0x1e2   :  { %5611 = vmatprep.subr.bf16.mxu1 %v8517_v50  ;;  %v2659_v28 = vadd.f32 %v2658_v22, %v2616_v24  ;;  %v8533_v9 = vld [vmem:[#allocation6 + $0x700] ss:$28 sps:$4 sm:$0xff]   ;;  %v8538_v50 = vld [vmem:[#allocation6 + $0xa4c] ss:$28 sps:$4 sm:$0xff]   ;;  %v3003_v11 = vmax.f32 %v2657_v5, 0.0 }
 0x1e3   :  { %v2660_v26 = vpop.f32.mrf.mxu0  ;;  %v8544_v22 = vld [vmem:[#allocation6 + $0x9dc] ss:$28 sps:$4 sm:$0xff]  }
 0x1e4   :  { %5585 = vmatpush2.bf16.msra.mxu0 %v8491_v17  ;;  %v3004_v39 = vmax.f32 %v2659_v28, 0.0  ;;  %v2661_v63 = vadd.f32 %v2660_v26, %v2618_v48  ;;  %v8571_v17 = vld [vmem:[#allocation6 + $0xbd4] ss:$28 sps:$4 sm:$0xff]   ;;  %v8547_v26 = vld [vmem:[#allocation6 + $0x9a4] ss:$28 sps:$4 sm:$0xff]  }
 0x1e5   :  { %5612 = vmatpush1.bf16.msra.mxu1 %v8515_v20  ;;  %v2662_v32 = vpop.f32.mrf.mxu0  ;;  %5586 = vmatprep.subr.bf16.mxu0 %v8496_v18  ;;  %v8541_v18 = vld [vmem:[#allocation6 + $0xa14] ss:$28 sps:$4 sm:$0xff]   ;;  %v8581_v28 = vld [vmem:[#allocation6 + $0xb60] ss:$28 sps:$4 sm:$0xff]  }
 0x1e6   :  { %5613 = vmatprep.subr.bf16.mxu1 %v8520_v57  ;;  %v2663_v37 = vadd.f32 %v2662_v32, %v2620_v27  ;;  %v3010_v14 = vmax.f32 %v2661_v63, 0.0  ;;  %v8569_v20 = vld [vmem:[#allocation6 + $0xbd0] ss:$28 sps:$4 sm:$0xff]   ;;  %v8542_v57 = vld [vmem:[#allocation6 + $0x9d8] ss:$28 sps:$4 sm:$0xff]  }
 0x1e7   :  { %v8575_v24 = vld [vmem:[#allocation6 + $0xb98] ss:$28 sps:$4 sm:$0xff]   ;;  %v8545_v27 = vld [vmem:[#allocation6 + $0x9a0] ss:$28 sps:$4 sm:$0xff]   ;;  %v8548_v32 = vld [vmem:[#allocation6 + $0x968] ss:$28 sps:$4 sm:$0xff]  }
 0x1e8   :  { %v3011_v15 = vmax.f32 %v2663_v37, 0.0  ;;  %5587 = vmatpush2.bf16.msra.mxu0 %v8494_v25  ;;  %v9385_v46 = vpack.c.bf16 %v3010_v14, %v3003_v11  ;;  %v8583_v25 = vld [vmem:[#allocation6 + $0xb64] ss:$28 sps:$4 sm:$0xff]   ;;  %v8595_v37 = vld [vmem:[#allocation6 + $0xaf4] ss:$28 sps:$4 sm:$0xff]  }
 0x1e9   :  { %5614 = vmatpush1.bf16.msra.mxu1 %v8518_v30  ;;  %5588 = vmatprep.subr.bf16.mxu0 %v8499_v29  ;;  %v8589_v29 = vld [vmem:[#allocation6 + $0xb2c] ss:$28 sps:$4 sm:$0xff]  }
 0x1ea   :  { %5615 = vmatprep.subr.bf16.mxu1 %v8523_v34  ;;  %v9375_v47 = vpack.c.bf16 %v3011_v15, %v3004_v39  ;;  %v8550_v30 = vld [vmem:[#allocation6 + $0x96c] ss:$28 sps:$4 sm:$0xff]   ;;  %v8601_v15 = vld [vmem:[#allocation6 + $0xabc] ss:$28 sps:$4 sm:$0xff]  }
 0x1eb   :  { %v8587_v34 = vld [vmem:[#allocation6 + $0xb28] ss:$28 sps:$4 sm:$0xff]   ;;  %v8551_v39 = vld [vmem:[#allocation6 + $0x930] ss:$28 sps:$4 sm:$0xff]  }
 0x1ec   :  { %5589 = vmatpush2.bf16.msra.mxu0 %v8497_v23  ;;  %5598 = vmatprep.mubr.bf16.mxu0 %v9375_v47  ;;  %v8553_v23 = vld [vmem:[#allocation6 + $0x934] ss:$28 sps:$4 sm:$0xff]  }
 0x1ed   :  { %5590 = vmatprep.subr.bf16.mxu0 %v8502_v38  ;;  %5616 = vmatpush1.bf16.msra.mxu1 %v8521_v40  ;;  %v8593_v38 = vld [vmem:[#allocation6 + $0xaf0] ss:$28 sps:$4 sm:$0xff]   ;;  %v8556_v40 = vld [vmem:[#allocation6 + $0x8fc] ss:$28 sps:$4 sm:$0xff]  }
 0x1ee   :  { %5617 = vmatprep.subr.bf16.mxu1 %v8526_v45  ;;  %v8554_v45 = vld [vmem:[#allocation6 + $0x8f8] ss:$28 sps:$4 sm:$0xff]  }
 0x1f0   :  { %5591 = vmatpush2.bf16.msra.mxu0 %v8500_v49  ;;  %v8559_v49 = vld [vmem:[#allocation6 + $0x8c4] ss:$28 sps:$4 sm:$0xff]  }
 0x1f1   :  { %5592 = vmatprep.subr.bf16.mxu0 %v8505_v52  ;;  %5618 = vmatpush1.bf16.msra.mxu1 %v8524_v53  ;;  %v8557_v52 = vld [vmem:[#allocation6 + $0x8c0] ss:$28 sps:$4 sm:$0xff]   ;;  %v8613_v53 = vld [vmem:[#allocation6 + $0x194] ss:$28 sps:$4 sm:$0xff]  }
 0x1f2   :  { %5619 = vmatprep.subr.bf16.mxu1 %v8529_v54  ;;  %v8562_v54 = vld [vmem:[#allocation6 + $0x514] ss:$28 sps:$4 sm:$0xff]  }
 0x1f4   :  { %5593 = vmatpush2.bf16.msra.mxu0 %v8503_v62 }
 0x1f5   :  { %5594 = vmatprep.subr.bf16.mxu0 %v8508_v33  ;;  %5620 = vmatpush1.bf16.msra.mxu1 %v8527_v0 }
 0x1f6   :  { %5621 = vmatprep.subr.bf16.mxu1 %v8532_v2 }
 0x1f8   :  { %5595 = vmatpush2.bf16.msra.mxu0 %v8506_v4 }
 0x1f9   :  { %5596 = vmatprep.subr.bf16.mxu0 %v8511_v44  ;;  %5622 = vmatpush1.bf16.msra.mxu1 %v8530_v6 }
 0x1fa   :  { %5623 = vmatprep.subr.bf16.mxu1 %v8535_v7  ;;  %v540_v7 = vsub.s32 5, %v9308_v35 }
 0x1fc   :  { %5597 = vmatpush2.bf16.msra.mxu0 %v8509_v8  ;;  %v536_v8 = vsub.s32 4, %v9308_v35  ;;  %v541_v11 = vrot.slane %v9359_v1, %v540_v7 }
 0x1fd   :  { %5624 = vmatpush1.bf16.msra.mxu1 %v8533_v9  ;;  %5652 = vmatprep.subr.bf16.mxu0 %v8565_v60 }
 0x1fe   :  { %5625 = vmatprep.subr.bf16.mxu1 %v8538_v50  ;;  %v537_v14 = vrot.slane %v9359_v1, %v536_v8 }
 0x1ff   :  { %5599 = vmatmul.mubr.bf16.vlgmr.msra.gmra.mxu0 %v9385_v46 }
 0x200   :  { %5653 = vmatpush1.bf16.msra.mxu0 %v8563_v16  ;;  %5684 = vmatprep.mubr.bf16.mxu0 %v9171_v31 }
 0x201   :  { %5626 = vmatpush2.bf16.msra.mxu1 %v8536_v13  ;;  %5654 = vmatprep.subr.bf16.mxu0 %v8571_v17 }
 0x202   :  { %5627 = vmatprep.subr.bf16.mxu1 %v8541_v18 }
 0x204   :  { %5655 = vmatpush1.bf16.msra.mxu0 %v8569_v20 }
 0x205   :  { %5628 = vmatpush2.bf16.msra.mxu1 %v8539_v19  ;;  %5656 = vmatprep.subr.bf16.mxu0 %v8577_v21 }
 0x206   :  { %5629 = vmatprep.subr.bf16.mxu1 %v8544_v22 }
 0x208   :  { %5657 = vmatpush1.bf16.msra.mxu0 %v8575_v24 }
 0x209   :  { %5630 = vmatpush2.bf16.msra.mxu1 %v8542_v57  ;;  %5658 = vmatprep.subr.bf16.mxu0 %v8583_v25 }
 0x20a   :  { %5631 = vmatprep.subr.bf16.mxu1 %v8547_v26 }
 0x20c   :  { %5659 = vmatpush1.bf16.msra.mxu0 %v8581_v28 }
 0x20d   :  { %5632 = vmatpush2.bf16.msra.mxu1 %v8545_v27  ;;  %5660 = vmatprep.subr.bf16.mxu0 %v8589_v29 }
 0x20e   :  { %5633 = vmatprep.subr.bf16.mxu1 %v8550_v30 }
 0x210   :  { %5661 = vmatpush1.bf16.msra.mxu0 %v8587_v34  ;;  %v2742_v56 = vpop.f32.mrf.mxu1 }
 0x211   :  { %5634 = vmatpush2.bf16.msra.mxu1 %v8548_v32  ;;  %5662 = vmatprep.subr.bf16.mxu0 %v8595_v37 }
 0x212   :  { %5635 = vmatprep.subr.bf16.mxu1 %v8553_v23  ;;  %v2744_v61 = vpop.f32.mrf.mxu1 }
 0x214   :  { %5663 = vmatpush1.bf16.msra.mxu0 %v8593_v38  ;;  %v2746_v62 = vpop.f32.mrf.mxu1 }
 0x215   :  { %5636 = vmatpush2.bf16.msra.mxu1 %v8551_v39  ;;  %5664 = vmatprep.subr.bf16.mxu0 %v8601_v15 }
 0x216   :  { %5637 = vmatprep.subr.bf16.mxu1 %v8556_v40  ;;  %v2748_v33 = vpop.f32.mrf.mxu1 }
 0x218   :  { %5665 = vmatpush1.bf16.msra.mxu0 %v8599_v43  ;;  %v2828_v0 = vpop.f32.mrf.mxu1 }
 0x219   :  { %5638 = vmatpush2.bf16.msra.mxu1 %v8554_v45  ;;  %5666 = vmatprep.subr.bf16.mxu0 %v8607_v12 }
 0x21a   :  { %5639 = vmatprep.subr.bf16.mxu1 %v8559_v49  ;;  %v2830_v2 = vpop.f32.mrf.mxu1 }
 0x21c   :  { %5667 = vmatpush1.bf16.msra.mxu0 %v8605_v51  ;;  %v2832_v36 = vpop.f32.mrf.mxu1 }
 0x21d   :  { %5640 = vmatpush2.bf16.msra.mxu1 %v8557_v52  ;;  %5695 = vmatprep.subr.bf16.mxu0 %v8613_v53 }
 0x21e   :  { %5738 = vmatprep.subr.bf16.mxu1 %v8562_v54  ;;  %v2834_v48 = vpop.f32.mrf.mxu1 }
 0x21f   :  { %v2699_v63 = vpop.f32.mrf.mxu0 }
 0x220   :  { %v2700_v18 = vadd.f32 %v2699_v63, %v537_v14  ;;  %v8568_v63 = vld [vmem:[#allocation6 + $0x4dc] ss:$28 sps:$4 sm:$0xff]  }
 0x221   :  { %v2701_v9 = vpop.f32.mrf.mxu0 }
 0x222   :  { %v2702_v17 = vadd.f32 %v2701_v9, %v541_v11  ;;  %v2743_v26 = vadd.f32 %v2742_v56, %v2700_v18  ;;  %v8578_v9 = vld [vmem:[#allocation6 + $0x468] ss:$28 sps:$4 sm:$0xff]   ;;  %v8592_v18 = vld [vmem:[#allocation6 + $0x3fc] ss:$28 sps:$4 sm:$0xff]  }
 0x223   :  { %v2703_v60 = vpop.f32.mrf.mxu0 }
 0x224   :  { %v2704_v21 = vadd.f32 %v2703_v60, %v537_v14  ;;  %v2745_v24 = vadd.f32 %v2744_v61, %v2702_v17  ;;  %v8560_v61 = vld [vmem:[#allocation6 + $0x510] ss:$28 sps:$4 sm:$0xff]  }
 0x225   :  { %v2705_v19 = vpop.f32.mrf.mxu0  ;;  %v8584_v17 = vld [vmem:[#allocation6 + $0x430] ss:$28 sps:$4 sm:$0xff]  }
 0x226   :  { %v2706_v25 = vadd.f32 %v2705_v19, %v541_v11  ;;  %v2747_v29 = vadd.f32 %v2746_v62, %v2704_v21  ;;  %v8586_v11 = vld [vmem:[#allocation6 + $0x434] ss:$28 sps:$4 sm:$0xff]  }
 0x228   :  { %v2749_v23 = vadd.f32 %v2748_v33, %v2706_v25  ;;  %v8566_v33 = vld [vmem:[#allocation6 + $0x4d8] ss:$28 sps:$4 sm:$0xff]  }
 0x229   :  { %v8590_v25 = vld [vmem:[#allocation6 + $0x3f8] ss:$28 sps:$4 sm:$0xff]  }
 0x238   :  { %v9389_v4 = vpop.f32.mrf.mxu1 }
 0x23a   :  { %v9391_v44 = vpop.f32.mrf.mxu1 }
 0x23b   :  { %v7667_v60 = vadd.f32 %v9391_v44, %v9389_v4 }
 0x23c   :  { %v9393_v5 = vpop.f32.mrf.mxu1 }
 0x23e   :  { %v9395_v6 = vpop.f32.mrf.mxu1 }
 0x23f   :  { %v7670_v21 = vadd.f32 %v9395_v6, %v9393_v5  ;;  %v8604_v5 = vld [vmem:[#allocation6 + $0x38c] ss:$28 sps:$4 sm:$0xff]  }
 0x258   :  { %v9399_v50 = vpop.f32.mrf.mxu1 }
 0x25a   :  { %v7688_v13 = vpop.f32.mrf.mxu1 }
 0x25c   :  { %v9407_v16 = vpop.f32.mrf.mxu1 }
 0x25e   :  { %v9409_v20 = vpop.f32.mrf.mxu1 }
 0x25f   :  { %v2785_v22 = vpop.f32.mrf.mxu0  ;;  %v7692_v4 = vadd.f32 %v9409_v20, %v9407_v16 }
 0x260   :  { %v9411_v57 = vpop.f32.mrf.mxu1  ;;  %v2786_v32 = vadd.f32 %v2785_v22, %v2743_v26  ;;  %v7689_v22 = vadd.f32 %v7688_v13, %v9399_v50 }
 0x261   :  { %v2787_v27 = vpop.f32.mrf.mxu0 }
 0x262   :  { %v7871_v28 = vpop.f32.mrf.mxu1  ;;  %v2788_v30 = vadd.f32 %v2787_v27, %v2745_v24  ;;  %v2829_v49 = vadd.f32 %v2828_v0, %v2786_v32  ;;  %v8574_v0 = vld [vmem:[#allocation6 + $0x4a4] ss:$28 sps:$4 sm:$0xff]  }
 0x263   :  { %v2789_v34 = vpop.f32.mrf.mxu0  ;;  %v8598_v27 = vld [vmem:[#allocation6 + $0x3c4] ss:$28 sps:$4 sm:$0xff]  }
 0x264   :  { %v9413_v37 = vpop.f32.mrf.mxu1  ;;  %v2790_v38 = vadd.f32 %v2789_v34, %v2747_v29  ;;  %v2831_v40 = vadd.f32 %v2830_v2, %v2788_v30  ;;  %v3005_v54 = vmax.f32 %v2829_v49, 0.0  ;;  %v8572_v2 = vld [vmem:[#allocation6 + $0x4a0] ss:$28 sps:$4 sm:$0xff]  }
 0x265   :  { %v2791_v39 = vpop.f32.mrf.mxu0  ;;  %v8596_v32 = vld [vmem:[#allocation6 + $0x3c0] ss:$28 sps:$4 sm:$0xff]  }
 0x266   :  { %v7872_v15 = vpop.f32.mrf.mxu1  ;;  %v2833_v43 = vadd.f32 %v2832_v36, %v2790_v38  ;;  %v2792_v45 = vadd.f32 %v2791_v39, %v2749_v23  ;;  %v3006_v52 = vmax.f32 %v2831_v40, 0.0  ;;  %v8580_v36 = vld [vmem:[#allocation6 + $0x46c] ss:$28 sps:$4 sm:$0xff]   ;;  %v8610_v39 = vld [vmem:[#allocation6 + $0x6d4] ss:$28 sps:$4 sm:$0xff]  }
 0x267   :  { %v8602_v38 = vld [vmem:[#allocation6 + $0x388] ss:$28 sps:$4 sm:$0xff]   ;;  %v8608_v40 = vld [vmem:[#allocation6 + $0x6d0] ss:$28 sps:$4 sm:$0xff]   ;;  %v8616_v49 = vld [vmem:[#allocation6 + $0x69c] ss:$28 sps:$4 sm:$0xff]  }
 0x268   :  { %v2835_v12 = vadd.f32 %v2834_v48, %v2792_v45  ;;  %v3012_v51 = vmax.f32 %v2833_v43, 0.0  ;;  %v544_v48 = vsub.s32 6, %v9308_v35  ;;  %v8611_v43 = vld [vmem:[#allocation6 + $0x190] ss:$28 sps:$4 sm:$0xff]  }
 0x26a   :  { %v3013_v53 = vmax.f32 %v2835_v12, 0.0  ;;  %v9417_v62 = vpack.c.bf16 %v3012_v51, %v3005_v54  ;;  %v545_v14 = vrot.slane %v9359_v1, %v544_v48  ;;  %v8619_v12 = vld [vmem:[#allocation6 + $0x15c] ss:$28 sps:$4 sm:$0xff]  }
 0x26b   :  { %v8617_v51 = vld [vmem:[#allocation6 + $0x158] ss:$28 sps:$4 sm:$0xff]   ;;  %v8623_v54 = vld [vmem:[#allocation6 + $0x120] ss:$28 sps:$4 sm:$0xff]  }
 0x26c   :  { %v9415_v56 = vpack.c.bf16 %v3013_v53, %v3006_v52  ;;  %v2872_v19 = vadd.f32 %v7667_v60, %v545_v14  ;;  %v2875_v1 = vadd.f32 %v7670_v21, %v545_v14  ;;  %v8622_v52 = vld [vmem:[#allocation6 + $0x664] ss:$28 sps:$4 sm:$0xff]   ;;  %v8640_v14 = vld [vmem:[#allocation6 + $0x5bc] ss:$28 sps:$4 sm:$0xff]  }
 0x26d   :  { %v8620_v53 = vld [vmem:[#allocation6 + $0x660] ss:$28 sps:$4 sm:$0xff]  }
 0x26e   :  { %5641 = vmatprep.mubr.bf16.mxu1 %v9415_v56  ;;  %v2913_v28 = vadd.f32 %v7689_v22, %v2872_v19  ;;  %v2916_v6 = vadd.f32 %v7692_v4, %v2875_v1  ;;  %v8643_v60 = vld [vmem:[#allocation6 + $0x7c] ss:$28 sps:$4 sm:$0xff]   ;;  %v8646_v19 = vld [vmem:[#allocation6 + $0x584] ss:$28 sps:$4 sm:$0xff]   ;;  %v8661_v4 = vld [vmem:[#allocation6 + $0x354] ss:$28 sps:$4 sm:$0xff]  }
 0x26f   :  { %5642 = vmatmul.mubr.bf16.vlgmr.msra.gmra.mxu1 %v9417_v62  ;;  %v8649_v21 = vld [vmem:[#allocation6 + $0x44] ss:$28 sps:$4 sm:$0xff]  }
 0x270   :  { %5739 = vmatpush1.bf16.msra.mxu1 %v8560_v61  ;;  %5770 = vmatprep.mubr.bf16.mxu1 %v9375_v47  ;;  %v8628_v61 = vld [vmem:[#allocation6 + $0x62c] ss:$28 sps:$4 sm:$0xff]   ;;  %v8644_v22 = vld [vmem:[#allocation6 + $0x580] ss:$28 sps:$4 sm:$0xff]  }
 0x271   :  { %5740 = vmatprep.subr.bf16.mxu1 %v8568_v63  ;;  %v8631_v63 = vld [vmem:[#allocation6 + $0xec] ss:$28 sps:$4 sm:$0xff]  }
 0x272   :  { %v8653_v1 = vld [vmem:[#allocation6 + $0x8] ss:$28 sps:$4 sm:$0xff]  }
 0x274   :  { %5741 = vmatpush1.bf16.msra.mxu1 %v8566_v33  ;;  %v8626_v33 = vld [vmem:[#allocation6 + $0x628] ss:$28 sps:$4 sm:$0xff]  }
 0x275   :  { %5742 = vmatprep.subr.bf16.mxu1 %v8574_v0  ;;  %v8629_v0 = vld [vmem:[#allocation6 + $0xe8] ss:$28 sps:$4 sm:$0xff]  }
 0x278   :  { %5743 = vmatpush1.bf16.msra.mxu1 %v8572_v2  ;;  %v8634_v2 = vld [vmem:[#allocation6 + $0x5f4] ss:$28 sps:$4 sm:$0xff]  }
 0x279   :  { %5744 = vmatprep.subr.bf16.mxu1 %v8580_v36  ;;  %v8637_v36 = vld [vmem:[#allocation6 + $0xb4] ss:$28 sps:$4 sm:$0xff]  }
 0x27c   :  { %5745 = vmatpush1.bf16.msra.mxu1 %v8578_v9  ;;  %v8632_v9 = vld [vmem:[#allocation6 + $0x5f0] ss:$28 sps:$4 sm:$0xff]  }
 0x27d   :  { %5746 = vmatprep.subr.bf16.mxu1 %v8586_v11  ;;  %v8635_v11 = vld [vmem:[#allocation6 + $0xb0] ss:$28 sps:$4 sm:$0xff]  }
 0x27f   :  { %v7709_v24 = vpop.f32.mrf.mxu0 }
 0x280   :  { %5747 = vmatpush1.bf16.msra.mxu1 %v8584_v17  ;;  %v8638_v17 = vld [vmem:[#allocation6 + $0x5b8] ss:$28 sps:$4 sm:$0xff]  }
 0x281   :  { %v7710_v26 = vpop.f32.mrf.mxu0  ;;  %5748 = vmatprep.subr.bf16.mxu1 %v8592_v18  ;;  %v8641_v18 = vld [vmem:[#allocation6 + $0x78] ss:$28 sps:$4 sm:$0xff]  }
 0x282   :  { %v7711_v44 = vadd.f32 %v7710_v26, %v7709_v24  ;;  %v8647_v24 = vld [vmem:[#allocation6 + $0x40] ss:$28 sps:$4 sm:$0xff]   ;;  %v8655_v26 = vld [vmem:[#allocation6 + $0xc] ss:$28 sps:$4 sm:$0xff]  }
 0x283   :  { %v7712_v29 = vpop.f32.mrf.mxu0 }
 0x284   :  { %v2954_v30 = vadd.f32 %v7711_v44, %v2913_v28  ;;  %5749 = vmatpush1.bf16.msra.mxu1 %v8590_v25  ;;  %v8652_v25 = vld [vmem:[#allocation6 + $0x54c] ss:$28 sps:$4 sm:$0xff]   ;;  %v8658_v28 = vld [vmem:[#allocation6 + $0xc14] ss:$28 sps:$4 sm:$0xff]  }
 0x285   :  { %v7713_v34 = vpop.f32.mrf.mxu0  ;;  %5750 = vmatprep.subr.bf16.mxu1 %v8598_v27  ;;  %v8650_v27 = vld [vmem:[#allocation6 + $0x548] ss:$28 sps:$4 sm:$0xff]   ;;  %v8656_v44 = vld [vmem:[#allocation6 + $0xc10] ss:$28 sps:$4 sm:$0xff]  }
 0x286   :  { %v7714_v50 = vadd.f32 %v7713_v34, %v7712_v29  ;;  %v2995_v13 = vadd.f32 %v9411_v57, %v2954_v30  ;;  %v8614_v57 = vld [vmem:[#allocation6 + $0x698] ss:$28 sps:$4 sm:$0xff]   ;;  %v8659_v29 = vld [vmem:[#allocation6 + $0x350] ss:$28 sps:$4 sm:$0xff]  }
 0x287   :  { %v8664_v30 = vld [vmem:[#allocation6 + $0xbdc] ss:$28 sps:$4 sm:$0xff]  }
 0x288   :  { %v2957_v23 = vadd.f32 %v7714_v50, %v2916_v6  ;;  %5751 = vmatpush1.bf16.msra.mxu1 %v8596_v32  ;;  %v3007_v16 = vmax.f32 %v2995_v13, 0.0  ;;  %v8667_v32 = vld [vmem:[#allocation6 + $0x31c] ss:$28 sps:$4 sm:$0xff]   ;;  %v8670_v6 = vld [vmem:[#allocation6 + $0xba4] ss:$28 sps:$4 sm:$0xff]  }
 0x289   :  { %5752 = vmatprep.subr.bf16.mxu1 %v8604_v5  ;;  %v8662_v34 = vld [vmem:[#allocation6 + $0xbd8] ss:$28 sps:$4 sm:$0xff]   ;;  %v8673_v50 = vld [vmem:[#allocation6 + $0x2e4] ss:$28 sps:$4 sm:$0xff]  }
 0x28a   :  { %v2998_v15 = vadd.f32 %v9413_v37, %v2957_v23  ;;  %v8625_v37 = vld [vmem:[#allocation6 + $0x124] ss:$28 sps:$4 sm:$0xff]   ;;  %v8665_v5 = vld [vmem:[#allocation6 + $0x318] ss:$28 sps:$4 sm:$0xff]  }
 0x28b   :  { %v8668_v13 = vld [vmem:[#allocation6 + $0xba0] ss:$28 sps:$4 sm:$0xff]  }
 0x28c   :  { %v3014_v20 = vmax.f32 %v2998_v15, 0.0  ;;  %5753 = vmatpush1.bf16.msra.mxu1 %v8602_v38  ;;  %v8671_v23 = vld [vmem:[#allocation6 + $0x2e0] ss:$28 sps:$4 sm:$0xff]   ;;  %v8676_v38 = vld [vmem:[#allocation6 + $0xb6c] ss:$28 sps:$4 sm:$0xff]  }
 0x28d   :  { %5754 = vmatprep.subr.bf16.mxu1 %v8610_v39  ;;  %v8679_v39 = vld [vmem:[#allocation6 + $0x2ac] ss:$28 sps:$4 sm:$0xff]  }
 0x28e   :  { %v9435_v45 = vpack.c.bf16 %v3014_v20, %v3007_v16  ;;  %v8674_v15 = vld [vmem:[#allocation6 + $0xb68] ss:$28 sps:$4 sm:$0xff]   ;;  %v8682_v20 = vld [vmem:[#allocation6 + $0xb34] ss:$28 sps:$4 sm:$0xff]  }
 0x28f   :  { %v8677_v16 = vld [vmem:[#allocation6 + $0x2a8] ss:$28 sps:$4 sm:$0xff]  }
 0x290   :  { %5755 = vmatpush2.bf16.msra.mxu1 %v8608_v40  ;;  %5685 = vmatmul.mubr.bf16.vlgmr.msra.gmra.mxu0 %v9435_v45  ;;  %v8685_v40 = vld [vmem:[#allocation6 + $0x274] ss:$28 sps:$4 sm:$0xff]  }
 0x291   :  { %5696 = vmatpush1.bf16.msra.mxu0 %v8611_v43  ;;  %5727 = vmatprep.mubr.bf16.mxu0 %v9345_v59  ;;  %v8680_v43 = vld [vmem:[#allocation6 + $0xb30] ss:$28 sps:$4 sm:$0xff]  }
 0x292   :  { %5756 = vmatprep.subr.bf16.mxu1 %v8616_v49  ;;  %5697 = vmatprep.subr.bf16.mxu0 %v8619_v12  ;;  %v8683_v49 = vld [vmem:[#allocation6 + $0x270] ss:$28 sps:$4 sm:$0xff]   ;;  %v8688_v12 = vld [vmem:[#allocation6 + $0xafc] ss:$28 sps:$4 sm:$0xff]  }
 0x294   :  { %5757 = vmatpush2.bf16.msra.mxu1 %v8614_v57  ;;  %v8691_v57 = vld [vmem:[#allocation6 + $0x23c] ss:$28 sps:$4 sm:$0xff]  }
 0x295   :  { %5698 = vmatpush1.bf16.msra.mxu0 %v8617_v51  ;;  %5758 = vmatprep.subr.bf16.mxu1 %v8622_v52  ;;  %v8686_v51 = vld [vmem:[#allocation6 + $0xaf8] ss:$28 sps:$4 sm:$0xff]  }
 0x296   :  { %5699 = vmatprep.subr.bf16.mxu0 %v8625_v37  ;;  %v8689_v52 = vld [vmem:[#allocation6 + $0x238] ss:$28 sps:$4 sm:$0xff]   ;;  %v8694_v37 = vld [vmem:[#allocation6 + $0xac4] ss:$28 sps:$4 sm:$0xff]  }
 0x298   :  { %5759 = vmatpush2.bf16.msra.mxu1 %v8620_v53  ;;  %v8697_v53 = vld [vmem:[#allocation6 + $0x204] ss:$28 sps:$4 sm:$0xff]  }
 0x299   :  { %5700 = vmatpush1.bf16.msra.mxu0 %v8623_v54  ;;  %5760 = vmatprep.subr.bf16.mxu1 %v8628_v61  ;;  %v8692_v54 = vld [vmem:[#allocation6 + $0xac0] ss:$28 sps:$4 sm:$0xff]  }
 0x29a   :  { %5701 = vmatprep.subr.bf16.mxu0 %v8631_v63  ;;  %v8695_v61 = vld [vmem:[#allocation6 + $0x200] ss:$28 sps:$4 sm:$0xff]   ;;  %v8700_v63 = vld [vmem:[#allocation6 + $0xa8c] ss:$28 sps:$4 sm:$0xff]  }
 0x29c   :  { %5761 = vmatpush2.bf16.msra.mxu1 %v8626_v33  ;;  %v8703_v33 = vld [vmem:[#allocation6 + $0x1cc] ss:$28 sps:$4 sm:$0xff]  }
 0x29d   :  { %5702 = vmatpush1.bf16.msra.mxu0 %v8629_v0  ;;  %5762 = vmatprep.subr.bf16.mxu1 %v8634_v2  ;;  %v8698_v0 = vld [vmem:[#allocation6 + $0xa88] ss:$28 sps:$4 sm:$0xff]  }
 0x29e   :  { %5703 = vmatprep.subr.bf16.mxu0 %v8637_v36  ;;  %v8701_v2 = vld [vmem:[#allocation6 + $0x1c8] ss:$28 sps:$4 sm:$0xff]   ;;  %v8706_v36 = vld [vmem:[#allocation6 + $0x19c] ss:$28 sps:$4 sm:$0xff]  }
 0x2a0   :  { %5763 = vmatpush2.bf16.msra.mxu1 %v8632_v9  ;;  %v8709_v9 = vld [vmem:[#allocation6 + $0x894] ss:$28 sps:$4 sm:$0xff]  }
 0x2a1   :  { %5704 = vmatpush1.bf16.msra.mxu0 %v8635_v11  ;;  %5764 = vmatprep.subr.bf16.mxu1 %v8640_v14  ;;  %v8704_v11 = vld [vmem:[#allocation6 + $0x198] ss:$28 sps:$4 sm:$0xff]   ;;  %v8707_v14 = vld [vmem:[#allocation6 + $0x890] ss:$28 sps:$4 sm:$0xff]  }
 0x2a2   :  { %5705 = vmatprep.subr.bf16.mxu0 %v8643_v60  ;;  %v8712_v60 = vld [vmem:[#allocation6 + $0x164] ss:$28 sps:$4 sm:$0xff]  }
 0x2a4   :  { %5765 = vmatpush2.bf16.msra.mxu1 %v8638_v17  ;;  %v8715_v17 = vld [vmem:[#allocation6 + $0x85c] ss:$28 sps:$4 sm:$0xff]  }
 0x2a5   :  { %5706 = vmatpush1.bf16.msra.mxu0 %v8641_v18  ;;  %5766 = vmatprep.subr.bf16.mxu1 %v8646_v19  ;;  %v8710_v18 = vld [vmem:[#allocation6 + $0x160] ss:$28 sps:$4 sm:$0xff]   ;;  %v8713_v19 = vld [vmem:[#allocation6 + $0x858] ss:$28 sps:$4 sm:$0xff]  }
 0x2a6   :  { %5707 = vmatprep.subr.bf16.mxu0 %v8649_v21  ;;  %v8718_v21 = vld [vmem:[#allocation6 + $0x12c] ss:$28 sps:$4 sm:$0xff]  }
 0x2a8   :  { %5767 = vmatpush2.bf16.msra.mxu1 %v8644_v22  ;;  %v8721_v22 = vld [vmem:[#allocation6 + $0x824] ss:$28 sps:$4 sm:$0xff]  }
 0x2a9   :  { %5708 = vmatpush1.bf16.msra.mxu0 %v8647_v24  ;;  %5768 = vmatprep.subr.bf16.mxu1 %v8652_v25  ;;  %v8716_v24 = vld [vmem:[#allocation6 + $0x128] ss:$28 sps:$4 sm:$0xff]   ;;  %v8719_v25 = vld [vmem:[#allocation6 + $0x820] ss:$28 sps:$4 sm:$0xff]  }
 0x2aa   :  { %5709 = vmatprep.subr.bf16.mxu0 %v8655_v26  ;;  %v8724_v26 = vld [vmem:[#allocation6 + $0xf4] ss:$28 sps:$4 sm:$0xff]  }
 0x2ac   :  { %5769 = vmatpush2.bf16.msra.mxu1 %v8650_v27  ;;  %v8727_v27 = vld [vmem:[#allocation6 + $0x7ec] ss:$28 sps:$4 sm:$0xff]  }
 0x2ad   :  { %5710 = vmatpush1.bf16.msra.mxu0 %v8653_v1  ;;  %5824 = vmatprep.subr.bf16.mxu1 %v8658_v28  ;;  %v8722_v1 = vld [vmem:[#allocation6 + $0xf0] ss:$28 sps:$4 sm:$0xff]   ;;  %v8725_v28 = vld [vmem:[#allocation6 + $0x7e8] ss:$28 sps:$4 sm:$0xff]  }
 0x2ae   :  { %5711 = vmatprep.subr.bf16.mxu0 %v8661_v4  ;;  %v8730_v4 = vld [vmem:[#allocation6 + $0xbc] ss:$28 sps:$4 sm:$0xff]  }
 0x2af   :  { %5771 = vmatmul.mubr.bf16.vlgmr.msra.gmra.mxu1 %v9385_v46 }
 0x2b0   :  { %5825 = vmatpush1.bf16.msra.mxu1 %v8656_v44  ;;  %5856 = vmatprep.mubr.bf16.mxu1 %v9171_v31  ;;  %v8733_v44 = vld [vmem:[#allocation6 + $0x7b4] ss:$28 sps:$4 sm:$0xff]  }
 0x2b1   :  { %5712 = vmatpush2.bf16.msra.mxu0 %v8659_v29  ;;  %5826 = vmatprep.subr.bf16.mxu1 %v8664_v30  ;;  %v8728_v29 = vld [vmem:[#allocation6 + $0xb8] ss:$28 sps:$4 sm:$0xff]   ;;  %v8731_v30 = vld [vmem:[#allocation6 + $0x7b0] ss:$28 sps:$4 sm:$0xff]  }
 0x2b2   :  { %5713 = vmatprep.subr.bf16.mxu0 %v8667_v32  ;;  %v8736_v32 = vld [vmem:[#allocation6 + $0x84] ss:$28 sps:$4 sm:$0xff]  }
 0x2b4   :  { %5827 = vmatpush1.bf16.msra.mxu1 %v8662_v34  ;;  %v8739_v34 = vld [vmem:[#allocation6 + $0x77c] ss:$28 sps:$4 sm:$0xff]  }
 0x2b5   :  { %5714 = vmatpush2.bf16.msra.mxu0 %v8665_v5  ;;  %5828 = vmatprep.subr.bf16.mxu1 %v8670_v6  ;;  %v8734_v5 = vld [vmem:[#allocation6 + $0x80] ss:$28 sps:$4 sm:$0xff]   ;;  %v8737_v6 = vld [vmem:[#allocation6 + $0x778] ss:$28 sps:$4 sm:$0xff]  }
 0x2b6   :  { %5715 = vmatprep.subr.bf16.mxu0 %v8673_v50  ;;  %v8742_v50 = vld [vmem:[#allocation6 + $0x4c] ss:$28 sps:$4 sm:$0xff]  }
 0x2b8   :  { %5829 = vmatpush1.bf16.msra.mxu1 %v8668_v13  ;;  %v8745_v13 = vld [vmem:[#allocation6 + $0x744] ss:$28 sps:$4 sm:$0xff]  }
 0x2b9   :  { %5716 = vmatpush2.bf16.msra.mxu0 %v8671_v23  ;;  %5830 = vmatprep.subr.bf16.mxu1 %v8676_v38  ;;  %v8740_v23 = vld [vmem:[#allocation6 + $0x48] ss:$28 sps:$4 sm:$0xff]   ;;  %v8743_v38 = vld [vmem:[#allocation6 + $0x740] ss:$28 sps:$4 sm:$0xff]  }
 0x2ba   :  { %5717 = vmatprep.subr.bf16.mxu0 %v8679_v39  ;;  %v8748_v39 = vld [vmem:[#allocation6 + $0x14] ss:$28 sps:$4 sm:$0xff]  }
 0x2bc   :  { %5831 = vmatpush1.bf16.msra.mxu1 %v8674_v15  ;;  %v8751_v15 = vld [vmem:[#allocation6 + $0x70c] ss:$28 sps:$4 sm:$0xff]  }
 0x2bd   :  { %5718 = vmatpush2.bf16.msra.mxu0 %v8677_v16  ;;  %5832 = vmatprep.subr.bf16.mxu1 %v8682_v20  ;;  %v8746_v16 = vld [vmem:[#allocation6 + $0x10] ss:$28 sps:$4 sm:$0xff]   ;;  %v8749_v20 = vld [vmem:[#allocation6 + $0x708] ss:$28 sps:$4 sm:$0xff]  }
 0x2be   :  { %5719 = vmatprep.subr.bf16.mxu0 %v8685_v40  ;;  %v8754_v40 = vld [vmem:[#allocation6 + $0x35c] ss:$28 sps:$4 sm:$0xff]  }
 0x2c0   :  { %5833 = vmatpush1.bf16.msra.mxu1 %v8680_v43  ;;  %v8757_v43 = vld [vmem:[#allocation6 + $0xa54] ss:$28 sps:$4 sm:$0xff]  }
 0x2c1   :  { %5720 = vmatpush2.bf16.msra.mxu0 %v8683_v49  ;;  %5834 = vmatprep.subr.bf16.mxu1 %v8688_v12  ;;  %v8752_v49 = vld [vmem:[#allocation6 + $0x358] ss:$28 sps:$4 sm:$0xff]   ;;  %v8755_v12 = vld [vmem:[#allocation6 + $0xa50] ss:$28 sps:$4 sm:$0xff]  }
 0x2c2   :  { %5721 = vmatprep.subr.bf16.mxu0 %v8691_v57  ;;  %v8760_v57 = vld [vmem:[#allocation6 + $0x324] ss:$28 sps:$4 sm:$0xff]  }
 0x2c4   :  { %5835 = vmatpush1.bf16.msra.mxu1 %v8686_v51  ;;  %v8763_v51 = vld [vmem:[#allocation6 + $0xa1c] ss:$28 sps:$4 sm:$0xff]  }
 0x2c5   :  { %5722 = vmatpush2.bf16.msra.mxu0 %v8689_v52  ;;  %5836 = vmatprep.subr.bf16.mxu1 %v8694_v37  ;;  %v8758_v52 = vld [vmem:[#allocation6 + $0x320] ss:$28 sps:$4 sm:$0xff]   ;;  %v8761_v37 = vld [vmem:[#allocation6 + $0xa18] ss:$28 sps:$4 sm:$0xff]  }
 0x2c6   :  { %5723 = vmatprep.subr.bf16.mxu0 %v8697_v53  ;;  %v8766_v53 = vld [vmem:[#allocation6 + $0x2ec] ss:$28 sps:$4 sm:$0xff]  }
 0x2c8   :  { %5837 = vmatpush1.bf16.msra.mxu1 %v8692_v54  ;;  %v8769_v54 = vld [vmem:[#allocation6 + $0x9e4] ss:$28 sps:$4 sm:$0xff]  }
 0x2c9   :  { %5724 = vmatpush2.bf16.msra.mxu0 %v8695_v61  ;;  %5838 = vmatprep.subr.bf16.mxu1 %v8700_v63  ;;  %v8764_v61 = vld [vmem:[#allocation6 + $0x2e8] ss:$28 sps:$4 sm:$0xff]   ;;  %v8767_v63 = vld [vmem:[#allocation6 + $0x9e0] ss:$28 sps:$4 sm:$0xff]  }
 0x2ca   :  { %5725 = vmatprep.subr.bf16.mxu0 %v8703_v33  ;;  %v8772_v33 = vld [vmem:[#allocation6 + $0x2b4] ss:$28 sps:$4 sm:$0xff]  }
 0x2cc   :  { %5839 = vmatpush1.bf16.msra.mxu1 %v8698_v0  ;;  %v8775_v0 = vld [vmem:[#allocation6 + $0x9ac] ss:$28 sps:$4 sm:$0xff]  }
 0x2cd   :  { %5726 = vmatpush2.bf16.msra.mxu0 %v8701_v2  ;;  %5867 = vmatprep.subr.bf16.mxu1 %v8706_v36  ;;  %v8770_v2 = vld [vmem:[#allocation6 + $0x2b0] ss:$28 sps:$4 sm:$0xff]   ;;  %v8773_v36 = vld [vmem:[#allocation6 + $0x9a8] ss:$28 sps:$4 sm:$0xff]  }
 0x2ce   :  { %5781 = vmatprep.subr.bf16.mxu0 %v8709_v9  ;;  %v8778_v9 = vld [vmem:[#allocation6 + $0x27c] ss:$28 sps:$4 sm:$0xff]  }
 0x2cf   :  { %5857 = vmatmul.mubr.bf16.vlgmr.msra.gmra.mxu1 %v9435_v45 }
 0x2d0   :  { %5728 = vmatmul.mubr.bf16.vlgmr.msra.gmra.mxu0 %v9343_v55  ;;  %5868 = vmatpush1.bf16.msra.mxu1 %v8704_v11  ;;  %v8781_v11 = vld [vmem:[#allocation6 + $0x974] ss:$28 sps:$4 sm:$0xff]  }
 0x2d1   :  { %5899 = vmatprep.mubr.bf16.mxu1 %v9345_v59  ;;  %5782 = vmatpush1.bf16.msra.mxu0 %v8707_v14  ;;  %v8776_v14 = vld [vmem:[#allocation6 + $0x278] ss:$28 sps:$4 sm:$0xff]  }
 0x2d2   :  { %5813 = vmatprep.mubr.bf16.mxu0 %v9415_v56  ;;  %5869 = vmatprep.subr.bf16.mxu1 %v8712_v60  ;;  %v8779_v60 = vld [vmem:[#allocation6 + $0x970] ss:$28 sps:$4 sm:$0xff]  }
 0x2d3   :  { %5783 = vmatprep.subr.bf16.mxu0 %v8715_v17  ;;  %v8784_v17 = vld [vmem:[#allocation6 + $0x244] ss:$28 sps:$4 sm:$0xff]  }
 0x2d4   :  { %5870 = vmatpush1.bf16.msra.mxu1 %v8710_v18  ;;  %v8787_v18 = vld [vmem:[#allocation6 + $0x93c] ss:$28 sps:$4 sm:$0xff]  }
 0x2d5   :  { %5784 = vmatpush1.bf16.msra.mxu0 %v8713_v19  ;;  %5871 = vmatprep.subr.bf16.mxu1 %v8718_v21  ;;  %v8782_v19 = vld [vmem:[#allocation6 + $0x240] ss:$28 sps:$4 sm:$0xff]   ;;  %v8785_v21 = vld [vmem:[#allocation6 + $0x938] ss:$28 sps:$4 sm:$0xff]  }
 0x2d6   :  { %5785 = vmatprep.subr.bf16.mxu0 %v8721_v22  ;;  %v8790_v22 = vld [vmem:[#allocation6 + $0x20c] ss:$28 sps:$4 sm:$0xff]  }
 0x2d8   :  { %5872 = vmatpush1.bf16.msra.mxu1 %v8716_v24  ;;  %v8793_v24 = vld [vmem:[#allocation6 + $0x904] ss:$28 sps:$4 sm:$0xff]  }
 0x2d9   :  { %5786 = vmatpush1.bf16.msra.mxu0 %v8719_v25  ;;  %5873 = vmatprep.subr.bf16.mxu1 %v8724_v26  ;;  %v8788_v25 = vld [vmem:[#allocation6 + $0x208] ss:$28 sps:$4 sm:$0xff]   ;;  %v8791_v26 = vld [vmem:[#allocation6 + $0x900] ss:$28 sps:$4 sm:$0xff]  }
 0x2da   :  { %5787 = vmatprep.subr.bf16.mxu0 %v8727_v27  ;;  %v8796_v27 = vld [vmem:[#allocation6 + $0x1d4] ss:$28 sps:$4 sm:$0xff]  }
 0x2dc   :  { %5874 = vmatpush1.bf16.msra.mxu1 %v8722_v1  ;;  %v8799_v1 = vld [vmem:[#allocation6 + $0x8cc] ss:$28 sps:$4 sm:$0xff]  }
 0x2dd   :  { %5788 = vmatpush1.bf16.msra.mxu0 %v8725_v28  ;;  %5875 = vmatprep.subr.bf16.mxu1 %v8730_v4  ;;  %v8794_v28 = vld [vmem:[#allocation6 + $0x1d0] ss:$28 sps:$4 sm:$0xff]   ;;  %v8797_v4 = vld [vmem:[#allocation6 + $0x8c8] ss:$28 sps:$4 sm:$0xff]  }
 0x2de   :  { %5789 = vmatprep.subr.bf16.mxu0 %v8733_v44  ;;  %v8802_v44 = vld [vmem:[#allocation6 + $0x89c] ss:$28 sps:$4 sm:$0xff]  }
 0x2e0   :  { %5876 = vmatpush1.bf16.msra.mxu1 %v8728_v29  ;;  %v8805_v29 = vld [vmem:[#allocation6 + $0x51c] ss:$28 sps:$4 sm:$0xff]  }
 0x2e1   :  { %5790 = vmatpush1.bf16.msra.mxu0 %v8731_v30  ;;  %5877 = vmatprep.subr.bf16.mxu1 %v8736_v32  ;;  %v8800_v30 = vld [vmem:[#allocation6 + $0x898] ss:$28 sps:$4 sm:$0xff]  }
 0x2e2   :  { %5791 = vmatprep.subr.bf16.mxu0 %v8739_v34  ;;  %v8803_v32 = vld [vmem:[#allocation6 + $0x518] ss:$28 sps:$4 sm:$0xff]   ;;  %v8808_v34 = vld [vmem:[#allocation6 + $0x864] ss:$28 sps:$4 sm:$0xff]  }
 0x2e4   :  { %5878 = vmatpush1.bf16.msra.mxu1 %v8734_v5  ;;  %v8811_v5 = vld [vmem:[#allocation6 + $0x4e4] ss:$28 sps:$4 sm:$0xff]  }
 0x2e5   :  { %5792 = vmatpush1.bf16.msra.mxu0 %v8737_v6  ;;  %5879 = vmatprep.subr.bf16.mxu1 %v8742_v50  ;;  %v8806_v6 = vld [vmem:[#allocation6 + $0x860] ss:$28 sps:$4 sm:$0xff]  }
 0x2e6   :  { %5793 = vmatprep.subr.bf16.mxu0 %v8745_v13  ;;  %v8809_v50 = vld [vmem:[#allocation6 + $0x4e0] ss:$28 sps:$4 sm:$0xff]   ;;  %v8814_v13 = vld [vmem:[#allocation6 + $0x82c] ss:$28 sps:$4 sm:$0xff]  }
 0x2e8   :  { %5880 = vmatpush1.bf16.msra.mxu1 %v8740_v23  ;;  %v8817_v23 = vld [vmem:[#allocation6 + $0x4ac] ss:$28 sps:$4 sm:$0xff]  }
 0x2e9   :  { %5794 = vmatpush1.bf16.msra.mxu0 %v8743_v38  ;;  %5881 = vmatprep.subr.bf16.mxu1 %v8748_v39  ;;  %v8812_v38 = vld [vmem:[#allocation6 + $0x828] ss:$28 sps:$4 sm:$0xff]  }
 0x2ea   :  { %5795 = vmatprep.subr.bf16.mxu0 %v8751_v15  ;;  %v8815_v39 = vld [vmem:[#allocation6 + $0x4a8] ss:$28 sps:$4 sm:$0xff]   ;;  %v8820_v15 = vld [vmem:[#allocation6 + $0x7f4] ss:$28 sps:$4 sm:$0xff]  }
 0x2ec   :  { %5882 = vmatpush1.bf16.msra.mxu1 %v8746_v16  ;;  %v8823_v16 = vld [vmem:[#allocation6 + $0x474] ss:$28 sps:$4 sm:$0xff]  }
 0x2ed   :  { %5796 = vmatpush1.bf16.msra.mxu0 %v8749_v20  ;;  %5883 = vmatprep.subr.bf16.mxu1 %v8754_v40  ;;  %v8818_v20 = vld [vmem:[#allocation6 + $0x7f0] ss:$28 sps:$4 sm:$0xff]  }
 0x2ee   :  { %5797 = vmatprep.subr.bf16.mxu0 %v8757_v43  ;;  %v8821_v40 = vld [vmem:[#allocation6 + $0x470] ss:$28 sps:$4 sm:$0xff]   ;;  %v8826_v43 = vld [vmem:[#allocation6 + $0x7bc] ss:$28 sps:$4 sm:$0xff]  }
 0x2f0   :  { %5884 = vmatpush2.bf16.msra.mxu1 %v8752_v49  ;;  %v8829_v49 = vld [vmem:[#allocation6 + $0x43c] ss:$28 sps:$4 sm:$0xff]  }
 0x2f1   :  { %5798 = vmatpush2.bf16.msra.mxu0 %v8755_v12  ;;  %5885 = vmatprep.subr.bf16.mxu1 %v8760_v57  ;;  %v8824_v12 = vld [vmem:[#allocation6 + $0x7b8] ss:$28 sps:$4 sm:$0xff]  }
 0x2f2   :  { %5799 = vmatprep.subr.bf16.mxu0 %v8763_v51  ;;  %v8827_v57 = vld [vmem:[#allocation6 + $0x438] ss:$28 sps:$4 sm:$0xff]   ;;  %v8832_v51 = vld [vmem:[#allocation6 + $0x784] ss:$28 sps:$4 sm:$0xff]  }
 0x2f4   :  { %5886 = vmatpush2.bf16.msra.mxu1 %v8758_v52  ;;  %v8835_v52 = vld [vmem:[#allocation6 + $0x404] ss:$28 sps:$4 sm:$0xff]  }
 0x2f5   :  { %5800 = vmatpush2.bf16.msra.mxu0 %v8761_v37  ;;  %5887 = vmatprep.subr.bf16.mxu1 %v8766_v53  ;;  %v8830_v37 = vld [vmem:[#allocation6 + $0x780] ss:$28 sps:$4 sm:$0xff]  }
 0x2f6   :  { %5801 = vmatprep.subr.bf16.mxu0 %v8769_v54  ;;  %v8833_v53 = vld [vmem:[#allocation6 + $0x400] ss:$28 sps:$4 sm:$0xff]   ;;  %v8838_v54 = vld [vmem:[#allocation6 + $0x74c] ss:$28 sps:$4 sm:$0xff]  }
 0x2f8   :  { %5888 = vmatpush2.bf16.msra.mxu1 %v8764_v61  ;;  %v8841_v61 = vld [vmem:[#allocation6 + $0x3cc] ss:$28 sps:$4 sm:$0xff]  }
 0x2f9   :  { %5802 = vmatpush2.bf16.msra.mxu0 %v8767_v63  ;;  %5889 = vmatprep.subr.bf16.mxu1 %v8772_v33  ;;  %v8836_v63 = vld [vmem:[#allocation6 + $0x748] ss:$28 sps:$4 sm:$0xff]  }
 0x2fa   :  { %5803 = vmatprep.subr.bf16.mxu0 %v8775_v0  ;;  %v8839_v33 = vld [vmem:[#allocation6 + $0x3c8] ss:$28 sps:$4 sm:$0xff]   ;;  %v8844_v0 = vld [vmem:[#allocation6 + $0x714] ss:$28 sps:$4 sm:$0xff]  }
 0x2fc   :  { %5890 = vmatpush2.bf16.msra.mxu1 %v8770_v2  ;;  %v8847_v2 = vld [vmem:[#allocation6 + $0x394] ss:$28 sps:$4 sm:$0xff]  }
 0x2fd   :  { %5804 = vmatpush2.bf16.msra.mxu0 %v8773_v36  ;;  %5891 = vmatprep.subr.bf16.mxu1 %v8778_v9  ;;  %v8842_v36 = vld [vmem:[#allocation6 + $0x710] ss:$28 sps:$4 sm:$0xff]  }
 0x2fe   :  { %5805 = vmatprep.subr.bf16.mxu0 %v8781_v11  ;;  %v8845_v9 = vld [vmem:[#allocation6 + $0x390] ss:$28 sps:$4 sm:$0xff]   ;;  %v8850_v11 = vld [vmem:[#allocation6 + $0xa5c] ss:$28 sps:$4 sm:$0xff]  }
 0x300   :  { %5892 = vmatpush2.bf16.msra.mxu1 %v8776_v14  ;;  %v8853_v14 = vld [vmem:[#allocation6 + $0x6dc] ss:$28 sps:$4 sm:$0xff]  }
 0x301   :  { %5806 = vmatpush2.bf16.msra.mxu0 %v8779_v60  ;;  %5893 = vmatprep.subr.bf16.mxu1 %v8784_v17  ;;  %v8848_v60 = vld [vmem:[#allocation6 + $0xa58] ss:$28 sps:$4 sm:$0xff]  }
 0x302   :  { %5807 = vmatprep.subr.bf16.mxu0 %v8787_v18  ;;  %v8851_v17 = vld [vmem:[#allocation6 + $0x6d8] ss:$28 sps:$4 sm:$0xff]   ;;  %v8856_v18 = vld [vmem:[#allocation6 + $0xa24] ss:$28 sps:$4 sm:$0xff]  }
 0x304   :  { %5894 = vmatpush2.bf16.msra.mxu1 %v8782_v19  ;;  %v8859_v19 = vld [vmem:[#allocation6 + $0x6a4] ss:$28 sps:$4 sm:$0xff]  }
 0x305   :  { %5808 = vmatpush2.bf16.msra.mxu0 %v8785_v21  ;;  %5895 = vmatprep.subr.bf16.mxu1 %v8790_v22  ;;  %v8854_v21 = vld [vmem:[#allocation6 + $0xa20] ss:$28 sps:$4 sm:$0xff]  }
 0x306   :  { %5809 = vmatprep.subr.bf16.mxu0 %v8793_v24  ;;  %v8857_v22 = vld [vmem:[#allocation6 + $0x6a0] ss:$28 sps:$4 sm:$0xff]   ;;  %v8862_v24 = vld [vmem:[#allocation6 + $0x9ec] ss:$28 sps:$4 sm:$0xff]  }
 0x308   :  { %5896 = vmatpush2.bf16.msra.mxu1 %v8788_v25  ;;  %v8865_v25 = vld [vmem:[#allocation6 + $0x66c] ss:$28 sps:$4 sm:$0xff]  }
 0x309   :  { %5810 = vmatpush2.bf16.msra.mxu0 %v8791_v26  ;;  %5897 = vmatprep.subr.bf16.mxu1 %v8796_v27  ;;  %v8860_v26 = vld [vmem:[#allocation6 + $0x9e8] ss:$28 sps:$4 sm:$0xff]  }
 0x30a   :  { %5811 = vmatprep.subr.bf16.mxu0 %v8799_v1  ;;  %v8863_v27 = vld [vmem:[#allocation6 + $0x668] ss:$28 sps:$4 sm:$0xff]   ;;  %v8868_v1 = vld [vmem:[#allocation6 + $0x9b4] ss:$28 sps:$4 sm:$0xff]  }
 0x30c   :  { %5898 = vmatpush2.bf16.msra.mxu1 %v8794_v28  ;;  %v8871_v28 = vld [vmem:[#allocation6 + $0x634] ss:$28 sps:$4 sm:$0xff]  }
 0x30d   :  { %5812 = vmatpush2.bf16.msra.mxu0 %v8797_v4  ;;  %5953 = vmatprep.subr.bf16.mxu1 %v8802_v44  ;;  %v8866_v4 = vld [vmem:[#allocation6 + $0x9b0] ss:$28 sps:$4 sm:$0xff]  }
 0x30e   :  { %5910 = vmatprep.subr.bf16.mxu0 %v8805_v29  ;;  %v8869_v44 = vld [vmem:[#allocation6 + $0x630] ss:$28 sps:$4 sm:$0xff]   ;;  %v8874_v29 = vld [vmem:[#allocation6 + $0x97c] ss:$28 sps:$4 sm:$0xff]  }
 0x30f   :  { %5900 = vmatmul.mubr.bf16.vlgmr.msra.gmra.mxu1 %v9343_v55 }
 0x310   :  { %5814 = vmatmul.mubr.bf16.vlgmr.msra.gmra.mxu0 %v9417_v62  ;;  %5954 = vmatpush1.bf16.msra.mxu1 %v8800_v30  ;;  %v8877_v30 = vld [vmem:[#allocation6 + $0x5fc] ss:$28 sps:$4 sm:$0xff]  }
 0x311   :  { %5985 = vmatprep.mubr.bf16.mxu1 %v9415_v56  ;;  %5911 = vmatpush1.bf16.msra.mxu0 %v8803_v32  ;;  %v8872_v32 = vld [vmem:[#allocation6 + $0x978] ss:$28 sps:$4 sm:$0xff]  }
 0x312   :  { %5942 = vmatprep.mubr.bf16.mxu0 %v9375_v47  ;;  %5955 = vmatprep.subr.bf16.mxu1 %v8808_v34  ;;  %v8875_v34 = vld [vmem:[#allocation6 + $0x5f8] ss:$28 sps:$4 sm:$0xff]  }
 0x313   :  { %5912 = vmatprep.subr.bf16.mxu0 %v8811_v5  ;;  %v8880_v5 = vld [vmem:[#allocation6 + $0x944] ss:$28 sps:$4 sm:$0xff]  }
 0x314   :  { %5956 = vmatpush1.bf16.msra.mxu1 %v8806_v6  ;;  %v8883_v6 = vld [vmem:[#allocation6 + $0x5c4] ss:$28 sps:$4 sm:$0xff]  }
 0x315   :  { %5913 = vmatpush1.bf16.msra.mxu0 %v8809_v50  ;;  %5957 = vmatprep.subr.bf16.mxu1 %v8814_v13  ;;  %v8878_v50 = vld [vmem:[#allocation6 + $0x940] ss:$28 sps:$4 sm:$0xff]  }
 0x316   :  { %5914 = vmatprep.subr.bf16.mxu0 %v8817_v23  ;;  %v8881_v13 = vld [vmem:[#allocation6 + $0x5c0] ss:$28 sps:$4 sm:$0xff]   ;;  %v8886_v23 = vld [vmem:[#allocation6 + $0x90c] ss:$28 sps:$4 sm:$0xff]  }
 0x318   :  { %5958 = vmatpush1.bf16.msra.mxu1 %v8812_v38  ;;  %v8889_v38 = vld [vmem:[#allocation6 + $0x58c] ss:$28 sps:$4 sm:$0xff]  }
 0x319   :  { %5915 = vmatpush1.bf16.msra.mxu0 %v8815_v39  ;;  %5959 = vmatprep.subr.bf16.mxu1 %v8820_v15  ;;  %v8884_v39 = vld [vmem:[#allocation6 + $0x908] ss:$28 sps:$4 sm:$0xff]  }
 0x31a   :  { %5916 = vmatprep.subr.bf16.mxu0 %v8823_v16  ;;  %v8887_v15 = vld [vmem:[#allocation6 + $0x588] ss:$28 sps:$4 sm:$0xff]   ;;  %v8892_v16 = vld [vmem:[#allocation6 + $0x8d4] ss:$28 sps:$4 sm:$0xff]  }
 0x31c   :  { %5960 = vmatpush1.bf16.msra.mxu1 %v8818_v20  ;;  %v8895_v20 = vld [vmem:[#allocation6 + $0x554] ss:$28 sps:$4 sm:$0xff]  }
 0x31d   :  { %5917 = vmatpush1.bf16.msra.mxu0 %v8821_v40  ;;  %5961 = vmatprep.subr.bf16.mxu1 %v8826_v43  ;;  %v8890_v40 = vld [vmem:[#allocation6 + $0x8d0] ss:$28 sps:$4 sm:$0xff]  }
 0x31e   :  { %5918 = vmatprep.subr.bf16.mxu0 %v8829_v49  ;;  %v8893_v43 = vld [vmem:[#allocation6 + $0x550] ss:$28 sps:$4 sm:$0xff]   ;;  %v8896_v49 = vld [vmem:[#allocation6 + $0x6e0] ss:$28 sps:$4 sm:$0xff]  }
 0x320   :  { %5962 = vmatpush1.bf16.msra.mxu1 %v8824_v12  ;;  %v8899_v12 = vld [vmem:[#allocation6 + $0xc1c] ss:$28 sps:$4 sm:$0xff]  }
 0x321   :  { %5919 = vmatpush1.bf16.msra.mxu0 %v8827_v57  ;;  %5963 = vmatprep.subr.bf16.mxu1 %v8832_v51  ;;  %v8900_v57 = vld [vmem:[#allocation6 + $0x520] ss:$28 sps:$4 sm:$0xff]   ;;  %v8897_v51 = vld [vmem:[#allocation6 + $0xc18] ss:$28 sps:$4 sm:$0xff]  }
 0x322   :  { %5920 = vmatprep.subr.bf16.mxu0 %v8835_v52  ;;  %v8901_v52 = vld [vmem:[#allocation6 + $0x6a8] ss:$28 sps:$4 sm:$0xff]  }
 0x324   :  { %5964 = vmatpush1.bf16.msra.mxu1 %v8830_v37  ;;  %v8904_v37 = vld [vmem:[#allocation6 + $0xbe4] ss:$28 sps:$4 sm:$0xff]  }
 0x325   :  { %5921 = vmatpush1.bf16.msra.mxu0 %v8833_v53  ;;  %5965 = vmatprep.subr.bf16.mxu1 %v8838_v54  ;;  %v8905_v53 = vld [vmem:[#allocation6 + $0x4e8] ss:$28 sps:$4 sm:$0xff]   ;;  %v8902_v54 = vld [vmem:[#allocation6 + $0xbe0] ss:$28 sps:$4 sm:$0xff]  }
 0x326   :  { %5922 = vmatprep.subr.bf16.mxu0 %v8841_v61  ;;  %v8906_v61 = vld [vmem:[#allocation6 + $0x670] ss:$28 sps:$4 sm:$0xff]  }
 0x328   :  { %5966 = vmatpush1.bf16.msra.mxu1 %v8836_v63  ;;  %v8909_v63 = vld [vmem:[#allocation6 + $0xbac] ss:$28 sps:$4 sm:$0xff]  }
 0x329   :  { %5923 = vmatpush1.bf16.msra.mxu0 %v8839_v33  ;;  %5967 = vmatprep.subr.bf16.mxu1 %v8844_v0  ;;  %v8910_v33 = vld [vmem:[#allocation6 + $0x4b0] ss:$28 sps:$4 sm:$0xff]   ;;  %v8907_v0 = vld [vmem:[#allocation6 + $0xba8] ss:$28 sps:$4 sm:$0xff]  }
 0x32a   :  { %5924 = vmatprep.subr.bf16.mxu0 %v8847_v2  ;;  %v8911_v2 = vld [vmem:[#allocation6 + $0x638] ss:$28 sps:$4 sm:$0xff]  }
 0x32c   :  { %5968 = vmatpush1.bf16.msra.mxu1 %v8842_v36  ;;  %v8914_v36 = vld [vmem:[#allocation6 + $0xb74] ss:$28 sps:$4 sm:$0xff]  }
 0x32d   :  { %5925 = vmatpush1.bf16.msra.mxu0 %v8845_v9  ;;  %5969 = vmatprep.subr.bf16.mxu1 %v8850_v11  ;;  %v8915_v9 = vld [vmem:[#allocation6 + $0x478] ss:$28 sps:$4 sm:$0xff]   ;;  %v8916_v11 = vld [vmem:[#allocation6 + $0x600] ss:$28 sps:$4 sm:$0xff]  }
 0x32e   :  { %5926 = vmatprep.subr.bf16.mxu0 %v8853_v14  ;;  %v8919_v14 = vld [vmem:[#allocation6 + $0xb3c] ss:$28 sps:$4 sm:$0xff]  }
 0x330   :  { %5970 = vmatpush2.bf16.msra.mxu1 %v8848_v60  ;;  %v8920_v60 = vld [vmem:[#allocation6 + $0x440] ss:$28 sps:$4 sm:$0xff]  }
 0x331   :  { %5927 = vmatpush2.bf16.msra.mxu0 %v8851_v17  ;;  %5971 = vmatprep.subr.bf16.mxu1 %v8856_v18  ;;  %v8921_v17 = vld [vmem:[#allocation6 + $0x5c8] ss:$28 sps:$4 sm:$0xff]  }
 0x332   :  { %5928 = vmatprep.subr.bf16.mxu0 %v8859_v19  ;;  %v8924_v18 = vld [vmem:[#allocation6 + $0xb04] ss:$28 sps:$4 sm:$0xff]  }
 0x333   :  { %v8925_v19 = vld [vmem:[#allocation6 + $0x408] ss:$28 sps:$4 sm:$0xff]  }
 0x334   :  { %5972 = vmatpush2.bf16.msra.mxu1 %v8854_v21  ;;  %v8922_v21 = vld [vmem:[#allocation6 + $0xb00] ss:$28 sps:$4 sm:$0xff]  }
 0x335   :  { %5929 = vmatpush2.bf16.msra.mxu0 %v8857_v22  ;;  %5973 = vmatprep.subr.bf16.mxu1 %v8862_v24  ;;  %v8926_v22 = vld [vmem:[#allocation6 + $0x590] ss:$28 sps:$4 sm:$0xff]  }
 0x336   :  { %5930 = vmatprep.subr.bf16.mxu0 %v8865_v25  ;;  %v8929_v24 = vld [vmem:[#allocation6 + $0xacc] ss:$28 sps:$4 sm:$0xff]  }
 0x337   :  { %v8930_v25 = vld [vmem:[#allocation6 + $0x3d0] ss:$28 sps:$4 sm:$0xff]  }
 0x338   :  { %5974 = vmatpush2.bf16.msra.mxu1 %v8860_v26  ;;  %v8927_v26 = vld [vmem:[#allocation6 + $0xac8] ss:$28 sps:$4 sm:$0xff]  }
 0x339   :  { %5931 = vmatpush2.bf16.msra.mxu0 %v8863_v27  ;;  %5975 = vmatprep.subr.bf16.mxu1 %v8868_v1  ;;  %v8931_v27 = vld [vmem:[#allocation6 + $0x558] ss:$28 sps:$4 sm:$0xff]  }
 0x33a   :  { %5932 = vmatprep.subr.bf16.mxu0 %v8871_v28  ;;  %v8934_v1 = vld [vmem:[#allocation6 + $0xa94] ss:$28 sps:$4 sm:$0xff]  }
 0x33b   :  { %v8935_v28 = vld [vmem:[#allocation6 + $0x398] ss:$28 sps:$4 sm:$0xff]  }
 0x33c   :  { %5976 = vmatpush2.bf16.msra.mxu1 %v8866_v4  ;;  %v8932_v4 = vld [vmem:[#allocation6 + $0xa90] ss:$28 sps:$4 sm:$0xff]  }
 0x33d   :  { %5933 = vmatpush2.bf16.msra.mxu0 %v8869_v44  ;;  %5977 = vmatprep.subr.bf16.mxu1 %v8874_v29  ;;  %v8936_v44 = vld [vmem:[#allocation6 + $0x360] ss:$28 sps:$4 sm:$0xff]  }
 0x33e   :  { %5934 = vmatprep.subr.bf16.mxu0 %v8877_v30  ;;  %v8937_v29 = vld [vmem:[#allocation6 + $0xc20] ss:$28 sps:$4 sm:$0xff]  }
 0x33f   :  { %v8938_v30 = vld [vmem:[#allocation6 + $0x1a0] ss:$28 sps:$4 sm:$0xff]  }
 0x340   :  { %5978 = vmatpush2.bf16.msra.mxu1 %v8872_v32  ;;  %v8939_v32 = vld [vmem:[#allocation6 + $0x328] ss:$28 sps:$4 sm:$0xff]  }
 0x341   :  { %5935 = vmatpush2.bf16.msra.mxu0 %v8875_v34  ;;  %5979 = vmatprep.subr.bf16.mxu1 %v8880_v5  ;;  %v8940_v34 = vld [vmem:[#allocation6 + $0xbe8] ss:$28 sps:$4 sm:$0xff]  }
 0x342   :  { %5936 = vmatprep.subr.bf16.mxu0 %v8883_v6  ;;  %v8941_v5 = vld [vmem:[#allocation6 + $0x168] ss:$28 sps:$4 sm:$0xff]   ;;  %v8942_v6 = vld [vmem:[#allocation6 + $0x2f0] ss:$28 sps:$4 sm:$0xff]  }
 0x344   :  { %5980 = vmatpush2.bf16.msra.mxu1 %v8878_v50  ;;  %v8943_v50 = vld [vmem:[#allocation6 + $0xbb0] ss:$28 sps:$4 sm:$0xff]  }
 0x345   :  { %5937 = vmatpush2.bf16.msra.mxu0 %v8881_v13  ;;  %5981 = vmatprep.subr.bf16.mxu1 %v8886_v23  ;;  %v8945_v13 = vld [vmem:[#allocation6 + $0x2b8] ss:$28 sps:$4 sm:$0xff]  }
 0x346   :  { %5938 = vmatprep.subr.bf16.mxu0 %v8889_v38  ;;  %v8946_v23 = vld [vmem:[#allocation6 + $0xb78] ss:$28 sps:$4 sm:$0xff]   ;;  %v8948_v38 = vld [vmem:[#allocation6 + $0x280] ss:$28 sps:$4 sm:$0xff]  }
 0x348   :  { %5982 = vmatpush2.bf16.msra.mxu1 %v8884_v39  ;;  %v8949_v39 = vld [vmem:[#allocation6 + $0xb40] ss:$28 sps:$4 sm:$0xff]  }
 0x349   :  { %5939 = vmatpush2.bf16.msra.mxu0 %v8887_v15  ;;  %5983 = vmatprep.subr.bf16.mxu1 %v8892_v16  ;;  %v8950_v15 = vld [vmem:[#allocation6 + $0xc0] ss:$28 sps:$4 sm:$0xff]   ;;  %v8951_v16 = vld [vmem:[#allocation6 + $0x248] ss:$28 sps:$4 sm:$0xff]  }
 0x34a   :  { %5940 = vmatprep.subr.bf16.mxu0 %v8895_v20  ;;  %v8952_v20 = vld [vmem:[#allocation6 + $0xb08] ss:$28 sps:$4 sm:$0xff]  }
 0x34c   :  { %5984 = vmatpush2.bf16.msra.mxu1 %v8890_v40  ;;  %v8953_v40 = vld [vmem:[#allocation6 + $0x88] ss:$28 sps:$4 sm:$0xff]  }
 0x34d   :  { %5941 = vmatpush2.bf16.msra.mxu0 %v8893_v43  ;;  %7739 = vmatprep.subr.bf16.mxu1 %v8896_v49  ;;  %v8954_v43 = vld [vmem:[#allocation6 + $0x210] ss:$28 sps:$4 sm:$0xff]  }
 0x34e   :  { %5996 = vmatprep.subr.bf16.mxu0 %v8899_v12  ;;  %v8955_v49 = vld [vmem:[#allocation6 + $0xad0] ss:$28 sps:$4 sm:$0xff]  }
 0x34f   :  { %5986 = vmatmul.mubr.bf16.vlgmr.msra.gmra.mxu1 %v9417_v62  ;;  %v8956_v12 = vld [vmem:[#allocation6 + $0x50] ss:$28 sps:$4 sm:$0xff]  }
 0x350   :  { %5943 = vmatmul.mubr.bf16.vlgmr.msra.gmra.mxu0 %v9385_v46  ;;  %7740 = vmatpush3.bf16.msra.mxu1 %v8900_v57  ;;  %v8957_v57 = vld [vmem:[#allocation6 + $0x1d8] ss:$28 sps:$4 sm:$0xff]  }
 0x351   :  { %6112 = vmatprep.mubr.bf16.mxu1 %v9375_v47  ;;  %5997 = vmatpush1.bf16.msra.mxu0 %v8897_v51  ;;  %v8912_v47 = vld [vmem:[#allocation6 + $0xb70] ss:$28 sps:$4 sm:$0xff]   ;;  %v9465_v51 = vpop.f32.mrf.mxu1 }
 0x352   :  { %7741 = vmatprep.subr.bf16.mxu1 %v8901_v52  ;;  %5998 = vmatprep.subr.bf16.mxu0 %v8904_v37  ;;  %v8958_v52 = vld [vmem:[#allocation6 + $0xa98] ss:$28 sps:$4 sm:$0xff]  }
 0x353   :  { %6028 = vmatprep.mubr.bf16.mxu0 %v9171_v31  ;;  %v8917_v31 = vld [vmem:[#allocation6 + $0xb38] ss:$28 sps:$4 sm:$0xff]  }
 0x354   :  { %7742 = vmatpush3.bf16.msra.mxu1 %v8905_v53  ;;  %v8959_v37 = vld [vmem:[#allocation6 + $0x18] ss:$28 sps:$4 sm:$0xff]   ;;  %v8985_v53 = vld [vmem:[#allocation9 + $0xf8] sm:$0xff]  }
 0x355   :  { %5999 = vmatpush1.bf16.msra.mxu0 %v8902_v54  ;;  %7743 = vmatprep.subr.bf16.mxu1 %v8906_v61  ;;  %v9468_v54 = vpop.f32.mrf.mxu0  ;;  %v8960_v61 = vld [vmem:[#allocation6 + $0xa60] ss:$28 sps:$4 sm:$0xff]  }
 0x356   :  { %6000 = vmatprep.subr.bf16.mxu0 %v8909_v63  ;;  %v9470_v63 = vpop.f32.mrf.mxu1 }
 0x358   :  { %7744 = vmatpush3.bf16.msra.mxu1 %v8910_v33  ;;  %v8987_v33 = vld [vmem:[#allocation9 + $0xb8] sm:$0xff]  }
 0x359   :  { %6001 = vmatpush1.bf16.msra.mxu0 %v8907_v0  ;;  %7745 = vmatprep.subr.bf16.mxu1 %v8911_v2  ;;  %v8961_v0 = vld [vmem:[#allocation6 + $0x8a0] ss:$28 sps:$4 sm:$0xff]   ;;  %v9472_v2 = vpop.f32.mrf.mxu0 }
 0x35a   :  { %6002 = vmatprep.subr.bf16.mxu0 %v8914_v36  ;;  %v8962_v36 = vld [vmem:[#allocation6 + $0xa28] ss:$28 sps:$4 sm:$0xff]  }
 0x35c   :  { %7746 = vmatpush3.bf16.msra.mxu1 %v8915_v9  ;;  %v8989_v9 = vld [vmem:[#allocation9 + $0xf0] sm:$0xff]  }
 0x35d   :  { %6003 = vmatpush1.bf16.msra.mxu0 %v8912_v47  ;;  %7747 = vmatprep.subr.bf16.mxu1 %v8916_v11  ;;  %v9475_v47 = vpop.f32.mrf.mxu1  ;;  %v8991_v11 = vld [vmem:[#allocation9 + $0xb0] sm:$0xff]  }
 0x35e   :  { %6004 = vmatprep.subr.bf16.mxu0 %v8919_v14  ;;  %v8963_v14 = vld [vmem:[#allocation6 + $0x868] ss:$28 sps:$4 sm:$0xff]  }
 0x360   :  { %7748 = vmatpush3.bf16.msra.mxu1 %v8920_v60  ;;  %v8993_v60 = vld [vmem:[#allocation9 + $0xe8] sm:$0xff]  }
 0x361   :  { %6005 = vmatpush1.bf16.msra.mxu0 %v8917_v31  ;;  %7749 = vmatprep.subr.bf16.mxu1 %v8921_v17  ;;  %v9479_v31 = vpop.f32.mrf.mxu0  ;;  %v8964_v17 = vld [vmem:[#allocation6 + $0x9f0] ss:$28 sps:$4 sm:$0xff]  }
 0x362   :  { %6006 = vmatprep.subr.bf16.mxu0 %v8924_v18  ;;  %v5563_v18 = vpop.f32.mrf.mxu1 }
 0x364   :  { %7750 = vmatpush3.bf16.msra.mxu1 %v8925_v19  ;;  %v8995_v19 = vld [vmem:[#allocation9 + $0xa8] sm:$0xff]  }
 0x365   :  { %6007 = vmatpush1.bf16.msra.mxu0 %v8922_v21  ;;  %7751 = vmatprep.subr.bf16.mxu1 %v8926_v22  ;;  %v8997_v21 = vld [vmem:[#allocation9 + $0xe0] sm:$0xff]   ;;  %v9481_v22 = vpop.f32.mrf.mxu1 }
 0x366   :  { %6008 = vmatprep.subr.bf16.mxu0 %v8929_v24  ;;  %v8966_v24 = vld [vmem:[#allocation6 + $0x9b8] ss:$28 sps:$4 sm:$0xff]  }
 0x368   :  { %7752 = vmatpush3.bf16.msra.mxu1 %v8930_v25  ;;  %v8999_v25 = vld [vmem:[#allocation9 + $0xa0] sm:$0xff]  }
 0x369   :  { %6009 = vmatpush1.bf16.msra.mxu0 %v8927_v26  ;;  %7753 = vmatprep.subr.bf16.mxu1 %v8931_v27  ;;  %v8967_v26 = vld [vmem:[#allocation6 + $0x7f8] ss:$28 sps:$4 sm:$0xff]   ;;  %v9000_v27 = vld [vmem:[#allocation9 + $0xd8] sm:$0xff]  }
 0x36a   :  { %6010 = vmatprep.subr.bf16.mxu0 %v8934_v1  ;;  %v5645_v1 = vpop.f32.mrf.mxu1 }
 0x36c   :  { %7754 = vmatpush3.bf16.msra.mxu1 %v8935_v28  ;;  %v8968_v28 = vld [vmem:[#allocation6 + $0x980] ss:$28 sps:$4 sm:$0xff]  }
 0x36d   :  { %6011 = vmatpush1.bf16.msra.mxu0 %v8932_v4  ;;  %7873 = vmatprep.subr.bf16.mxu1 %v9172_v41 }
 0x36e   :  { %7717 = vmatprep.subr.bf16.mxu0 %v8936_v44  ;;  %v9001_v44 = vld [vmem:[#allocation9 + $0x98] sm:$0xff]  }
 0x36f   :  { %6113 = vmatmul.mubr.bf16.vlgmr.msra.gmra.mxu1 %v9385_v46  ;;  %v8944_v46 = vld [vmem:[#allocation6 + $0x130] ss:$28 sps:$4 sm:$0xff]  }
 0x370   :  { %6029 = vmatmul.mubr.bf16.vlgmr.msra.gmra.mxu0 %v9435_v45  ;;  %7874 = vmatpush3.bf16.msra.mxu1 %v8937_v29  ;;  %v8969_v29 = vld [vmem:[#allocation6 + $0x7c0] ss:$28 sps:$4 sm:$0xff]  }
 0x371   :  { %7718 = vmatpush3.bf16.msra.mxu0 %v8938_v30  ;;  %6071 = vmatprep.mubr.bf16.mxu0 %v9345_v59  ;;  %v8947_v59 = vld [vmem:[#allocation6 + $0xf8] ss:$28 sps:$4 sm:$0xff]  }
 0x372   :  { %7875 = vmatprep.subr.bf16.mxu1 %v9172_v41  ;;  %7719 = vmatprep.subr.bf16.mxu0 %v8939_v32  ;;  %v9002_v30 = vld [vmem:[#allocation9 + $0xd0] sm:$0xff]   ;;  %v9485_v32 = vld [vmem:[#allocation7] sm:$0xff] }
 0x373   :  { %7889 = vmatprep.mubr.msk.bf16.mxu1 %vm9173_vm1, %v9172_v41 }
 0x374   :  { %7876 = vmatpush3.bf16.msra.mxu1 %v8940_v34  ;;  %v9487_v34 = vpop.f32.mrf.mxu1 }
 0x375   :  { %7720 = vmatpush3.bf16.msra.mxu0 %v8941_v5  ;;  %7877 = vmatprep.subr.bf16.mxu1 %v9172_v41  ;;  %v8970_v5 = vld [vmem:[#allocation6 + $0x948] ss:$28 sps:$4 sm:$0xff]  }
 0x376   :  { %7721 = vmatprep.subr.bf16.mxu0 %v8942_v6  ;;  %v3479_v6 = vrot.slane %v9485_v32, %v524_v3 }
 0x378   :  { %7878 = vmatpush3.bf16.msra.mxu1 %v8943_v50 }
 0x379   :  { %7722 = vmatpush3.bf16.msra.mxu0 %v8944_v46  ;;  %7879 = vmatprep.subr.bf16.mxu1 %v9172_v41  ;;  %v9003_v46 = vld [vmem:[#allocation9 + $0x90] sm:$0xff]  }
 0x37a   :  { %7723 = vmatprep.subr.bf16.mxu0 %v8945_v13  ;;  %v5564_v13 = vadd.f32 %v5563_v18, %v3479_v6  ;;  %v8982_v18 = vld [vmem:[#allocation9 + $0x60] sm:$0xff]  }
 0x37c   :  { %7880 = vmatpush3.bf16.msra.mxu1 %v8946_v23  ;;  %v8971_v23 = vld [vmem:[#allocation6 + $0x788] ss:$28 sps:$4 sm:$0xff]  }
 0x37d   :  { %7724 = vmatpush3.bf16.msra.mxu0 %v8947_v59  ;;  %7881 = vmatprep.subr.bf16.mxu1 %v9172_v41  ;;  %v9004_v59 = vld [vmem:[#allocation9 + $0xc8] sm:$0xff]  }
 0x37e   :  { %7725 = vmatprep.subr.bf16.mxu0 %v8948_v38  ;;  %v5649_v38 = vpop.f32.mrf.mxu1 }
 0x380   :  { %7882 = vmatpush3.bf16.msra.mxu1 %v8949_v39  ;;  %v8972_v39 = vld [vmem:[#allocation6 + $0x910] ss:$28 sps:$4 sm:$0xff]  }
 0x381   :  { %7726 = vmatpush3.bf16.msra.mxu0 %v8950_v15  ;;  %7883 = vmatprep.subr.bf16.mxu1 %v9172_v41  ;;  %v5560_v15 = vadd.f32 %v9470_v63, %v3479_v6  ;;  %v8975_v63 = vld [vmem:[#allocation6 + $0x718] ss:$28 sps:$4 sm:$0xff]  }
 0x382   :  { %7727 = vmatprep.subr.bf16.mxu0 %v8951_v16 }
 0x383   :  { %v5603_v3 = vadd.f32 %v9472_v2, %v5560_v15 }
 0x384   :  { %7884 = vmatpush3.bf16.msra.mxu1 %v8952_v20 }
 0x385   :  { %7728 = vmatpush3.bf16.msra.mxu0 %v8953_v40  ;;  %7885 = vmatprep.subr.bf16.mxu1 %v9172_v41  ;;  %v9005_v40 = vld [vmem:[#allocation9 + $0x88] sm:$0xff]  }
 0x386   :  { %7729 = vmatprep.subr.bf16.mxu0 %v8954_v43 }
 0x388   :  { %7886 = vmatpush3.bf16.msra.mxu1 %v8955_v49  ;;  %v8973_v49 = vld [vmem:[#allocation6 + $0x750] ss:$28 sps:$4 sm:$0xff]  }
 0x389   :  { %7730 = vmatpush3.bf16.msra.mxu0 %v8956_v12  ;;  %7887 = vmatprep.subr.bf16.mxu1 %v9172_v41  ;;  %v9006_v12 = vld [vmem:[#allocation9 + $0xc0] sm:$0xff]  }
 0x38a   :  { %7731 = vmatprep.subr.bf16.mxu0 %v8957_v57  ;;  %v8974_v57 = vld [vmem:[#allocation6 + $0x8d8] ss:$28 sps:$4 sm:$0xff]  }
 0x38c   :  { %7888 = vmatpush3.bf16.msra.mxu1 %v8958_v52  ;;  %v5646_v52 = vadd.f32 %v5645_v1, %v5603_v3 }
 0x38d   :  { %7732 = vmatpush3.bf16.msra.mxu0 %v8959_v37  ;;  %7814 = vmatprep.subr.bf16.mxu1 %v8985_v53  ;;  %v9007_v53 = vld [vmem:[#allocation9 + $0x80] sm:$0xff]  }
 0x38e   :  { %7761 = vmatprep.subr.bf16.mxu0 %v8960_v61 }
 0x38f   :  { %7890 = vmatmul.mubr.bf16.vlgmr.msra.gmra.mxu1 %v9435_v45  ;;  %v8965_v45 = vld [vmem:[#allocation6 + $0x830] ss:$28 sps:$4 sm:$0xff]  }
 0x390   :  { %6072 = vmatmul.mubr.bf16.vlgmr.msra.gmra.mxu0 %v9343_v55  ;;  %7815 = vmatpush3.bf16.msra.mxu1 %v8987_v33  ;;  %v5606_v55 = vpop.f32.mrf.mxu0  ;;  %v8976_v33 = vld [vmem:[#allocation9 + $0x78] sm:$0xff]  }
 0x391   :  { %7762 = vmatpush3.bf16.msra.mxu0 %v8961_v0  ;;  %6153 = vmatprep.mubr.bf16.mxu0 %v9415_v56  ;;  %v5607_v16 = vadd.f32 %v5606_v55, %v5564_v13  ;;  %v3475_v55 = vrot.slane %v9485_v32, %v520_v42  ;;  %v8994_v42 = vld [vmem:[#allocation9 + $0x8] sm:$0xff]   ;;  %v3487_v13 = vrot.slane %v9485_v32, %v532_v58  ;;  %v9010_v58 = vld [vmem:[#allocation9 + $0x170] sm:$0xff]  }
 0x392   :  { %7763 = vmatprep.subr.bf16.mxu0 %v8962_v36  ;;  %7816 = vmatprep.subr.bf16.mxu1 %v8989_v9  ;;  %v9483_v56 = vpop.f32.mrf.mxu0  ;;  %v8977_v36 = vld [vmem:[#allocation9 + $0x38] sm:$0xff]   ;;  %v8978_v9 = vld [vmem:[#allocation9 + $0x70] sm:$0xff]  }
 0x393   :  { %v5650_v43 = vadd.f32 %v5649_v38, %v5607_v16 }
 0x394   :  { %7817 = vmatpush3.bf16.msra.mxu1 %v8991_v11  ;;  %v5688_v4 = vpop.f32.mrf.mxu0 }
 0x395   :  { %7764 = vmatpush3.bf16.msra.mxu0 %v8963_v14  ;;  %7818 = vmatprep.subr.bf16.mxu1 %v8993_v60  ;;  %v5689_v61 = vadd.f32 %v5688_v4, %v5646_v52  ;;  %v8979_v14 = vld [vmem:[#allocation9 + $0x30] sm:$0xff]   ;;  %v8980_v60 = vld [vmem:[#allocation9 + $0x68] sm:$0xff]  }
 0x396   :  { %7765 = vmatprep.subr.bf16.mxu0 %v8964_v17  ;;  %v9492_v50 = vpop.f32.mrf.mxu0  ;;  %v8981_v17 = vld [vmem:[#allocation9 + $0x28] sm:$0xff]  }
 0x397   :  { %v6204_v2 = vmax.f32 %v5689_v61, 0.0 }
 0x398   :  { %7819 = vmatpush3.bf16.msra.mxu1 %v8995_v19  ;;  %v5692_v20 = vpop.f32.mrf.mxu0  ;;  %v8983_v19 = vld [vmem:[#allocation9 + $0x20] sm:$0xff]  }
 0x399   :  { %7766 = vmatpush3.bf16.msra.mxu0 %v8965_v45  ;;  %7820 = vmatprep.subr.bf16.mxu1 %v8997_v21  ;;  %v5693_v37 = vadd.f32 %v5692_v20, %v5650_v43  ;;  %v8984_v45 = vld [vmem:[#allocation9 + $0x58] sm:$0xff]  }
 0x39a   :  { %7767 = vmatprep.subr.bf16.mxu0 %v8966_v24  ;;  %v8986_v21 = vld [vmem:[#allocation9 + $0x18] sm:$0xff]   ;;  %v8988_v24 = vld [vmem:[#allocation9 + $0x50] sm:$0xff]   ;;  %v5729_v4 = vpop.f32.mrf.mxu0 }
 0x39b   :  { %v6211_v0 = vmax.f32 %v5693_v37, 0.0 }
 0x39c   :  { %7821 = vmatpush3.bf16.msra.mxu1 %v8999_v25  ;;  %v5562_v25 = vadd.f32 %v9475_v47, %v3475_v55 }
 0x39d   :  { %7768 = vmatpush3.bf16.msra.mxu0 %v8967_v26  ;;  %7822 = vmatprep.subr.bf16.mxu1 %v9000_v27  ;;  %v6218_v11 = vpack.c.bf16 %v6211_v0, %v6204_v2  ;;  %v8990_v26 = vld [vmem:[#allocation9 + $0x10] sm:$0xff]   ;;  %v5558_v27 = vadd.f32 %v9465_v51, %v3475_v55  ;;  %v8996_v51 = vld [vmem:[#allocation9 + $0x40] sm:$0xff]  }
 0x39e   :  { %7769 = vmatprep.subr.bf16.mxu0 %v8968_v28  ;;  %v5605_v1 = vadd.f32 %v9479_v31, %v5562_v25  ;;  %v9016_v25 = vld [vmem:[#allocation9 + $0x158] sm:$0xff]  }
 0x3a0   :  { %7823 = vmatpush3.bf16.msra.mxu1 %v9001_v44  ;;  %v8992_v44 = vld [vmem:[#allocation9 + $0x48] sm:$0xff]  }
 0x3a1   :  { %7770 = vmatpush3.bf16.msra.mxu0 %v8969_v29  ;;  %7824 = vmatprep.subr.bf16.mxu1 %v9002_v30  ;;  %v5601_v29 = vadd.f32 %v9468_v54, %v5558_v27  ;;  %v5648_v30 = vadd.f32 %v9487_v34, %v5605_v1  ;;  %v8998_v54 = vld [vmem:[#allocation9] sm:$0xff]  }
 0x3a2   :  { %7771 = vmatprep.subr.bf16.mxu0 %v8970_v5 }
 0x3a3   :  { %v5644_v5 = vadd.f32 %v9481_v22, %v5601_v29  ;;  %v5691_v47 = vadd.f32 %v9492_v50, %v5648_v30  ;;  %v3483_v22 = vrot.slane %v9485_v32, %v528_v10  ;;  %v9008_v50 = vld [vmem:[#allocation9 + $0x178] sm:$0xff]   ;;  %v9011_v10 = vld [vmem:[#allocation9 + $0x130] sm:$0xff]  }
 0x3a4   :  { %7825 = vmatpush3.bf16.msra.mxu1 %v9003_v46  ;;  %v5731_v46 = vpop.f32.mrf.mxu0  ;;  %v9018_v30 = vld [vmem:[#allocation9 + $0x150] sm:$0xff]  }
 0x3a5   :  { %7772 = vmatpush3.bf16.msra.mxu0 %v8971_v23  ;;  %7826 = vmatprep.subr.bf16.mxu1 %v9004_v59  ;;  %v5687_v31 = vadd.f32 %v9483_v56, %v5644_v5  ;;  %v6210_v23 = vmax.f32 %v5691_v47, 0.0  ;;  %v5732_v15 = vadd.f32 %v5731_v46, %v3487_v13  ;;  %v9009_v56 = vld [vmem:[#allocation9 + $0x138] sm:$0xff]   ;;  %v5730_v20 = vadd.f32 %v5729_v4, %v3483_v22  ;;  %v9025_v5 = vld [vmem:[#allocation9 + $0x1b0] sm:$0xff]   ;;  %v9020_v47 = vld [vmem:[#allocation9 + $0x148] sm:$0xff]  }
 0x3a6   :  { %7773 = vmatprep.subr.bf16.mxu0 %v8972_v39  ;;  %v5733_v59 = vpop.f32.mrf.mxu0  ;;  %v9017_v4 = vld [vmem:[#allocation9 + $0x118] sm:$0xff]   ;;  %v9026_v46 = vld [vmem:[#allocation9 + $0x1a8] sm:$0xff]  }
 0x3a7   :  { %v6203_v38 = vmax.f32 %v5687_v31, 0.0  ;;  %v5734_v3 = vadd.f32 %v5733_v59, %v3483_v22  ;;  %v9023_v31 = vld [vmem:[#allocation9 + $0x100] sm:$0xff]  }
 0x3a8   :  { %7827 = vmatpush3.bf16.msra.mxu1 %v9005_v40  ;;  %v5735_v40 = vpop.f32.mrf.mxu0  ;;  %v9031_v22 = vld [vmem:[#allocation9 + $0x180] sm:$0xff]  }
 0x3a9   :  { %7774 = vmatpush3.bf16.msra.mxu0 %v8973_v49  ;;  %7828 = vmatprep.subr.bf16.mxu1 %v9006_v12  ;;  %v6217_v16 = vpack.c.bf16 %v6210_v23, %v6203_v38  ;;  %v5736_v12 = vadd.f32 %v5735_v40, %v3487_v13  ;;  %v9027_v13 = vld [vmem:[#allocation9 + $0x1a0] sm:$0xff]   ;;  %v9029_v23 = vld [vmem:[#allocation9 + $0x190] sm:$0xff]   ;;  %v3491_v40 = vrot.slane %v9485_v32, %v536_v8 }
 0x3aa   :  { %7775 = vmatprep.subr.bf16.mxu0 %v8974_v57 }
 0x3ac   :  { %7829 = vmatpush3.bf16.msra.mxu1 %v9007_v53  ;;  %v9012_v53 = vld [vmem:[#allocation9 + $0x168] sm:$0xff]  }
 0x3ad   :  { %7776 = vmatpush3.bf16.msra.mxu0 %v8975_v63  ;;  %7893 = vmatprep.subr.bf16.mxu1 %v9172_v41 }
 0x3ae   :  { %7792 = vmatprep.subr.bf16.mxu0 %v8976_v33 }
 0x3b0   :  { %6154 = vmatmul.mubr.bf16.vlgmr.msra.gmra.mxu0 %v9417_v62  ;;  %v5772_v62 = vpop.f32.mrf.mxu1 }
 0x3b1   :  { %7793 = vmatpush3.bf16.msra.mxu0 %v8977_v36  ;;  %6711 = vmatprep.mubr.bf16.mxu0 %v6218_v11  ;;  %v5773_v52 = vadd.f32 %v5772_v62, %v5730_v20  ;;  %v9013_v11 = vld [vmem:[#allocation9 + $0x128] sm:$0xff]   ;;  %v9015_v62 = vld [vmem:[#allocation9 + $0x120] sm:$0xff]   ;;  %v3495_v20 = vrot.slane %v9485_v32, %v540_v7 }
 0x3b2   :  { %7794 = vmatprep.subr.bf16.mxu0 %v8978_v9  ;;  %v5774_v28 = vpop.f32.mrf.mxu1 }
 0x3b3   :  { %v5775_v57 = vadd.f32 %v5774_v28, %v5732_v15 }
 0x3b4   :  { %v5776_v6 = vpop.f32.mrf.mxu1 }
 0x3b5   :  { %7795 = vmatpush3.bf16.msra.mxu0 %v8979_v14  ;;  %v5777_v63 = vadd.f32 %v5776_v6, %v5734_v3  ;;  %v9021_v6 = vld [vmem:[#allocation9 + $0x108] sm:$0xff]  }
 0x3b6   :  { %7796 = vmatprep.subr.bf16.mxu0 %v8980_v60  ;;  %v5778_v34 = vpop.f32.mrf.mxu1  ;;  %v9014_v60 = vld [vmem:[#allocation9 + $0x160] sm:$0xff]  }
 0x3b7   :  { %v5779_v9 = vadd.f32 %v5778_v34, %v5736_v12  ;;  %v9030_v34 = vld [vmem:[#allocation9 + $0x188] sm:$0xff]  }
 0x3b8   :  { %v5858_v39 = vpop.f32.mrf.mxu1 }
 0x3b9   :  { %7797 = vmatpush3.bf16.msra.mxu0 %v8981_v17 }
 0x3ba   :  { %7798 = vmatprep.subr.bf16.mxu0 %v8982_v18  ;;  %v5860_v43 = vpop.f32.mrf.mxu1 }
 0x3bc   :  { %v5862_v33 = vpop.f32.mrf.mxu1 }
 0x3bd   :  { %7799 = vmatpush3.bf16.msra.mxu0 %v8983_v19 }
 0x3be   :  { %7800 = vmatprep.subr.bf16.mxu0 %v8984_v45  ;;  %v5864_v45 = vpop.f32.mrf.mxu1 }
 0x3c1   :  { %7801 = vmatpush3.bf16.msra.mxu0 %v8986_v21 }
 0x3c2   :  { %7802 = vmatprep.subr.bf16.mxu0 %v8988_v24 }
 0x3c5   :  { %7803 = vmatpush3.bf16.msra.mxu0 %v8990_v26 }
 0x3c6   :  { %7804 = vmatprep.subr.bf16.mxu0 %v8992_v44  ;;  %v9024_v44 = vld [vmem:[#allocation9 + $0x1b8] sm:$0xff]  }
 0x3c9   :  { %7805 = vmatpush3.bf16.msra.mxu0 %v8994_v42  ;;  %v9019_v42 = vld [vmem:[#allocation9 + $0x110] sm:$0xff]  }
 0x3ca   :  { %7806 = vmatprep.subr.bf16.mxu0 %v8996_v51  ;;  %v9022_v51 = vld [vmem:[#allocation9 + $0x140] sm:$0xff]  }
 0x3cd   :  { %7807 = vmatpush3.bf16.msra.mxu0 %v8998_v54  ;;  %v9028_v54 = vld [vmem:[#allocation9 + $0x198] sm:$0xff]  }
 0x3ce   :  { %7836 = vmatprep.subr.bf16.mxu0 %v9008_v50 }
 0x3cf   :  { %v5901_v59 = vpop.f32.mrf.mxu1 }
 0x3d0   :  { %v5815_v49 = vpop.f32.mrf.mxu0  ;;  %6712 = vmatmul.mubr.bf16.vlgmr.msra.gmra.mxu0 %v6217_v16 }
 0x3d1   :  { %7837 = vmatpush3.bf16.msra.mxu0 %v9009_v56  ;;  %v5816_v0 = vadd.f32 %v5815_v49, %v5773_v52  ;;  %v5903_v50 = vpop.f32.mrf.mxu1  ;;  %v5902_v49 = vadd.f32 %v5901_v59, %v3491_v40 }
 0x3d2   :  { %v5817_v37 = vpop.f32.mrf.mxu0  ;;  %7838 = vmatprep.subr.bf16.mxu0 %v9010_v58 }
 0x3d3   :  { %v5818_v61 = vadd.f32 %v5817_v37, %v5775_v57  ;;  %v5859_v21 = vadd.f32 %v5858_v39, %v5816_v0  ;;  %v5905_v38 = vpop.f32.mrf.mxu1 }
 0x3d4   :  { %v5819_v2 = vpop.f32.mrf.mxu0 }
 0x3d5   :  { %v5820_v36 = vadd.f32 %v5819_v2, %v5777_v63  ;;  %7839 = vmatpush3.bf16.msra.mxu0 %v9011_v10  ;;  %v5861_v17 = vadd.f32 %v5860_v43, %v5818_v61  ;;  %v6205_v1 = vmax.f32 %v5859_v21, 0.0  ;;  %v5907_v15 = vpop.f32.mrf.mxu1  ;;  %v5906_v43 = vadd.f32 %v5905_v38, %v3491_v40 }
 0x3d6   :  { %v5821_v14 = vpop.f32.mrf.mxu0  ;;  %7840 = vmatprep.subr.bf16.mxu0 %v9012_v53  ;;  %v5908_v57 = vadd.f32 %v5907_v15, %v3495_v20 }
 0x3d7   :  { %v5863_v18 = vadd.f32 %v5862_v33, %v5820_v36  ;;  %v5822_v19 = vadd.f32 %v5821_v14, %v5779_v9  ;;  %v6206_v26 = vmax.f32 %v5861_v17, 0.0 }
 0x3d9   :  { %v5865_v55 = vadd.f32 %v5864_v45, %v5822_v19  ;;  %7841 = vmatpush3.bf16.msra.mxu0 %v9013_v11  ;;  %v6212_v24 = vmax.f32 %v5863_v18, 0.0 }
 0x3da   :  { %7842 = vmatprep.subr.bf16.mxu0 %v9014_v60 }
 0x3db   :  { %v6213_v27 = vmax.f32 %v5865_v55, 0.0  ;;  %v6219_v29 = vpack.c.bf16 %v6212_v24, %v6205_v1 }
 0x3dd   :  { %v6220_v28 = vpack.c.bf16 %v6213_v27, %v6206_v26  ;;  %7843 = vmatpush3.bf16.msra.mxu0 %v9015_v62 }
 0x3de   :  { %7844 = vmatprep.subr.bf16.mxu0 %v9016_v25 }
 0x3df   :  { %6752 = vmatprep.mubr.bf16.mxu1 %v6220_v28 }
 0x3e0   :  { %6753 = vmatmul.mubr.bf16.vlgmr.msra.gmra.mxu1 %v6219_v29 }
 0x3e1   :  { %7845 = vmatpush3.bf16.msra.mxu0 %v9017_v4  ;;  %7894 = vmatpush3.bf16.msra.mxu1 %v9024_v44 }
 0x3e2   :  { %7846 = vmatprep.subr.bf16.mxu0 %v9018_v30  ;;  %7895 = vmatprep.subr.bf16.mxu1 %v9172_v41 }
 0x3e3   :  { %7909 = vmatprep.mubr.msk.bf16.mxu1 %vm9173_vm1, %v9172_v41 }
 0x3e5   :  { %7847 = vmatpush3.bf16.msra.mxu0 %v9019_v42  ;;  %7896 = vmatpush3.bf16.msra.mxu1 %v9025_v5 }
 0x3e6   :  { %7848 = vmatprep.subr.bf16.mxu0 %v9020_v47  ;;  %7897 = vmatprep.subr.bf16.mxu1 %v9172_v41  ;;  %v3499_v47 = vrot.slane %v9485_v32, %v544_v48 }
 0x3e9   :  { %7849 = vmatpush3.bf16.msra.mxu0 %v9021_v6  ;;  %7898 = vmatpush3.bf16.msra.mxu1 %v9026_v46 }
 0x3ea   :  { %7850 = vmatprep.subr.bf16.mxu0 %v9022_v51  ;;  %7899 = vmatprep.subr.bf16.mxu1 %v9172_v41 }
 0x3ed   :  { %7851 = vmatpush3.bf16.msra.mxu0 %v9023_v31  ;;  %7900 = vmatpush3.bf16.msra.mxu1 %v9027_v13 }
 0x3ee   :  { %7901 = vmatprep.subr.bf16.mxu1 %v9172_v41 }
 0x3f1   :  { %7902 = vmatpush3.bf16.msra.mxu1 %v9028_v54 }
 0x3f2   :  { %7903 = vmatprep.subr.bf16.mxu1 %v9172_v41 }
 0x3f5   :  { %7904 = vmatpush3.bf16.msra.mxu1 %v9029_v23 }
 0x3f6   :  { %7905 = vmatprep.subr.bf16.mxu1 %v9172_v41 }
 0x3f9   :  { %7906 = vmatpush3.bf16.msra.mxu1 %v9030_v34 }
 0x3fa   :  { %7907 = vmatprep.subr.bf16.mxu1 %v9172_v41  ;;  %v5904_v41 = vadd.f32 %v5903_v50, %v3495_v20 }
 0x3fd   :  { %7908 = vmatpush3.bf16.msra.mxu1 %v9031_v22 }
 0x40f   :  { %v5987_v16 = vpop.f32.mrf.mxu1 }
 0x410   :  { %v5944_v39 = vpop.f32.mrf.mxu0 }
 0x411   :  { %v5989_v3 = vpop.f32.mrf.mxu1  ;;  %v5945_v37 = vadd.f32 %v5944_v39, %v5902_v49 }
 0x412   :  { %v5946_v56 = vpop.f32.mrf.mxu0 }
 0x413   :  { %v5947_v10 = vadd.f32 %v5946_v56, %v5904_v41  ;;  %v5991_v53 = vpop.f32.mrf.mxu1  ;;  %v5988_v36 = vadd.f32 %v5987_v16, %v5945_v37 }
 0x414   :  { %v5948_v58 = vpop.f32.mrf.mxu0 }
 0x415   :  { %v5949_v52 = vadd.f32 %v5948_v58, %v5906_v43  ;;  %v5990_v0 = vadd.f32 %v5989_v3, %v5947_v10  ;;  %v5993_v2 = vpop.f32.mrf.mxu1 }
 0x416   :  { %v5950_v12 = vpop.f32.mrf.mxu0 }
 0x417   :  { %v5951_v63 = vadd.f32 %v5950_v12, %v5908_v57  ;;  %v5992_v7 = vadd.f32 %v5991_v53, %v5949_v52 }
 0x419   :  { %v5994_v14 = vadd.f32 %v5993_v2, %v5951_v63 }
 0x42f   :  { %v7755_v25 = vpop.f32.mrf.mxu1 }
 0x430   :  { %v6030_v61 = vpop.f32.mrf.mxu0 }
 0x431   :  { %v6031_v60 = vadd.f32 %v6030_v61, %v5988_v36  ;;  %v7756_v26 = vpop.f32.mrf.mxu1  ;;  %v7592_v61 = vld [vmem:[#allocation10] ss:$0 sm:$0xff] }
 0x432   :  { %v6032_v33 = vpop.f32.mrf.mxu0  ;;  %v7757_v54 = vadd.f32 %v7756_v26, %v7755_v25 }
 0x433   :  { %v6033_v8 = vadd.f32 %v6032_v33, %v5990_v0  ;;  %v6207_v55 = vmax.f32 %v6031_v60, 0.0  ;;  %v7758_v27 = vpop.f32.mrf.mxu1 }
 0x434   :  { %v6034_v9 = vpop.f32.mrf.mxu0 }
 0x435   :  { %v6035_v11 = vadd.f32 %v6034_v9, %v5992_v7  ;;  %v6208_v45 = vmax.f32 %v6033_v8, 0.0  ;;  %v7759_v1 = vpop.f32.mrf.mxu1 }
 0x436   :  { %v6036_v17 = vpop.f32.mrf.mxu0  ;;  %v7760_v38 = vadd.f32 %v7759_v1, %v7758_v27 }
 0x437   :  { %v6037_v18 = vadd.f32 %v6036_v17, %v5994_v14  ;;  %v6214_v19 = vmax.f32 %v6035_v11, 0.0 }
 0x439   :  { %v6215_v21 = vmax.f32 %v6037_v18, 0.0  ;;  %v6221_v24 = vpack.c.bf16 %v6214_v19, %v6207_v55 }
 0x43b   :  { %v6222_v62 = vpack.c.bf16 %v6215_v21, %v6208_v45 }
 0x43d   :  { %6793 = vmatprep.mubr.bf16.mxu0 %v6222_v62 }
 0x43e   :  { %6794 = vmatmul.mubr.bf16.vlgmr.msra.gmra.mxu0 %v6221_v24 }
 0x44f   :  { %v6196_v28 = vpop.f32.mrf.mxu1 }
 0x450   :  { %v7733_v30 = vpop.f32.mrf.mxu0 }
 0x451   :  { %v7891_v4 = vpop.f32.mrf.mxu1 }
 0x452   :  { %v7734_v42 = vpop.f32.mrf.mxu0 }
 0x453   :  { %v6199_v44 = vpop.f32.mrf.mxu1  ;;  %v7735_v6 = vadd.f32 %v7734_v42, %v7733_v30 }
 0x454   :  { %v7736_v5 = vpop.f32.mrf.mxu0 }
 0x455   :  { %v7892_v29 = vpop.f32.mrf.mxu1  ;;  %v6074_v51 = vadd.f32 %v7735_v6, %v3499_v47 }
 0x456   :  { %v7737_v46 = vpop.f32.mrf.mxu0 }
 0x457   :  { %v7738_v31 = vadd.f32 %v7737_v46, %v7736_v5  ;;  %v6115_v22 = vadd.f32 %v7757_v54, %v6074_v51 }
 0x459   :  { %v6077_v34 = vadd.f32 %v7738_v31, %v3499_v47 }
 0x45b   :  { %v6118_v56 = vadd.f32 %v7760_v38, %v6077_v34 }
 0x470   :  { %v7777_v13 = vpop.f32.mrf.mxu0 }
 0x472   :  { %v7778_v23 = vpop.f32.mrf.mxu0 }
 0x473   :  { %v7779_v59 = vadd.f32 %v7778_v23, %v7777_v13 }
 0x474   :  { %v7780_v50 = vpop.f32.mrf.mxu0 }
 0x475   :  { %v6156_v39 = vadd.f32 %v7779_v59, %v6115_v22 }
 0x476   :  { %v7781_v15 = vpop.f32.mrf.mxu0 }
 0x477   :  { %v7782_v16 = vadd.f32 %v7781_v15, %v7780_v50  ;;  %v6197_v20 = vadd.f32 %v6196_v28, %v6156_v39 }
 0x479   :  { %v6159_v35 = vadd.f32 %v7782_v16, %v6118_v56  ;;  %v6209_v48 = vmax.f32 %v6197_v20, 0.0 }
 0x47b   :  { %v6200_v40 = vadd.f32 %v6199_v44, %v6159_v35 }
 0x47d   :  { %v6216_v32 = vmax.f32 %v6200_v40, 0.0 }
 0x47f   :  { %v6223_v58 = vpack.c.bf16 %v6216_v32, %v6209_v48 }
 0x481   :  { %7910 = vmatmul.mubr.bf16.vlgmr.msra.gmra.mxu1 %v6223_v58 }
 0x490   :  { %v7808_v3 = vpop.f32.mrf.mxu0 }
 0x492   :  { %v7809_v41 = vpop.f32.mrf.mxu0 }
 0x493   :  { %v7810_v53 = vadd.f32 %v7809_v41, %v7808_v3 }
 0x494   :  { %v7811_v43 = vpop.f32.mrf.mxu0 }
 0x495   :  { %v6714_v7 = vadd.f32 %v7810_v53, %v7592_v61 }
 0x496   :  { %v7812_v49 = vpop.f32.mrf.mxu0 }
 0x497   :  { %v7813_v2 = vadd.f32 %v7812_v49, %v7811_v43 }
 0x499   :  { %v6717_v14 = vadd.f32 %v7813_v2, %v7592_v61 }
 0x4a0   :  { %v7830_v12 = vpop.f32.mrf.mxu1 }
 0x4a2   :  { %v7831_v10 = vpop.f32.mrf.mxu1 }
 0x4a3   :  { %v7832_v33 = vadd.f32 %v7831_v10, %v7830_v12 }
 0x4a4   :  { %v7833_v37 = vpop.f32.mrf.mxu1 }
 0x4a5   :  { %v6755_v8 = vadd.f32 %v7832_v33, %v6714_v7 }
 0x4a6   :  { %v7834_v0 = vpop.f32.mrf.mxu1 }
 0x4a7   :  { %v7835_v11 = vadd.f32 %v7834_v0, %v7833_v37 }
 0x4a9   :  { %v6758_v19 = vadd.f32 %v7835_v11, %v6717_v14 }
 0x4fe   :  { %v7852_v57 = vpop.f32.mrf.mxu0 }
 0x500   :  { %v7853_v52 = vpop.f32.mrf.mxu0 }
 0x501   :  { %v7854_v36 = vadd.f32 %v7853_v52, %v7852_v57 }
 0x502   :  { %v7855_v63 = vpop.f32.mrf.mxu0 }
 0x503   :  { %v6796_v17 = vadd.f32 %v7854_v36, %v6755_v8 }
 0x504   :  { %v7856_v9 = vpop.f32.mrf.mxu0 }
 0x505   :  { %v7857_v60 = vadd.f32 %v7856_v9, %v7855_v63 }
 0x507   :  { %v6799_v55 = vadd.f32 %v7857_v60, %v6758_v19 }
 0x541   :  { %v6836_v18 = vpop.f32.mrf.mxu1 }
 0x542   :  { %v6837_v45 = vadd.f32 %v6836_v18, %v6796_v17 }
 0x543   :  { %v7911_v21 = vpop.f32.mrf.mxu1 }
 0x544   :  { %6843 = vst [vmem:[%s9546_s7] sm:$0xff] %v6837_v45 }
 0x545   :  { %v6839_v62 = vpop.f32.mrf.mxu1 }
 0x546   :  { %v6840_v24 = vadd.f32 %v6839_v62, %v6799_v55 }
 0x547   :  { %v7912_v25 = vpop.f32.mrf.mxu1 }
 0x548   :  { %6844 = vst [vmem:[%s9546_s7 + $0x8] sm:$0xff] %v6840_v24 }
 0x549   :  { %6849 = vsyncpa [#allocation3], 1 }
 0x54a   :  { %6850 = vsyncpa [#allocation5], 1 }
 0x54b   :  { %6851 = vsyncpa [#allocation8], 1 }
 0x54c   :  { %6852 = vsyncpa [#allocation11], 1 }

</bundles_post_ra>
